<compile_context>
chip_gen: v7x
topology: tpu7x:2x2x1
jax: 0.10.0
libtpu: 0.0.40
codegen_flags: <defaults>
</compile_context>

<pallas_src>
import jax
import jax.numpy as jnp
from jax.experimental import pallas as pl
from jax.experimental.pallas import tpu as pltpu

IN_DIM = 32 * 32 * 3   # 3072
OUT_DIM = 10
OUT_PAD = 128          # lane-dense padded width for the 10-way output
HID2_PAD = 128         # fc2 output padded 64 -> 128 lanes


def mlp_kernel(x_ref,
               w_ref, b_ref,
               w0_ref, b0_ref,
               w1_ref, b1_ref,
               w2_ref, b2_ref,
               w3_ref, b3_ref,
               o_ref):
    # Fused 5-layer MLP on one batch tile.
    # x: f32 [TM, 3072] (cast to bf16 here, under the MXU); weights: bf16 [in, out];
    # biases: f32 [1, out]. All matmuls accumulate in f32 on the MXU.
    x = x_ref[...].astype(jnp.bfloat16)

    # fc: 3072 -> 512 (no activation, matches PyTorch forward)
    h = jnp.dot(x, w_ref[...], preferred_element_type=jnp.float32) + b_ref[...]

    # fc0: 512 -> 256, relu
    h = jnp.dot(h.astype(jnp.bfloat16), w0_ref[...],
                preferred_element_type=jnp.float32) + b0_ref[...]
    h = jnp.maximum(h, 0.0)

    # fc1: 256 -> 128, relu
    h = jnp.dot(h.astype(jnp.bfloat16), w1_ref[...],
                preferred_element_type=jnp.float32) + b1_ref[...]
    h = jnp.maximum(h, 0.0)

    # fc2: 128 -> 128 (zero-padded from 64 for lane-dense vregs), relu
    h = jnp.dot(h.astype(jnp.bfloat16), w2_ref[...],
                preferred_element_type=jnp.float32) + b2_ref[...]
    h = jnp.maximum(h, 0.0)

    # fc3: 128 -> 128 (input rows / output lanes zero-padded from 64 / 10), relu
    h = jnp.dot(h.astype(jnp.bfloat16), w3_ref[...],
                preferred_element_type=jnp.float32) + b3_ref[...]
    h = jnp.maximum(h, 0.0)

    # nn.Dropout(0.5): identity in eval/inference mode.
    # TODO(synk): training-mode dropout (pltpu.prng_seed + prng_random_bits mask) not emitted.
    o_ref[...] = h


def _round_up(n, m):
    return ((n + m - 1) // m) * m


def _cdiv(a, b):
    return (a + b - 1) // b


def _chip_tuning():
    """Per-generation tile cap / VMEM limit. Conservative fallback if query fails."""
    tm_max, vmem_limit = 512, 32 << 20          # safe for v7x's 64 MiB VMEM
    try:
        info = pltpu.get_tpu_info()
        if info.vmem_capacity_bytes >= (100 << 20):   # v5e / v6e: 128 MiB VMEM
            tm_max, vmem_limit = 1024, 80 << 20
    except Exception:
        pass
    return tm_max, vmem_limit


def relu_model_forward(x, params, *, tm_max=None, vmem_limit_bytes=None):
    """x: [B, 3, 32, 32] float32 (NCHW). Returns [B, 10] float32."""
    B = x.shape[0]
    x_flat = x.reshape(B, IN_DIM)                 # torch.flatten(x, 1); stays f32 (cast in-kernel)

    auto_tm, auto_vmem = _chip_tuning()
    if tm_max is None:
        tm_max = auto_tm
    if vmem_limit_bytes is None:
        vmem_limit_bytes = auto_vmem

    # Batch tiling: multiples of 16 rows (bf16 sublane pack). When the batch is big enough,
    # force >=2 grid steps so both v7x TensorCores get work (harmless on single-TC chips).
    B16 = _round_up(B, 16)
    min_tiles = 2 if B16 >= 32 else 1
    n_tiles = max(min_tiles, _cdiv(B16, tm_max))
    TM = _round_up(_cdiv(B16, n_tiles), 16)
    B_pad = n_tiles * TM
    if B_pad != B:
        x_flat = jnp.pad(x_flat, ((0, B_pad - B), (0, 0)))

    (w, b), (w0, b0), (w1, b1), (w2, b2), (w3, b3) = params

    # Zero-pad fc2 (64 -> 128 out lanes) and fc3 (64 -> 128 in rows, 10 -> 128 out lanes).
    # Exact: zero weights/bias contribute 0 and relu(0) = 0.
    w2p = jnp.pad(w2, ((0, 0), (0, HID2_PAD - w2.shape[1])))
    b2p = jnp.pad(b2, (0, HID2_PAD - b2.shape[0]))
    w3p = jnp.pad(w3, ((0, HID2_PAD - w3.shape[0]), (0, OUT_PAD - w3.shape[1])))
    b3p = jnp.pad(b3, (0, OUT_PAD - b3.shape[0]))

    weights = [wi.astype(jnp.bfloat16) for wi in (w, w0, w1, w2p, w3p)]
    biases = [bi.reshape(1, -1).astype(jnp.float32) for bi in (b, b0, b1, b2p, b3p)]

    operands = [x_flat]
    for wi, bi in zip(weights, biases):
        operands += [wi, bi]

    def pinned_spec(shape):
        # Constant index_map: same block every grid step -> weights/biases stay
        # VMEM-resident across batch tiles (no per-tile re-DMA).
        return pl.BlockSpec(shape, lambda i: tuple(0 for _ in shape))

    in_specs = [pl.BlockSpec((TM, IN_DIM), lambda i: (i, 0))]
    for wi, bi in zip(weights, biases):
        in_specs += [pinned_spec(wi.shape), pinned_spec(bi.shape)]

    out = pl.pallas_call(
        mlp_kernel,
        out_shape=jax.ShapeDtypeStruct((B_pad, OUT_PAD), jnp.float32),
        grid=(B_pad // TM,),
        in_specs=in_specs,
        out_specs=pl.BlockSpec((TM, OUT_PAD), lambda i: (i, 0)),
        compiler_params=pltpu.CompilerParams(
            dimension_semantics=("parallel",),      # shard batch tiles across TCs (v7x)
            vmem_limit_bytes=vmem_limit_bytes,
        ),
    )(*operands)

    return out[:B, :OUT_DIM]


def init_params(key):
    """Deterministic init mimicking nn.Linear (uniform +/- 1/sqrt(fan_in)).
    Weights are stored as [in, out] (transposed vs. PyTorch's [out, in])."""
    dims = [(IN_DIM, 512), (512, 256), (256, 128), (128, 64), (64, OUT_DIM)]
    params = []
    for (fan_in, fan_out) in dims:
        key, kw, kb = jax.random.split(key, 3)
        bound = 1.0 / jnp.sqrt(fan_in)
        wi = jax.random.uniform(kw, (fan_in, fan_out), jnp.float32, -bound, bound)
        bi = jax.random.uniform(kb, (fan_out,), jnp.float32, -bound, bound)
        params.append((wi, bi))
    return params


if __name__ == "__main__":
    key = jax.random.PRNGKey(0)
    key_x, key_p = jax.random.split(key)

    # Batch of 2 CIFAR-like images, NCHW [2, 3, 32, 32].
    x = jax.random.normal(key_x, (2, 3, 32, 32), jnp.float32)
    params = init_params(key_p)

    out = relu_model_forward(x, params)
    out = jax.block_until_ready(out)

    # Reference in plain JAX at matched precision (bf16 weights/activations, f32 accum).
    # Note: ReLU is intentionally applied after fc3 (the logits), matching the PyTorch forward.
    xf = x.reshape(2, -1)
    (w, b), *rest = params
    h = jnp.dot(xf.astype(jnp.bfloat16), w.astype(jnp.bfloat16),
                preferred_element_type=jnp.float32) + b
    for (wi, bi) in rest:
        h = jnp.dot(h.astype(jnp.bfloat16), wi.astype(jnp.bfloat16),
                    preferred_element_type=jnp.float32) + bi
        h = jnp.maximum(h, 0.0)

    assert out.shape == (2, 10)
    assert jnp.allclose(out, h, atol=2e-2, rtol=2e-2), (
        f"max abs err {jnp.max(jnp.abs(out - h))}")

    print("KERNEL_OK")
</pallas_src>

<mosaic_0001>
module attributes {stable_mosaic.version = 11 : i64} {
  func.func @mlp_kernel(%arg0: i32, %arg1: memref<16x3072xf32, #tpu.memory_space<vmem>>, %arg2: memref<3072x512xbf16, #tpu.memory_space<vmem>>, %arg3: memref<1x512xf32, #tpu.memory_space<vmem>>, %arg4: memref<512x256xbf16, #tpu.memory_space<vmem>>, %arg5: memref<1x256xf32, #tpu.memory_space<vmem>>, %arg6: memref<256x128xbf16, #tpu.memory_space<vmem>>, %arg7: memref<1x128xf32, #tpu.memory_space<vmem>>, %arg8: memref<128x128xbf16, #tpu.memory_space<vmem>>, %arg9: memref<1x128xf32, #tpu.memory_space<vmem>>, %arg10: memref<128x128xbf16, #tpu.memory_space<vmem>>, %arg11: memref<1x128xf32, #tpu.memory_space<vmem>>, %arg12: memref<16x128xf32, #tpu.memory_space<vmem>>) attributes {dimension_semantics = [#tpu.dimension_semantics<parallel>], iteration_bounds = array<i64: 1>, scalar_prefetch = 0 : i64, scratch_operands = 0 : i64, tpu.core_type = #tpu.core_type<tc>, window_params = [{transform_indices = @transform_0, window_bounds = array<i64: 16, 3072>}, {pipeline_mode = #tpu.pipeline_mode<synchronous>, transform_indices = @transform_1, window_bounds = array<i64: 3072, 512>}, {pipeline_mode = #tpu.pipeline_mode<synchronous>, transform_indices = @transform_2, window_bounds = array<i64: 1, 512>}, {pipeline_mode = #tpu.pipeline_mode<synchronous>, transform_indices = @transform_3, window_bounds = array<i64: 512, 256>}, {pipeline_mode = #tpu.pipeline_mode<synchronous>, transform_indices = @transform_4, window_bounds = array<i64: 1, 256>}, {pipeline_mode = #tpu.pipeline_mode<synchronous>, transform_indices = @transform_5, window_bounds = array<i64: 256, 128>}, {pipeline_mode = #tpu.pipeline_mode<synchronous>, transform_indices = @transform_6, window_bounds = array<i64: 1, 128>}, {pipeline_mode = #tpu.pipeline_mode<synchronous>, transform_indices = @transform_7, window_bounds = array<i64: 128, 128>}, {pipeline_mode = #tpu.pipeline_mode<synchronous>, transform_indices = @transform_8, window_bounds = array<i64: 1, 128>}, {pipeline_mode = #tpu.pipeline_mode<synchronous>, transform_indices = @transform_9, window_bounds = array<i64: 128, 128>}, {pipeline_mode = #tpu.pipeline_mode<synchronous>, transform_indices = @transform_10, window_bounds = array<i64: 1, 128>}, {transform_indices = @transform_11, window_bounds = array<i64: 16, 128>}]} {
    %c0 = arith.constant 0 : index
    %c0_0 = arith.constant 0 : index
    %0 = vector.load %arg1[%c0, %c0_0] : memref<16x3072xf32, #tpu.memory_space<vmem>>, vector<16x3072xf32>
    %1 = arith.truncf %0 : vector<16x3072xf32> to vector<16x3072xbf16>
    %c0_1 = arith.constant 0 : index
    %c0_2 = arith.constant 0 : index
    %2 = vector.load %arg2[%c0_1, %c0_2] : memref<3072x512xbf16, #tpu.memory_space<vmem>>, vector<3072x512xbf16>
    %cst = arith.constant dense<0.000000e+00> : vector<16x512xf32>
    %3 = tpu.matmul %1, %2, %cst {dimension_numbers = #tpu.dot_dimension_numbers<[1], [0], [0], [1], [0, 0, 1, 1], [], []>} : vector<16x3072xbf16>, vector<3072x512xbf16>, vector<16x512xf32> -> vector<16x512xf32>
    %c0_3 = arith.constant 0 : index
    %c0_4 = arith.constant 0 : index
    %4 = vector.load %arg3[%c0_3, %c0_4] : memref<1x512xf32, #tpu.memory_space<vmem>>, vector<1x512xf32>
    %5 = vector.broadcast %4 : vector<1x512xf32> to vector<16x512xf32>
    %6 = arith.addf %3, %5 : vector<16x512xf32>
    %7 = arith.truncf %6 : vector<16x512xf32> to vector<16x512xbf16>
    %c0_5 = arith.constant 0 : index
    %c0_6 = arith.constant 0 : index
    %8 = vector.load %arg4[%c0_5, %c0_6] : memref<512x256xbf16, #tpu.memory_space<vmem>>, vector<512x256xbf16>
    %cst_7 = arith.constant dense<0.000000e+00> : vector<16x256xf32>
    %9 = tpu.matmul %7, %8, %cst_7 {dimension_numbers = #tpu.dot_dimension_numbers<[1], [0], [0], [1], [0, 0, 1, 1], [], []>} : vector<16x512xbf16>, vector<512x256xbf16>, vector<16x256xf32> -> vector<16x256xf32>
    %c0_8 = arith.constant 0 : index
    %c0_9 = arith.constant 0 : index
    %10 = vector.load %arg5[%c0_8, %c0_9] : memref<1x256xf32, #tpu.memory_space<vmem>>, vector<1x256xf32>
    %11 = vector.broadcast %10 : vector<1x256xf32> to vector<16x256xf32>
    %12 = arith.addf %9, %11 : vector<16x256xf32>
    %cst_10 = arith.constant 0.000000e+00 : f32
    %13 = vector.broadcast %cst_10 : f32 to vector<16x256xf32>
    %14 = arith.maximumf %12, %13 : vector<16x256xf32>
    %15 = arith.truncf %14 : vector<16x256xf32> to vector<16x256xbf16>
    %c0_11 = arith.constant 0 : index
    %c0_12 = arith.constant 0 : index
    %16 = vector.load %arg6[%c0_11, %c0_12] : memref<256x128xbf16, #tpu.memory_space<vmem>>, vector<256x128xbf16>
    %cst_13 = arith.constant dense<0.000000e+00> : vector<16x128xf32>
    %17 = tpu.matmul %15, %16, %cst_13 {dimension_numbers = #tpu.dot_dimension_numbers<[1], [0], [0], [1], [0, 0, 1, 1], [], []>} : vector<16x256xbf16>, vector<256x128xbf16>, vector<16x128xf32> -> vector<16x128xf32>
    %c0_14 = arith.constant 0 : index
    %c0_15 = arith.constant 0 : index
    %18 = vector.load %arg7[%c0_14, %c0_15] : memref<1x128xf32, #tpu.memory_space<vmem>>, vector<1x128xf32>
    %19 = vector.broadcast %18 : vector<1x128xf32> to vector<16x128xf32>
    %20 = arith.addf %17, %19 : vector<16x128xf32>
    %cst_16 = arith.constant 0.000000e+00 : f32
    %21 = vector.broadcast %cst_16 : f32 to vector<16x128xf32>
    %22 = arith.maximumf %20, %21 : vector<16x128xf32>
    %23 = arith.truncf %22 : vector<16x128xf32> to vector<16x128xbf16>
    %c0_17 = arith.constant 0 : index
    %c0_18 = arith.constant 0 : index
    %24 = vector.load %arg8[%c0_17, %c0_18] : memref<128x128xbf16, #tpu.memory_space<vmem>>, vector<128x128xbf16>
    %cst_19 = arith.constant dense<0.000000e+00> : vector<16x128xf32>
    %25 = tpu.matmul %23, %24, %cst_19 {dimension_numbers = #tpu.dot_dimension_numbers<[1], [0], [0], [1], [0, 0, 1, 1], [], []>} : vector<16x128xbf16>, vector<128x128xbf16>, vector<16x128xf32> -> vector<16x128xf32>
    %c0_20 = arith.constant 0 : index
    %c0_21 = arith.constant 0 : index
    %26 = vector.load %arg9[%c0_20, %c0_21] : memref<1x128xf32, #tpu.memory_space<vmem>>, vector<1x128xf32>
    %27 = vector.broadcast %26 : vector<1x128xf32> to vector<16x128xf32>
    %28 = arith.addf %25, %27 : vector<16x128xf32>
    %cst_22 = arith.constant 0.000000e+00 : f32
    %29 = vector.broadcast %cst_22 : f32 to vector<16x128xf32>
    %30 = arith.maximumf %28, %29 : vector<16x128xf32>
    %31 = arith.truncf %30 : vector<16x128xf32> to vector<16x128xbf16>
    %c0_23 = arith.constant 0 : index
    %c0_24 = arith.constant 0 : index
    %32 = vector.load %arg10[%c0_23, %c0_24] : memref<128x128xbf16, #tpu.memory_space<vmem>>, vector<128x128xbf16>
    %cst_25 = arith.constant dense<0.000000e+00> : vector<16x128xf32>
    %33 = tpu.matmul %31, %32, %cst_25 {dimension_numbers = #tpu.dot_dimension_numbers<[1], [0], [0], [1], [0, 0, 1, 1], [], []>} : vector<16x128xbf16>, vector<128x128xbf16>, vector<16x128xf32> -> vector<16x128xf32>
    %c0_26 = arith.constant 0 : index
    %c0_27 = arith.constant 0 : index
    %34 = vector.load %arg11[%c0_26, %c0_27] : memref<1x128xf32, #tpu.memory_space<vmem>>, vector<1x128xf32>
    %35 = vector.broadcast %34 : vector<1x128xf32> to vector<16x128xf32>
    %36 = arith.addf %33, %35 : vector<16x128xf32>
    %cst_28 = arith.constant 0.000000e+00 : f32
    %37 = vector.broadcast %cst_28 : f32 to vector<16x128xf32>
    %38 = arith.maximumf %36, %37 : vector<16x128xf32>
    %c0_29 = arith.constant 0 : index
    %c0_30 = arith.constant 0 : index
    %39 = vector.load %arg12[%c0_29, %c0_30] : memref<16x128xf32, #tpu.memory_space<vmem>>, vector<16x128xf32>
    tpu.vector_store %arg12[%c0_29, %c0_30], %38 {strides = array<i32>} : memref<16x128xf32, #tpu.memory_space<vmem>>, vector<16x128xf32>,
    return
  }
  func.func @transform_0(%arg0: i32) -> (i32, i32) {
    %c0_i32 = arith.constant 0 : i32
    %c0_i32_0 = arith.constant 0 : i32
    return %arg0, %c0_i32 : i32, i32
  }
  func.func @transform_1(%arg0: i32) -> (i32, i32) {
    %c0_i32 = arith.constant 0 : i32
    %c0_i32_0 = arith.constant 0 : i32
    %c0_i32_1 = arith.constant 0 : i32
    return %c0_i32, %c0_i32_0 : i32, i32
  }
  func.func @transform_2(%arg0: i32) -> (i32, i32) {
    %c0_i32 = arith.constant 0 : i32
    %c0_i32_0 = arith.constant 0 : i32
    %c0_i32_1 = arith.constant 0 : i32
    return %c0_i32, %c0_i32_0 : i32, i32
  }
  func.func @transform_3(%arg0: i32) -> (i32, i32) {
    %c0_i32 = arith.constant 0 : i32
    %c0_i32_0 = arith.constant 0 : i32
    %c0_i32_1 = arith.constant 0 : i32
    return %c0_i32, %c0_i32_0 : i32, i32
  }
  func.func @transform_4(%arg0: i32) -> (i32, i32) {
    %c0_i32 = arith.constant 0 : i32
    %c0_i32_0 = arith.constant 0 : i32
    %c0_i32_1 = arith.constant 0 : i32
    return %c0_i32, %c0_i32_0 : i32, i32
  }
  func.func @transform_5(%arg0: i32) -> (i32, i32) {
    %c0_i32 = arith.constant 0 : i32
    %c0_i32_0 = arith.constant 0 : i32
    %c0_i32_1 = arith.constant 0 : i32
    return %c0_i32, %c0_i32_0 : i32, i32
  }
  func.func @transform_6(%arg0: i32) -> (i32, i32) {
    %c0_i32 = arith.constant 0 : i32
    %c0_i32_0 = arith.constant 0 : i32
    %c0_i32_1 = arith.constant 0 : i32
    return %c0_i32, %c0_i32_0 : i32, i32
  }
  func.func @transform_7(%arg0: i32) -> (i32, i32) {
    %c0_i32 = arith.constant 0 : i32
    %c0_i32_0 = arith.constant 0 : i32
    %c0_i32_1 = arith.constant 0 : i32
    return %c0_i32, %c0_i32_0 : i32, i32
  }
  func.func @transform_8(%arg0: i32) -> (i32, i32) {
    %c0_i32 = arith.constant 0 : i32
    %c0_i32_0 = arith.constant 0 : i32
    %c0_i32_1 = arith.constant 0 : i32
    return %c0_i32, %c0_i32_0 : i32, i32
  }
  func.func @transform_9(%arg0: i32) -> (i32, i32) {
    %c0_i32 = arith.constant 0 : i32
    %c0_i32_0 = arith.constant 0 : i32
    %c0_i32_1 = arith.constant 0 : i32
    return %c0_i32, %c0_i32_0 : i32, i32
  }
  func.func @transform_10(%arg0: i32) -> (i32, i32) {
    %c0_i32 = arith.constant 0 : i32
    %c0_i32_0 = arith.constant 0 : i32
    %c0_i32_1 = arith.constant 0 : i32
    return %c0_i32, %c0_i32_0 : i32, i32
  }
  func.func @transform_11(%arg0: i32) -> (i32, i32) {
    %c0_i32 = arith.constant 0 : i32
    %c0_i32_0 = arith.constant 0 : i32
    return %arg0, %c0_i32 : i32, i32
  }
}

</mosaic_0001>

<bundles_post_ra>
// kernel: tpu_custom_call.1
= control target key start
LH: loop header
LB: loop body
LE: loop exit
PB: predicated region body
PF: predicated region fallthrough
CT: control target
= control target key end

     0   :  { %16 = vsyncpa [#allocation3], 0  ;;  %s9752_s0 = inlined_call_operand.hbm [shape: f32[16,3072], index: 0, kind: input, shape index: {}]   ;;  %s9753_s1 = inlined_call_operand.hbm [shape: bf16[3072,512], index: 1, kind: input, shape index: {}]   ;;  %s9754_s2 = inlined_call_operand.hbm [shape: f32[1,512], index: 2, kind: input, shape index: {}]   ;;  %s9755_s3 = inlined_call_operand.hbm [shape: bf16[512,256], index: 3, kind: input, shape index: {}]   ;;  %s9756_s4 = inlined_call_operand.hbm [shape: f32[1,256], index: 4, kind: input, shape index: {}]   ;;  %s9757_s5 = inlined_call_operand.hbm [shape: bf16[256,128], index: 5, kind: input, shape index: {}]   ;;  %s9758_s6 = inlined_call_operand.hbm [shape: f32[1,128], index: 6, kind: input, shape index: {}]   ;;  %s9759_s7 = inlined_call_operand.hbm [shape: bf16[128,128], index: 7, kind: input, shape index: {}]   ;;  %s9760_s8 = inlined_call_operand.hbm [shape: f32[1,128], index: 8, kind: input, shape index: {}]   ;;  %s9761_s9 = inlined_call_operand.hbm [shape: bf16[128,128], index: 9, kind: input, shape index: {}]   ;;  %s9762_s10 = inlined_call_operand.hbm [shape: f32[1,128], index: 10, kind: input, shape index: {}]   ;;  %s9763_s11 = inlined_call_operand.hbm [shape: f32[16,128], index: 11, kind: output, shape index: {}]  }
   0x1   :  { %17 = vsyncpa [#allocation6], 0 }
   0x2   :  { %18 = vsyncpa [#allocation9], 0 }
   0x3   :  { %19 = vsyncpa [#allocation12], 0 }
   0x4   :  { %20 = vsyncpa [#allocation15], 0 }
   0x5   :  { %21 = vsyncpa [#allocation18], 0 }
   0x6   :  { %22 = vsyncpa [#allocation4], 0  ;;  %s9468_s17 = smov [#allocation5]   ;;  %s9190_s21 = scalar_lea.hbm %s9753_s1, 98304 }
   0x7   :  { %s40_s18 = sshll.u32 %s9468_s17, 4  ;;  %p9191_p0 = scmp.ne.s32.totalorder %s9753_s1, %s9190_s21  ;;  %s41_s18 = int_to_ptr.vmem [resolvable:$true] %s40_s18 }
   0x8   :  { %p9194_p1 = scmp.lt.u32.totalorder %s9190_s21, %s9753_s1 }
   0xa   :  { %p9196_p2 = pnand %p9194_p1, %p9191_p0 }
   0xc   :  { %9199 = shalt.err (!%p9196_p2)
}
   0xd   :  { %s9200_s26 = scalar_lea.vmem %s41_s18, 98304  ;;  %p9205_p4 = scmp.lt.s32.totalorder %s41_s18, %s41_s18 }
   0xe   :  { %p9201_p3 = scmp.ne.s32.totalorder %s41_s18, %s9200_s26  ;;  %p9206_p5 = scmp.lt.s32.totalorder %s9200_s26, %s9200_s26 }
  0x10   :  { %p9207_p6 = por %p9206_p5, %p9205_p4 }
  0x12   :  { %p9208_p7 = pnand %p9207_p6, %p9201_p3 }
  0x14   :  { %9211 = shalt.err (!%p9208_p7)
}
  0x15   :  { %s9469_s27 = smov 256   ;;  %s9470_s28 = smov 16  }
  0x16   :  { %46 = dma.hbm_to_vmem [thread:$0]  %s9753_s1, 98304, %s41_s18, [#allocation6], %s9469_s27, %s9469_s27, %s9470_s28  }
  0x17   :  { %s9471_s12 = smov [#allocation8]   ;;  %s9212_s16 = scalar_lea.hbm %s9755_s3, 8192 }
  0x18   :  { %s62_s13 = sshll.u32 %s9471_s12, 4  ;;  %p9213_p8 = scmp.ne.s32.totalorder %s9755_s3, %s9212_s16  ;;  %s63_s13 = int_to_ptr.vmem [resolvable:$true] %s62_s13 }
  0x19   :  { %p9216_p9 = scmp.lt.u32.totalorder %s9212_s16, %s9755_s3 }
  0x1b   :  { %p9218_p10 = pnand %p9216_p9, %p9213_p8 }
  0x1d   :  { %9221 = shalt.err (!%p9218_p10)
}
  0x1e   :  { %s9222_s22 = scalar_lea.vmem %s63_s13, 8192  ;;  %p9227_p12 = scmp.lt.s32.totalorder %s63_s13, %s63_s13 }
  0x1f   :  { %p9223_p11 = scmp.ne.s32.totalorder %s63_s13, %s9222_s22  ;;  %p9228_p13 = scmp.lt.s32.totalorder %s9222_s22, %s9222_s22 }
  0x21   :  { %p9229_p0 = por %p9228_p13, %p9227_p12 }
  0x23   :  { %p9230_p1 = pnand %p9229_p0, %p9223_p11 }
  0x25   :  { %9233 = shalt.err (!%p9230_p1)
}
  0x26   :  { %s9472_s1 = smov 128   ;;  %s9473_s18 = smov 8  }
  0x27   :  { %68 = dma.hbm_to_vmem [thread:$0]  %s9755_s3, 8192, %s63_s13, [#allocation9], %s9472_s1, %s9472_s1, %s9473_s18  }
  0x28   :  { %s9474_s25 = smov [#allocation11]   ;;  %s9234_s29 = scalar_lea.hbm %s9757_s5, 2048 }
  0x29   :  { %s84_s26 = sshll.u32 %s9474_s25, 4  ;;  %p9235_p2 = scmp.ne.s32.totalorder %s9757_s5, %s9234_s29  ;;  %s85_s26 = int_to_ptr.vmem [resolvable:$true] %s84_s26 }
  0x2a   :  { %p9238_p3 = scmp.lt.u32.totalorder %s9234_s29, %s9757_s5 }
  0x2c   :  { %p9240_p4 = pnand %p9238_p3, %p9235_p2 }
  0x2e   :  { %9243 = shalt.err (!%p9240_p4)
}
  0x2f   :  { %s9244_s16 = scalar_lea.vmem %s85_s26, 2048  ;;  %p9249_p6 = scmp.lt.s32.totalorder %s85_s26, %s85_s26 }
  0x30   :  { %p9245_p5 = scmp.ne.s32.totalorder %s85_s26, %s9244_s16  ;;  %p9250_p7 = scmp.lt.s32.totalorder %s9244_s16, %s9244_s16 }
  0x32   :  { %p9251_p8 = por %p9250_p7, %p9249_p6 }
  0x34   :  { %p9252_p9 = pnand %p9251_p8, %p9245_p5 }
  0x36   :  { %9255 = shalt.err (!%p9252_p9)
}
  0x37   :  { %s9475_s3 = smov 64   ;;  %s9476_s13 = smov 4  }
  0x38   :  { %90 = dma.hbm_to_vmem [thread:$0]  %s9757_s5, 2048, %s85_s26, [#allocation12], %s9475_s3, %s9475_s3, %s9476_s13  }
  0x39   :  { %s9477_s20 = smov [#allocation14]   ;;  %s9478_s22 = smov [#allocation17]  }
  0x3a   :  { %s106_s21 = sshll.u32 %s9477_s20, 4  ;;  %s128_s23 = sshll.u32 %s9478_s22, 4  ;;  %s107_s21 = int_to_ptr.vmem [resolvable:$true] %s106_s21  ;;  %s129_s23 = int_to_ptr.vmem [resolvable:$true] %s128_s23 }
  0x3b   :  { %s9256_s27 = scalar_lea.hbm %s9759_s7, 1024 }
  0x3c   :  { %p9257_p10 = scmp.ne.s32.totalorder %s9759_s7, %s9256_s27  ;;  %p9260_p11 = scmp.lt.u32.totalorder %s9256_s27, %s9759_s7 }
  0x3e   :  { %p9262_p12 = pnand %p9260_p11, %p9257_p10 }
  0x40   :  { %9265 = shalt.err (!%p9262_p12)
}
  0x41   :  { %s9266_s5 = scalar_lea.vmem %s107_s21, 1024  ;;  %p9271_p0 = scmp.lt.s32.totalorder %s107_s21, %s107_s21 }
  0x42   :  { %p9267_p13 = scmp.ne.s32.totalorder %s107_s21, %s9266_s5  ;;  %p9272_p1 = scmp.lt.s32.totalorder %s9266_s5, %s9266_s5 }
  0x44   :  { %p9273_p2 = por %p9272_p1, %p9271_p0 }
  0x46   :  { %p9274_p3 = pnand %p9273_p2, %p9267_p13 }
  0x48   :  { %9277 = shalt.err (!%p9274_p3)
}
  0x49   :  { %112 = dma.hbm_to_vmem [thread:$0]  %s9759_s7, 1024, %s107_s21, [#allocation15], %s9475_s3, %s9475_s3, %s9476_s13  }
  0x4a   :  { %s9278_s17 = scalar_lea.hbm %s9761_s9, 1024 }
  0x4b   :  { %p9279_p4 = scmp.ne.s32.totalorder %s9761_s9, %s9278_s17  ;;  %p9282_p5 = scmp.lt.u32.totalorder %s9278_s17, %s9761_s9 }
  0x4d   :  { %p9284_p6 = pnand %p9282_p5, %p9279_p4 }
  0x4f   :  { %9287 = shalt.err (!%p9284_p6)
}
  0x50   :  { %s9288_s25 = scalar_lea.vmem %s129_s23, 1024  ;;  %p9293_p8 = scmp.lt.s32.totalorder %s129_s23, %s129_s23 }
  0x51   :  { %p9289_p7 = scmp.ne.s32.totalorder %s129_s23, %s9288_s25  ;;  %p9294_p9 = scmp.lt.s32.totalorder %s9288_s25, %s9288_s25 }
  0x53   :  { %p9295_p10 = por %p9294_p9, %p9293_p8 }
  0x55   :  { %p9296_p11 = pnand %p9295_p10, %p9289_p7 }
  0x57   :  { %9299 = shalt.err (!%p9296_p11)
}
  0x58   :  { %134 = dma.hbm_to_vmem [thread:$0]  %s9761_s9, 1024, %s129_s23, [#allocation18], %s9475_s3, %s9475_s3, %s9476_s13  }
  0x59   :  { %s9479_s27 = smov [#allocation2]   ;;  %s9300_s12 = scalar_lea.hbm %s9752_s0, 6144 }
  0x5a   :  { %s28_s28 = sshll.u32 %s9479_s27, 4  ;;  %p9301_p12 = scmp.ne.s32.totalorder %s9752_s0, %s9300_s12  ;;  %s29_s28 = int_to_ptr.vmem [resolvable:$true] %s28_s28 }
  0x5b   :  { %p9304_p13 = scmp.lt.u32.totalorder %s9300_s12, %s9752_s0 }
  0x5d   :  { %p9306_p0 = pnand %p9304_p13, %p9301_p12 }
  0x5f   :  { %9309 = shalt.err (!%p9306_p0)
}
  0x60   :  { %s9310_s16 = scalar_lea.vmem %s29_s28, 6144  ;;  %p9315_p2 = scmp.lt.s32.totalorder %s29_s28, %s29_s28 }
  0x61   :  { %p9311_p1 = scmp.ne.s32.totalorder %s29_s28, %s9310_s16  ;;  %p9316_p3 = scmp.lt.s32.totalorder %s9310_s16, %s9310_s16 }
  0x63   :  { %p9317_p4 = por %p9316_p3, %p9315_p2 }
  0x65   :  { %p9318_p5 = pnand %p9317_p4, %p9311_p1 }
  0x67   :  { %9321 = shalt.err (!%p9318_p5)
}
  0x68   :  { %s9480_s9 = smov 3072   ;;  %s9481_s3 = smov 192  }
  0x69   :  { %34 = dma.hbm_to_vmem [thread:$0]  %s9752_s0, 6144, %s29_s28, [#allocation3], %s9480_s9, %s9480_s9, %s9481_s3  }
  0x6a   :  { %s9482_s17 = smov [#allocation7]   ;;  %s9483_s20 = smov [#allocation10]  }
  0x6b   :  { %s53_s19 = sshll.u32 %s9482_s17, 4  ;;  %s75_s22 = sshll.u32 %s9483_s20, 4  ;;  %s54_s19 = int_to_ptr.vmem [resolvable:$true] %s53_s19  ;;  %s76_s22 = int_to_ptr.vmem [resolvable:$true] %s75_s22 }
  0x6c   :  { %s9322_s7 = scalar_lea.hbm %s9754_s2, 64 }
  0x6d   :  { %p9323_p6 = scmp.ne.s32.totalorder %s9754_s2, %s9322_s7  ;;  %p9326_p7 = scmp.lt.u32.totalorder %s9322_s7, %s9754_s2 }
  0x6f   :  { %p9328_p8 = pnand %p9326_p7, %p9323_p6 }
  0x71   :  { %9331 = shalt.err (!%p9328_p8)
}
  0x72   :  { %s9332_s0 = scalar_lea.vmem %s54_s19, 64  ;;  %p9337_p10 = scmp.lt.s32.totalorder %s54_s19, %s54_s19 }
  0x73   :  { %p9333_p9 = scmp.ne.s32.totalorder %s54_s19, %s9332_s0  ;;  %p9338_p11 = scmp.lt.s32.totalorder %s9332_s0, %s9332_s0 }
  0x75   :  { %p9339_p12 = por %p9338_p11, %p9337_p10 }
  0x77   :  { %p9340_p13 = pnand %p9339_p12, %p9333_p9 }
  0x79   :  { %9343 = shalt.err (!%p9340_p13)
}
  0x7a   :  { %56 = dma.hbm_to_vmem [thread:$0]  %s9754_s2, 64, %s54_s19, [#allocation6]  }
  0x7b   :  { %s9344_s14 = scalar_lea.hbm %s9756_s4, 32 }
  0x7c   :  { %p9345_p0 = scmp.ne.s32.totalorder %s9756_s4, %s9344_s14  ;;  %p9348_p1 = scmp.lt.u32.totalorder %s9344_s14, %s9756_s4 }
  0x7e   :  { %p9350_p2 = pnand %p9348_p1, %p9345_p0 }
  0x80   :  { %9353 = shalt.err (!%p9350_p2)
}
  0x81   :  { %s9354_s13 = scalar_lea.vmem %s76_s22, 32  ;;  %p9359_p4 = scmp.lt.s32.totalorder %s76_s22, %s76_s22 }
  0x82   :  { %p9355_p3 = scmp.ne.s32.totalorder %s76_s22, %s9354_s13  ;;  %p9360_p5 = scmp.lt.s32.totalorder %s9354_s13, %s9354_s13 }
  0x84   :  { %p9361_p6 = por %p9360_p5, %p9359_p4 }
  0x86   :  { %p9362_p7 = pnand %p9361_p6, %p9355_p3 }
  0x88   :  { %9365 = shalt.err (!%p9362_p7)
}
  0x89   :  { %78 = dma.hbm_to_vmem [thread:$0]  %s9756_s4, 32, %s76_s22, [#allocation9]  }
  0x8a   :  { %s9484_s17 = smov [#allocation13]   ;;  %s9485_s20 = smov [#allocation16]  }
  0x8b   :  { %s97_s19 = sshll.u32 %s9484_s17, 4  ;;  %s119_s24 = sshll.u32 %s9485_s20, 4  ;;  %s98_s19 = int_to_ptr.vmem [resolvable:$true] %s97_s19  ;;  %s120_s24 = int_to_ptr.vmem [resolvable:$true] %s119_s24 }
  0x8c   :  { %s9366_s21 = scalar_lea.hbm %s9758_s6, 16 }
  0x8d   :  { %p9367_p8 = scmp.ne.s32.totalorder %s9758_s6, %s9366_s21  ;;  %p9370_p9 = scmp.lt.u32.totalorder %s9366_s21, %s9758_s6 }
  0x8f   :  { %p9372_p10 = pnand %p9370_p9, %p9367_p8 }
  0x91   :  { %9375 = shalt.err (!%p9372_p10)
}
  0x92   :  { %s9376_s4 = scalar_lea.vmem %s98_s19, 16  ;;  %s9380_s22 = scalar_lea.vmem %s98_s19, 32 }
  0x93   :  { %p9377_p11 = scmp.ne.s32.totalorder %s98_s19, %s9376_s4  ;;  %p9381_p12 = scmp.lt.s32.totalorder %s98_s19, %s98_s19 }
  0x94   :  { %p9382_p13 = scmp.lt.s32.totalorder %s9380_s22, %s9376_s4 }
  0x96   :  { %p9383_p0 = por %p9382_p13, %p9381_p12 }
  0x98   :  { %p9384_p1 = pnand %p9383_p0, %p9377_p11 }
  0x9a   :  { %9387 = shalt.err (!%p9384_p1)
}
  0x9b   :  { %100 = dma.hbm_to_vmem [thread:$0]  %s9758_s6, 16, %s98_s19, [#allocation12]  }
  0x9c   :  { %s9388_s14 = scalar_lea.hbm %s9760_s8, 16 }
  0x9d   :  { %p9389_p2 = scmp.ne.s32.totalorder %s9760_s8, %s9388_s14  ;;  %p9392_p3 = scmp.lt.u32.totalorder %s9388_s14, %s9760_s8 }
  0x9f   :  { %p9394_p4 = pnand %p9392_p3, %p9389_p2 }
  0xa1   :  { %9397 = shalt.err (!%p9394_p4)
}
  0xa2   :  { %s9398_s13 = scalar_lea.vmem %s120_s24, 16  ;;  %s9402_s2 = scalar_lea.vmem %s120_s24, 32 }
  0xa3   :  { %p9399_p5 = scmp.ne.s32.totalorder %s120_s24, %s9398_s13  ;;  %p9403_p6 = scmp.lt.s32.totalorder %s120_s24, %s120_s24 }
  0xa4   :  { %p9404_p7 = scmp.lt.s32.totalorder %s9402_s2, %s9398_s13 }
  0xa6   :  { %p9405_p8 = por %p9404_p7, %p9403_p6 }
  0xa8   :  { %p9406_p9 = pnand %p9405_p8, %p9399_p5 }
  0xaa   :  { %9409 = shalt.err (!%p9406_p9)
}
  0xab   :  { %122 = dma.hbm_to_vmem [thread:$0]  %s9760_s8, 16, %s120_s24, [#allocation15]  }
  0xac   :  { %s9486_s17 = smov [#allocation19]   ;;  %s9410_s7 = scalar_lea.hbm %s9762_s10, 16 }
  0xad   :  { %s141_s19 = sshll.u32 %s9486_s17, 4  ;;  %p9411_p10 = scmp.ne.s32.totalorder %s9762_s10, %s9410_s7  ;;  %s142_s19 = int_to_ptr.vmem [resolvable:$true] %s141_s19 }
  0xae   :  { %p9414_p11 = scmp.lt.u32.totalorder %s9410_s7, %s9762_s10 }
  0xb0   :  { %p9416_p12 = pnand %p9414_p11, %p9411_p10 }
  0xb2   :  { %9419 = shalt.err (!%p9416_p12)
}
  0xb3   :  { %s9420_s0 = scalar_lea.vmem %s142_s19, 16  ;;  %s9424_s8 = scalar_lea.vmem %s142_s19, 32 }
  0xb4   :  { %p9421_p13 = scmp.ne.s32.totalorder %s142_s19, %s9420_s0  ;;  %p9425_p0 = scmp.lt.s32.totalorder %s142_s19, %s142_s19 }
  0xb5   :  { %p9426_p1 = scmp.lt.s32.totalorder %s9424_s8, %s9420_s0 }
  0xb7   :  { %p9427_p2 = por %p9426_p1, %p9425_p0 }
  0xb9   :  { %p9428_p3 = pnand %p9427_p2, %p9421_p13 }
  0xbb   :  { %9431 = shalt.err (!%p9428_p3)
}
  0xbc   :  { %144 = dma.hbm_to_vmem [thread:$0]  %s9762_s10, 16, %s142_s19, [#allocation18]  }
  0xbd   :  { %9454 = dma.done.wait [#allocation3], 6144  }
  0xbe   :  { %9455 = vsyncadd [#allocation3], 4294961152 }
  0xbf   :  { %9456 = dma.done.wait [#allocation6], 98368  }
  0xc0   :  { %9457 = vsyncadd [#allocation6], 4294868928 }
  0xc1   :  { %9458 = dma.done.wait [#allocation9], 8224  }
  0xc2   :  { %9459 = vsyncadd [#allocation9], 4294959072 }
  0xc3   :  { %9460 = dma.done.wait [#allocation12], 2064  }
  0xc4   :  { %9461 = vsyncadd [#allocation12], 4294965232 }
  0xc5   :  { %9462 = dma.done.wait [#allocation15], 1040  }
  0xc6   :  { %9463 = vsyncadd [#allocation15], 4294966256 }
  0xc7   :  { %9464 = dma.done.wait [#allocation18], 1040  }
  0xc8   :  { %9465 = vsyncadd [#allocation18], 4294966256  ;;  %v7910_v0 = vld [vmem:[#allocation5 + $0x4] ss:$16 sps:$4 sm:$0xff]   ;;  %v7912_v1 = vld [vmem:[#allocation5 + $0xc] ss:$16 sps:$4 sm:$0xff]  }
  0xc9   :  { %4881 = vmatprep.subr.bf16.mxu0 %v7910_v0  ;;  %v7914_v2 = vld [vmem:[#allocation5] ss:$16 sps:$4 sm:$0xff]   ;;  %v7915_v3 = vld [vmem:[#allocation5 + $0x8] ss:$16 sps:$4 sm:$0xff]   ;;  %5397 = vmatprep.subr.bf16.mxu1 %v7912_v1  ;;  %v7916_v4 = vld [vmem:[#allocation5 + $0x24] ss:$16 sps:$4 sm:$0xff]  }
  0xca   :  { %4882 = vmatpush1.bf16.msra.mxu0 %v7914_v2  ;;  %5398 = vmatpush1.bf16.msra.mxu1 %v7915_v3  ;;  %v7918_v5 = vld [vmem:[#allocation5 + $0x2c] ss:$16 sps:$4 sm:$0xff]   ;;  %v7920_v6 = vld [vmem:[#allocation5 + $0x20] ss:$16 sps:$4 sm:$0xff]   ;;  %v7921_v7 = vld [vmem:[#allocation5 + $0x28] ss:$16 sps:$4 sm:$0xff]  }
  0xcb   :  { %4883 = vmatprep.subr.bf16.mxu0 %v7916_v4  ;;  %5399 = vmatprep.subr.bf16.mxu1 %v7918_v5  ;;  %v7922_v8 = vld [vmem:[#allocation5 + $0x44] ss:$16 sps:$4 sm:$0xff]   ;;  %v7924_v9 = vld [vmem:[#allocation5 + $0x4c] ss:$16 sps:$4 sm:$0xff]   ;;  %v7926_v10 = vld [vmem:[#allocation5 + $0x40] ss:$16 sps:$4 sm:$0xff]  }
  0xcc   :  { %v7927_v11 = vld [vmem:[#allocation5 + $0x48] ss:$16 sps:$4 sm:$0xff]   ;;  %v7928_v12 = vld [vmem:[#allocation5 + $0x64] ss:$16 sps:$4 sm:$0xff]   ;;  %v7930_v13 = vld [vmem:[#allocation5 + $0x6c] ss:$16 sps:$4 sm:$0xff]  }
  0xcd   :  { %v7932_v14 = vld [vmem:[#allocation5 + $0x60] ss:$16 sps:$4 sm:$0xff]   ;;  %v7933_v15 = vld [vmem:[#allocation5 + $0x68] ss:$16 sps:$4 sm:$0xff]   ;;  %v7934_v16 = vld [vmem:[#allocation5 + $0x84] ss:$16 sps:$4 sm:$0xff]  }
  0xce   :  { %4884 = vmatpush1.bf16.msra.mxu0 %v7920_v6  ;;  %5400 = vmatpush1.bf16.msra.mxu1 %v7921_v7  ;;  %v7936_v17 = vld [vmem:[#allocation5 + $0x8c] ss:$16 sps:$4 sm:$0xff]   ;;  %v7938_v18 = vld [vmem:[#allocation5 + $0x80] ss:$16 sps:$4 sm:$0xff]   ;;  %v7939_v19 = vld [vmem:[#allocation5 + $0x88] ss:$16 sps:$4 sm:$0xff]  }
  0xcf   :  { %4885 = vmatprep.subr.bf16.mxu0 %v7922_v8  ;;  %5401 = vmatprep.subr.bf16.mxu1 %v7924_v9  ;;  %v7940_v20 = vld [vmem:[#allocation5 + $0xa4] ss:$16 sps:$4 sm:$0xff]   ;;  %v7942_v21 = vld [vmem:[#allocation5 + $0xac] ss:$16 sps:$4 sm:$0xff]   ;;  %v7944_v22 = vld [vmem:[#allocation5 + $0xa0] ss:$16 sps:$4 sm:$0xff]  }
  0xd0   :  { %v7945_v23 = vld [vmem:[#allocation5 + $0xa8] ss:$16 sps:$4 sm:$0xff]   ;;  %v7946_v24 = vld [vmem:[#allocation5 + $0xc4] ss:$16 sps:$4 sm:$0xff]   ;;  %v7948_v25 = vld [vmem:[#allocation5 + $0xcc] ss:$16 sps:$4 sm:$0xff]  }
  0xd1   :  { %v7950_v26 = vld [vmem:[#allocation5 + $0xc0] ss:$16 sps:$4 sm:$0xff]   ;;  %v7951_v27 = vld [vmem:[#allocation5 + $0xc8] ss:$16 sps:$4 sm:$0xff]   ;;  %v7952_v28 = vld [vmem:[#allocation5 + $0xe4] ss:$16 sps:$4 sm:$0xff]  }
  0xd2   :  { %4886 = vmatpush1.bf16.msra.mxu0 %v7926_v10  ;;  %5402 = vmatpush1.bf16.msra.mxu1 %v7927_v11  ;;  %v7954_v29 = vld [vmem:[#allocation5 + $0xec] ss:$16 sps:$4 sm:$0xff]   ;;  %v7956_v30 = vld [vmem:[#allocation5 + $0xe0] ss:$16 sps:$4 sm:$0xff]   ;;  %v7957_v31 = vld [vmem:[#allocation5 + $0xe8] ss:$16 sps:$4 sm:$0xff]  }
  0xd3   :  { %4887 = vmatprep.subr.bf16.mxu0 %v7928_v12  ;;  %5403 = vmatprep.subr.bf16.mxu1 %v7930_v13  ;;  %v7958_v32 = vld [vmem:[#allocation5 + $0x104] ss:$16 sps:$4 sm:$0xff]   ;;  %v7960_v33 = vld [vmem:[#allocation5 + $0x10c] ss:$16 sps:$4 sm:$0xff]   ;;  %v7962_v34 = vld [vmem:[#allocation5 + $0x100] ss:$16 sps:$4 sm:$0xff]  }
  0xd4   :  { %v7963_v35 = vld [vmem:[#allocation5 + $0x108] ss:$16 sps:$4 sm:$0xff]   ;;  %v7964_v36 = vld [vmem:[#allocation5 + $0x124] ss:$16 sps:$4 sm:$0xff]   ;;  %v7966_v37 = vld [vmem:[#allocation5 + $0x12c] ss:$16 sps:$4 sm:$0xff]  }
  0xd5   :  { %v7968_v38 = vld [vmem:[#allocation5 + $0x120] ss:$16 sps:$4 sm:$0xff]   ;;  %v7969_v39 = vld [vmem:[#allocation5 + $0x128] ss:$16 sps:$4 sm:$0xff]   ;;  %v7970_v40 = vld [vmem:[#allocation5 + $0x144] ss:$16 sps:$4 sm:$0xff]  }
  0xd6   :  { %4888 = vmatpush1.bf16.msra.mxu0 %v7932_v14  ;;  %5404 = vmatpush1.bf16.msra.mxu1 %v7933_v15  ;;  %v7972_v41 = vld [vmem:[#allocation5 + $0x14c] ss:$16 sps:$4 sm:$0xff]   ;;  %v7974_v42 = vld [vmem:[#allocation5 + $0x140] ss:$16 sps:$4 sm:$0xff]   ;;  %v7975_v43 = vld [vmem:[#allocation5 + $0x148] ss:$16 sps:$4 sm:$0xff]  }
  0xd7   :  { %4889 = vmatprep.subr.bf16.mxu0 %v7934_v16  ;;  %5405 = vmatprep.subr.bf16.mxu1 %v7936_v17  ;;  %v7976_v44 = vld [vmem:[#allocation5 + $0x164] ss:$16 sps:$4 sm:$0xff]   ;;  %v7978_v45 = vld [vmem:[#allocation5 + $0x16c] ss:$16 sps:$4 sm:$0xff]   ;;  %v7980_v48 = vld [vmem:[#allocation5 + $0x160] ss:$16 sps:$4 sm:$0xff]  }
  0xd8   :  { %v180_v46 = vld [vmem:[#allocation2 + $0x8] sm:$0xff]  ;;  %v7982_v51 = vld [vmem:[#allocation5 + $0x184] ss:$16 sps:$4 sm:$0xff]   ;;  %v7986_v53 = vld [vmem:[#allocation5 + $0x180] ss:$16 sps:$4 sm:$0xff]   ;;  %vm9488_vm0 = vmmov 0  }
  0xd9   :  { %v204_v47 = vld [vmem:[#allocation2 + $0xc8] sm:$0xff]  ;;  %v7988_v55 = vld [vmem:[#allocation5 + $0x1a4] ss:$16 sps:$4 sm:$0xff]   ;;  %v7992_v57 = vld [vmem:[#allocation5 + $0x1a0] ss:$16 sps:$4 sm:$0xff]   ;;  %s9489_s10 = smov [#allocation20]  }
  0xda   :  { %4890 = vmatpush1.bf16.msra.mxu0 %v7938_v18  ;;  %5406 = vmatpush1.bf16.msra.mxu1 %v7939_v19  ;;  %v7981_v49 = vld [vmem:[#allocation5 + $0x168] ss:$16 sps:$4 sm:$0xff]   ;;  %v228_v50 = vpack.c.bf16 %v204_v47, %v180_v46  ;;  %v7984_v52 = vld [vmem:[#allocation5 + $0x18c] ss:$16 sps:$4 sm:$0xff]   ;;  %v7994_v59 = vld [vmem:[#allocation5 + $0x1c4] ss:$16 sps:$4 sm:$0xff]  }
  0xdb   :  { %4891 = vmatprep.subr.bf16.mxu0 %v7940_v20  ;;  %5407 = vmatprep.subr.bf16.mxu1 %v7942_v21  ;;  %v7987_v54 = vld [vmem:[#allocation5 + $0x188] ss:$16 sps:$4 sm:$0xff]   ;;  %v7990_v56 = vld [vmem:[#allocation5 + $0x1ac] ss:$16 sps:$4 sm:$0xff]   ;;  %v7998_v61 = vld [vmem:[#allocation5 + $0x1c0] ss:$16 sps:$4 sm:$0xff]  }
  0xdc   :  { %4913 = vmatprep.mubr.bf16.mxu0 %v228_v50  ;;  %5429 = vmatprep.mubr.bf16.mxu1 %v228_v50  ;;  %v7993_v58 = vld [vmem:[#allocation5 + $0x1a8] ss:$16 sps:$4 sm:$0xff]   ;;  %v7996_v60 = vld [vmem:[#allocation5 + $0x1cc] ss:$16 sps:$4 sm:$0xff]   ;;  %v8000_v63 = vld [vmem:[#allocation5 + $0x1e4] ss:$16 sps:$4 sm:$0xff]  }
  0xdd   :  { %v7999_v62 = vld [vmem:[#allocation5 + $0x1c8] ss:$16 sps:$4 sm:$0xff]   ;;  %v8002_v0 = vld [vmem:[#allocation5 + $0x1ec] ss:$16 sps:$4 sm:$0xff]   ;;  %v8004_v1 = vld [vmem:[#allocation5 + $0x1e0] ss:$16 sps:$4 sm:$0xff]  }
  0xde   :  { %4892 = vmatpush1.bf16.msra.mxu0 %v7944_v22  ;;  %5408 = vmatpush1.bf16.msra.mxu1 %v7945_v23  ;;  %v8005_v2 = vld [vmem:[#allocation5 + $0x1e8] ss:$16 sps:$4 sm:$0xff]   ;;  %v8008_v3 = vld [vmem:[#allocation5 + $0x204] ss:$16 sps:$4 sm:$0xff]   ;;  %v8011_v6 = vld [vmem:[#allocation5 + $0x20c] ss:$16 sps:$4 sm:$0xff]  }
  0xdf   :  { %4893 = vmatprep.subr.bf16.mxu0 %v7946_v24  ;;  %5409 = vmatprep.subr.bf16.mxu1 %v7948_v25  ;;  %v179_v4 = vld [vmem:[#allocation2] sm:$0xff]  ;;  %v8009_v8 = vld [vmem:[#allocation5 + $0x208] ss:$16 sps:$4 sm:$0xff]   ;;  %v8017_v11 = vld [vmem:[#allocation5 + $0x22c] ss:$16 sps:$4 sm:$0xff]   ;;  %s6820_s22 = sshll.u32 %s9489_s10, 4  ;;  %s6821_s22 = int_to_ptr.vmem [resolvable:$true] %s6820_s22 }
  0xe0   :  { %v203_v5 = vld [vmem:[#allocation2 + $0xc0] sm:$0xff]  ;;  %v8015_v13 = vld [vmem:[#allocation5 + $0x228] ss:$16 sps:$4 sm:$0xff]   ;;  %v8023_v15 = vld [vmem:[#allocation5 + $0x24c] ss:$16 sps:$4 sm:$0xff]   ;;  %s9432_s28 = scalar_lea.vmem %s6821_s22, 256  ;;  %p9437_p5 = scmp.lt.s32.totalorder %s6821_s22, %s6821_s22 }
  0xe1   :  { %v8006_v7 = vld [vmem:[#allocation5 + $0x200] ss:$16 sps:$4 sm:$0xff]   ;;  %v227_v9 = vpack.c.bf16 %v203_v5, %v179_v4  ;;  %v8014_v10 = vld [vmem:[#allocation5 + $0x224] ss:$16 sps:$4 sm:$0xff]   ;;  %v8021_v17 = vld [vmem:[#allocation5 + $0x248] ss:$16 sps:$4 sm:$0xff]   ;;  %p9433_p4 = scmp.ne.s32.totalorder %s6821_s22, %s9432_s28  ;;  %p9438_p6 = scmp.lt.s32.totalorder %s9432_s28, %s9432_s28 }
  0xe2   :  { %4894 = vmatpush1.bf16.msra.mxu0 %v7950_v26  ;;  %5410 = vmatpush1.bf16.msra.mxu1 %v7951_v27  ;;  %v8012_v12 = vld [vmem:[#allocation5 + $0x220] ss:$16 sps:$4 sm:$0xff]   ;;  %v8020_v14 = vld [vmem:[#allocation5 + $0x244] ss:$16 sps:$4 sm:$0xff]   ;;  %v8029_v19 = vld [vmem:[#allocation5 + $0x26c] ss:$16 sps:$4 sm:$0xff]  }
  0xe3   :  { %4895 = vmatprep.subr.bf16.mxu0 %v7952_v28  ;;  %5411 = vmatprep.subr.bf16.mxu1 %v7954_v29  ;;  %v8018_v16 = vld [vmem:[#allocation5 + $0x240] ss:$16 sps:$4 sm:$0xff]   ;;  %v8026_v18 = vld [vmem:[#allocation5 + $0x264] ss:$16 sps:$4 sm:$0xff]   ;;  %v8027_v21 = vld [vmem:[#allocation5 + $0x268] ss:$16 sps:$4 sm:$0xff]   ;;  %p9439_p7 = por %p9438_p6, %p9437_p5 }
  0xe4   :  { %v8024_v20 = vld [vmem:[#allocation5 + $0x260] ss:$16 sps:$4 sm:$0xff]   ;;  %v8032_v22 = vld [vmem:[#allocation5 + $0x284] ss:$16 sps:$4 sm:$0xff]   ;;  %v8035_v23 = vld [vmem:[#allocation5 + $0x28c] ss:$16 sps:$4 sm:$0xff]  }
  0xe5   :  { %v8030_v24 = vld [vmem:[#allocation5 + $0x280] ss:$16 sps:$4 sm:$0xff]   ;;  %v8033_v25 = vld [vmem:[#allocation5 + $0x288] ss:$16 sps:$4 sm:$0xff]   ;;  %v8038_v26 = vld [vmem:[#allocation5 + $0x2a4] ss:$16 sps:$4 sm:$0xff]   ;;  %p9440_p8 = pnand %p9439_p7, %p9433_p4 }
  0xe6   :  { %4896 = vmatpush1.bf16.msra.mxu0 %v7956_v30  ;;  %5412 = vmatpush1.bf16.msra.mxu1 %v7957_v31  ;;  %v8041_v27 = vld [vmem:[#allocation5 + $0x2ac] ss:$16 sps:$4 sm:$0xff]   ;;  %v8036_v28 = vld [vmem:[#allocation5 + $0x2a0] ss:$16 sps:$4 sm:$0xff]   ;;  %v8039_v29 = vld [vmem:[#allocation5 + $0x2a8] ss:$16 sps:$4 sm:$0xff]  }
  0xe7   :  { %4897 = vmatprep.subr.bf16.mxu0 %v7958_v32  ;;  %5413 = vmatprep.subr.bf16.mxu1 %v7960_v33  ;;  %v8044_v30 = vld [vmem:[#allocation5 + $0x2c4] ss:$16 sps:$4 sm:$0xff]   ;;  %v8047_v31 = vld [vmem:[#allocation5 + $0x2cc] ss:$16 sps:$4 sm:$0xff]   ;;  %v8060_v47 = vld [vmem:[#allocation5 + $0x320] ss:$16 sps:$4 sm:$0xff]  }
  0xe8   :  { %v182_v32 = vld [vmem:[#allocation2 + $0x18] sm:$0xff]  ;;  %v8098_v5 = vld [vmem:[#allocation5 + $0x3e4] ss:$16 sps:$4 sm:$0xff]  }
  0xe9   :  { %v206_v33 = vld [vmem:[#allocation2 + $0xd8] sm:$0xff] }
  0xea   :  { %4898 = vmatpush1.bf16.msra.mxu0 %v7962_v34  ;;  %5414 = vmatpush1.bf16.msra.mxu1 %v7963_v35  ;;  %v8042_v34 = vld [vmem:[#allocation5 + $0x2c0] ss:$16 sps:$4 sm:$0xff]   ;;  %v8045_v35 = vld [vmem:[#allocation5 + $0x2c8] ss:$16 sps:$4 sm:$0xff]   ;;  %v8065_v46 = vld [vmem:[#allocation5 + $0x32c] ss:$16 sps:$4 sm:$0xff]  }
  0xeb   :  { %4899 = vmatprep.subr.bf16.mxu0 %v7964_v36  ;;  %5415 = vmatprep.subr.bf16.mxu1 %v7966_v37  ;;  %v230_v36 = vpack.c.bf16 %v206_v33, %v182_v32  ;;  %v8050_v37 = vld [vmem:[#allocation5 + $0x2e4] ss:$16 sps:$4 sm:$0xff]   ;;  %v8071_v50 = vld [vmem:[#allocation5 + $0x34c] ss:$16 sps:$4 sm:$0xff]   ;;  %v8093_v4 = vld [vmem:[#allocation5 + $0x3c8] ss:$16 sps:$4 sm:$0xff]  }
  0xec   :  { %v8131_v32 = vld [vmem:[#allocation5 + $0x48c] ss:$16 sps:$4 sm:$0xff]   ;;  %v8126_v33 = vld [vmem:[#allocation5 + $0x480] ss:$16 sps:$4 sm:$0xff]  }
  0xee   :  { %4900 = vmatpush1.bf16.msra.mxu0 %v7968_v38  ;;  %5416 = vmatpush1.bf16.msra.mxu1 %v7969_v39  ;;  %v8053_v38 = vld [vmem:[#allocation5 + $0x2ec] ss:$16 sps:$4 sm:$0xff]   ;;  %v8048_v39 = vld [vmem:[#allocation5 + $0x2e0] ss:$16 sps:$4 sm:$0xff]  }
  0xef   :  { %4901 = vmatprep.subr.bf16.mxu0 %v7970_v40  ;;  %5417 = vmatprep.subr.bf16.mxu1 %v7972_v41  ;;  %v8051_v40 = vld [vmem:[#allocation5 + $0x2e8] ss:$16 sps:$4 sm:$0xff]   ;;  %v8056_v41 = vld [vmem:[#allocation5 + $0x304] ss:$16 sps:$4 sm:$0xff]  }
  0xf2   :  { %4902 = vmatpush1.bf16.msra.mxu0 %v7974_v42  ;;  %5418 = vmatpush1.bf16.msra.mxu1 %v7975_v43  ;;  %v8059_v42 = vld [vmem:[#allocation5 + $0x30c] ss:$16 sps:$4 sm:$0xff]   ;;  %v8054_v43 = vld [vmem:[#allocation5 + $0x300] ss:$16 sps:$4 sm:$0xff]  }
  0xf3   :  { %4903 = vmatprep.subr.bf16.mxu0 %v7976_v44  ;;  %5419 = vmatprep.subr.bf16.mxu1 %v7978_v45  ;;  %v8057_v44 = vld [vmem:[#allocation5 + $0x308] ss:$16 sps:$4 sm:$0xff]   ;;  %v8062_v45 = vld [vmem:[#allocation5 + $0x324] ss:$16 sps:$4 sm:$0xff]  }
  0xf6   :  { %4904 = vmatpush1.bf16.msra.mxu0 %v7980_v48  ;;  %5420 = vmatpush1.bf16.msra.mxu1 %v7981_v49  ;;  %v8063_v48 = vld [vmem:[#allocation5 + $0x328] ss:$16 sps:$4 sm:$0xff]   ;;  %v8068_v49 = vld [vmem:[#allocation5 + $0x344] ss:$16 sps:$4 sm:$0xff]  }
  0xf7   :  { %4905 = vmatprep.subr.bf16.mxu0 %v7982_v51  ;;  %5421 = vmatprep.subr.bf16.mxu1 %v7984_v52  ;;  %v8066_v51 = vld [vmem:[#allocation5 + $0x340] ss:$16 sps:$4 sm:$0xff]   ;;  %v8069_v52 = vld [vmem:[#allocation5 + $0x348] ss:$16 sps:$4 sm:$0xff]  }
  0xfa   :  { %4906 = vmatpush1.bf16.msra.mxu0 %v7986_v53  ;;  %5422 = vmatpush1.bf16.msra.mxu1 %v7987_v54  ;;  %v8074_v53 = vld [vmem:[#allocation5 + $0x364] ss:$16 sps:$4 sm:$0xff]   ;;  %v8077_v54 = vld [vmem:[#allocation5 + $0x36c] ss:$16 sps:$4 sm:$0xff]  }
  0xfb   :  { %4907 = vmatprep.subr.bf16.mxu0 %v7988_v55  ;;  %5423 = vmatprep.subr.bf16.mxu1 %v7990_v56  ;;  %v8072_v55 = vld [vmem:[#allocation5 + $0x360] ss:$16 sps:$4 sm:$0xff]   ;;  %v8075_v56 = vld [vmem:[#allocation5 + $0x368] ss:$16 sps:$4 sm:$0xff]  }
  0xfe   :  { %4908 = vmatpush1.bf16.msra.mxu0 %v7992_v57  ;;  %5424 = vmatpush1.bf16.msra.mxu1 %v7993_v58  ;;  %v8080_v57 = vld [vmem:[#allocation5 + $0x384] ss:$16 sps:$4 sm:$0xff]   ;;  %v8083_v58 = vld [vmem:[#allocation5 + $0x38c] ss:$16 sps:$4 sm:$0xff]  }
  0xff   :  { %4909 = vmatprep.subr.bf16.mxu0 %v7994_v59  ;;  %5425 = vmatprep.subr.bf16.mxu1 %v7996_v60  ;;  %v8078_v59 = vld [vmem:[#allocation5 + $0x380] ss:$16 sps:$4 sm:$0xff]   ;;  %v8081_v60 = vld [vmem:[#allocation5 + $0x388] ss:$16 sps:$4 sm:$0xff]  }
 0x102   :  { %4910 = vmatpush1.bf16.msra.mxu0 %v7998_v61  ;;  %5426 = vmatpush1.bf16.msra.mxu1 %v7999_v62  ;;  %v8086_v61 = vld [vmem:[#allocation5 + $0x3a4] ss:$16 sps:$4 sm:$0xff]   ;;  %v8089_v62 = vld [vmem:[#allocation5 + $0x3ac] ss:$16 sps:$4 sm:$0xff]  }
 0x103   :  { %4911 = vmatprep.subr.bf16.mxu0 %v8000_v63  ;;  %5427 = vmatprep.subr.bf16.mxu1 %v8002_v0  ;;  %v8084_v63 = vld [vmem:[#allocation5 + $0x3a0] ss:$16 sps:$4 sm:$0xff]   ;;  %v8087_v0 = vld [vmem:[#allocation5 + $0x3a8] ss:$16 sps:$4 sm:$0xff]  }
 0x106   :  { %4912 = vmatpush1.bf16.msra.mxu0 %v8004_v1  ;;  %5428 = vmatpush1.bf16.msra.mxu1 %v8005_v2  ;;  %v8092_v1 = vld [vmem:[#allocation5 + $0x3c4] ss:$16 sps:$4 sm:$0xff]   ;;  %v8095_v2 = vld [vmem:[#allocation5 + $0x3cc] ss:$16 sps:$4 sm:$0xff]  }
 0x107   :  { %4924 = vmatprep.subr.bf16.mxu0 %v8008_v3  ;;  %5440 = vmatprep.subr.bf16.mxu1 %v8011_v6  ;;  %v8090_v3 = vld [vmem:[#allocation5 + $0x3c0] ss:$16 sps:$4 sm:$0xff]   ;;  %v8101_v6 = vld [vmem:[#allocation5 + $0x3ec] ss:$16 sps:$4 sm:$0xff]  }
 0x109   :  { %4914 = vmatmul.mubr.bf16.vlgmr.msra.gmra.mrb[0].mxu0 %v227_v9  ;;  %5430 = vmatmul.mubr.bf16.vlgmr.msra.gmra.mrb[0].mxu1 %v227_v9  ;;  %v8104_v9 = vld [vmem:[#allocation5 + $0x404] ss:$16 sps:$4 sm:$0xff]  }
 0x10a   :  { %4925 = vmatpush1.bf16.msra.mxu0 %v8006_v7  ;;  %5441 = vmatpush1.bf16.msra.mxu1 %v8009_v8  ;;  %v8096_v7 = vld [vmem:[#allocation5 + $0x3e0] ss:$16 sps:$4 sm:$0xff]   ;;  %v8099_v8 = vld [vmem:[#allocation5 + $0x3e8] ss:$16 sps:$4 sm:$0xff]  }
 0x10b   :  { %4926 = vmatprep.subr.bf16.mxu0 %v8014_v10  ;;  %5442 = vmatprep.subr.bf16.mxu1 %v8017_v11  ;;  %v181_v10 = vld [vmem:[#allocation2 + $0x10] sm:$0xff] }
 0x10c   :  { %4956 = vmatprep.mubr.bf16.mxu0 %v230_v36  ;;  %5472 = vmatprep.mubr.bf16.mxu1 %v230_v36  ;;  %v205_v11 = vld [vmem:[#allocation2 + $0xd0] sm:$0xff]  ;;  %v8137_v36 = vld [vmem:[#allocation5 + $0x4ac] ss:$16 sps:$4 sm:$0xff]  }
 0x10e   :  { %4927 = vmatpush1.bf16.msra.mxu0 %v8012_v12  ;;  %5443 = vmatpush1.bf16.msra.mxu1 %v8015_v13  ;;  %v8107_v12 = vld [vmem:[#allocation5 + $0x40c] ss:$16 sps:$4 sm:$0xff]   ;;  %v8102_v13 = vld [vmem:[#allocation5 + $0x400] ss:$16 sps:$4 sm:$0xff]  }
 0x10f   :  { %4928 = vmatprep.subr.bf16.mxu0 %v8020_v14  ;;  %5444 = vmatprep.subr.bf16.mxu1 %v8023_v15  ;;  %v8105_v14 = vld [vmem:[#allocation5 + $0x408] ss:$16 sps:$4 sm:$0xff]   ;;  %v229_v15 = vpack.c.bf16 %v205_v11, %v181_v10  ;;  %v8194_v11 = vld [vmem:[#allocation5 + $0x5e4] ss:$16 sps:$4 sm:$0xff]  }
 0x110   :  { %v8189_v10 = vld [vmem:[#allocation5 + $0x5c8] ss:$16 sps:$4 sm:$0xff]  }
 0x112   :  { %4929 = vmatpush1.bf16.msra.mxu0 %v8018_v16  ;;  %5445 = vmatpush1.bf16.msra.mxu1 %v8021_v17  ;;  %v8110_v16 = vld [vmem:[#allocation5 + $0x424] ss:$16 sps:$4 sm:$0xff]   ;;  %v8113_v17 = vld [vmem:[#allocation5 + $0x42c] ss:$16 sps:$4 sm:$0xff]  }
 0x113   :  { %4930 = vmatprep.subr.bf16.mxu0 %v8026_v18  ;;  %5446 = vmatprep.subr.bf16.mxu1 %v8029_v19  ;;  %v184_v18 = vld [vmem:[#allocation2 + $0x28] sm:$0xff] }
 0x114   :  { %v208_v19 = vld [vmem:[#allocation2 + $0xe8] sm:$0xff] }
 0x116   :  { %4931 = vmatpush1.bf16.msra.mxu0 %v8024_v20  ;;  %5447 = vmatpush1.bf16.msra.mxu1 %v8027_v21  ;;  %v8108_v20 = vld [vmem:[#allocation5 + $0x420] ss:$16 sps:$4 sm:$0xff]   ;;  %v8111_v21 = vld [vmem:[#allocation5 + $0x428] ss:$16 sps:$4 sm:$0xff]  }
 0x117   :  { %4932 = vmatprep.subr.bf16.mxu0 %v8032_v22  ;;  %5448 = vmatprep.subr.bf16.mxu1 %v8035_v23  ;;  %v232_v22 = vpack.c.bf16 %v208_v19, %v184_v18  ;;  %v8116_v23 = vld [vmem:[#allocation5 + $0x444] ss:$16 sps:$4 sm:$0xff]   ;;  %v8203_v18 = vld [vmem:[#allocation5 + $0x60c] ss:$16 sps:$4 sm:$0xff]   ;;  %v8198_v19 = vld [vmem:[#allocation5 + $0x600] ss:$16 sps:$4 sm:$0xff]  }
 0x11a   :  { %4933 = vmatpush1.bf16.msra.mxu0 %v8030_v24  ;;  %5449 = vmatpush1.bf16.msra.mxu1 %v8033_v25  ;;  %v8119_v24 = vld [vmem:[#allocation5 + $0x44c] ss:$16 sps:$4 sm:$0xff]   ;;  %v8114_v25 = vld [vmem:[#allocation5 + $0x440] ss:$16 sps:$4 sm:$0xff]  }
 0x11b   :  { %4934 = vmatprep.subr.bf16.mxu0 %v8038_v26  ;;  %5450 = vmatprep.subr.bf16.mxu1 %v8041_v27  ;;  %v8117_v26 = vld [vmem:[#allocation5 + $0x448] ss:$16 sps:$4 sm:$0xff]   ;;  %v8122_v27 = vld [vmem:[#allocation5 + $0x464] ss:$16 sps:$4 sm:$0xff]  }
 0x11e   :  { %4935 = vmatpush1.bf16.msra.mxu0 %v8036_v28  ;;  %5451 = vmatpush1.bf16.msra.mxu1 %v8039_v29  ;;  %v8125_v28 = vld [vmem:[#allocation5 + $0x46c] ss:$16 sps:$4 sm:$0xff]   ;;  %v8120_v29 = vld [vmem:[#allocation5 + $0x460] ss:$16 sps:$4 sm:$0xff]  }
 0x11f   :  { %4936 = vmatprep.subr.bf16.mxu0 %v8044_v30  ;;  %5452 = vmatprep.subr.bf16.mxu1 %v8047_v31  ;;  %v8123_v30 = vld [vmem:[#allocation5 + $0x468] ss:$16 sps:$4 sm:$0xff]   ;;  %v8128_v31 = vld [vmem:[#allocation5 + $0x484] ss:$16 sps:$4 sm:$0xff]  }
 0x122   :  { %4937 = vmatpush1.bf16.msra.mxu0 %v8042_v34  ;;  %5453 = vmatpush1.bf16.msra.mxu1 %v8045_v35  ;;  %v8129_v34 = vld [vmem:[#allocation5 + $0x488] ss:$16 sps:$4 sm:$0xff]   ;;  %v8134_v35 = vld [vmem:[#allocation5 + $0x4a4] ss:$16 sps:$4 sm:$0xff]  }
 0x123   :  { %4938 = vmatprep.subr.bf16.mxu0 %v8050_v37  ;;  %5454 = vmatprep.subr.bf16.mxu1 %v8053_v38  ;;  %v8132_v37 = vld [vmem:[#allocation5 + $0x4a0] ss:$16 sps:$4 sm:$0xff]   ;;  %v8135_v38 = vld [vmem:[#allocation5 + $0x4a8] ss:$16 sps:$4 sm:$0xff]  }
 0x126   :  { %4939 = vmatpush1.bf16.msra.mxu0 %v8048_v39  ;;  %5455 = vmatpush1.bf16.msra.mxu1 %v8051_v40  ;;  %v8140_v39 = vld [vmem:[#allocation5 + $0x4c4] ss:$16 sps:$4 sm:$0xff]   ;;  %v8143_v40 = vld [vmem:[#allocation5 + $0x4cc] ss:$16 sps:$4 sm:$0xff]  }
 0x127   :  { %4940 = vmatprep.subr.bf16.mxu0 %v8056_v41  ;;  %5456 = vmatprep.subr.bf16.mxu1 %v8059_v42  ;;  %v8138_v41 = vld [vmem:[#allocation5 + $0x4c0] ss:$16 sps:$4 sm:$0xff]   ;;  %v8141_v42 = vld [vmem:[#allocation5 + $0x4c8] ss:$16 sps:$4 sm:$0xff]  }
 0x12a   :  { %4941 = vmatpush1.bf16.msra.mxu0 %v8054_v43  ;;  %5457 = vmatpush1.bf16.msra.mxu1 %v8057_v44  ;;  %v8146_v43 = vld [vmem:[#allocation5 + $0x4e4] ss:$16 sps:$4 sm:$0xff]   ;;  %v8149_v44 = vld [vmem:[#allocation5 + $0x4ec] ss:$16 sps:$4 sm:$0xff]  }
 0x12b   :  { %4942 = vmatprep.subr.bf16.mxu0 %v8062_v45  ;;  %5458 = vmatprep.subr.bf16.mxu1 %v8065_v46  ;;  %v8144_v45 = vld [vmem:[#allocation5 + $0x4e0] ss:$16 sps:$4 sm:$0xff]   ;;  %v8147_v46 = vld [vmem:[#allocation5 + $0x4e8] ss:$16 sps:$4 sm:$0xff]  }
 0x12e   :  { %4943 = vmatpush1.bf16.msra.mxu0 %v8060_v47  ;;  %5459 = vmatpush1.bf16.msra.mxu1 %v8063_v48  ;;  %v8152_v47 = vld [vmem:[#allocation5 + $0x504] ss:$16 sps:$4 sm:$0xff]   ;;  %v8155_v48 = vld [vmem:[#allocation5 + $0x50c] ss:$16 sps:$4 sm:$0xff]  }
 0x12f   :  { %4944 = vmatprep.subr.bf16.mxu0 %v8068_v49  ;;  %5460 = vmatprep.subr.bf16.mxu1 %v8071_v50  ;;  %v8150_v49 = vld [vmem:[#allocation5 + $0x500] ss:$16 sps:$4 sm:$0xff]   ;;  %v8153_v50 = vld [vmem:[#allocation5 + $0x508] ss:$16 sps:$4 sm:$0xff]  }
 0x132   :  { %4945 = vmatpush1.bf16.msra.mxu0 %v8066_v51  ;;  %5461 = vmatpush1.bf16.msra.mxu1 %v8069_v52  ;;  %v8158_v51 = vld [vmem:[#allocation5 + $0x524] ss:$16 sps:$4 sm:$0xff]   ;;  %v8161_v52 = vld [vmem:[#allocation5 + $0x52c] ss:$16 sps:$4 sm:$0xff]  }
 0x133   :  { %4946 = vmatprep.subr.bf16.mxu0 %v8074_v53  ;;  %5462 = vmatprep.subr.bf16.mxu1 %v8077_v54  ;;  %v8156_v53 = vld [vmem:[#allocation5 + $0x520] ss:$16 sps:$4 sm:$0xff]   ;;  %v8159_v54 = vld [vmem:[#allocation5 + $0x528] ss:$16 sps:$4 sm:$0xff]  }
 0x136   :  { %4947 = vmatpush1.bf16.msra.mxu0 %v8072_v55  ;;  %5463 = vmatpush1.bf16.msra.mxu1 %v8075_v56  ;;  %v8164_v55 = vld [vmem:[#allocation5 + $0x544] ss:$16 sps:$4 sm:$0xff]   ;;  %v8167_v56 = vld [vmem:[#allocation5 + $0x54c] ss:$16 sps:$4 sm:$0xff]  }
 0x137   :  { %4948 = vmatprep.subr.bf16.mxu0 %v8080_v57  ;;  %5464 = vmatprep.subr.bf16.mxu1 %v8083_v58  ;;  %v8162_v57 = vld [vmem:[#allocation5 + $0x540] ss:$16 sps:$4 sm:$0xff]   ;;  %v8165_v58 = vld [vmem:[#allocation5 + $0x548] ss:$16 sps:$4 sm:$0xff]  }
 0x13a   :  { %4949 = vmatpush1.bf16.msra.mxu0 %v8078_v59  ;;  %5465 = vmatpush1.bf16.msra.mxu1 %v8081_v60  ;;  %v8170_v59 = vld [vmem:[#allocation5 + $0x564] ss:$16 sps:$4 sm:$0xff]   ;;  %v8173_v60 = vld [vmem:[#allocation5 + $0x56c] ss:$16 sps:$4 sm:$0xff]  }
 0x13b   :  { %4950 = vmatprep.subr.bf16.mxu0 %v8086_v61  ;;  %5466 = vmatprep.subr.bf16.mxu1 %v8089_v62  ;;  %v8168_v61 = vld [vmem:[#allocation5 + $0x560] ss:$16 sps:$4 sm:$0xff]   ;;  %v8171_v62 = vld [vmem:[#allocation5 + $0x568] ss:$16 sps:$4 sm:$0xff]  }
 0x13e   :  { %4951 = vmatpush1.bf16.msra.mxu0 %v8084_v63  ;;  %5467 = vmatpush1.bf16.msra.mxu1 %v8087_v0  ;;  %v8176_v63 = vld [vmem:[#allocation5 + $0x584] ss:$16 sps:$4 sm:$0xff]   ;;  %v8179_v0 = vld [vmem:[#allocation5 + $0x58c] ss:$16 sps:$4 sm:$0xff]  }
 0x13f   :  { %4952 = vmatprep.subr.bf16.mxu0 %v8092_v1  ;;  %5468 = vmatprep.subr.bf16.mxu1 %v8095_v2  ;;  %v8174_v1 = vld [vmem:[#allocation5 + $0x580] ss:$16 sps:$4 sm:$0xff]   ;;  %v8177_v2 = vld [vmem:[#allocation5 + $0x588] ss:$16 sps:$4 sm:$0xff]  }
 0x142   :  { %4953 = vmatpush1.bf16.msra.mxu0 %v8090_v3  ;;  %5469 = vmatpush1.bf16.msra.mxu1 %v8093_v4  ;;  %v8182_v3 = vld [vmem:[#allocation5 + $0x5a4] ss:$16 sps:$4 sm:$0xff]   ;;  %v8185_v4 = vld [vmem:[#allocation5 + $0x5ac] ss:$16 sps:$4 sm:$0xff]  }
 0x143   :  { %4954 = vmatprep.subr.bf16.mxu0 %v8098_v5  ;;  %5470 = vmatprep.subr.bf16.mxu1 %v8101_v6  ;;  %v8180_v5 = vld [vmem:[#allocation5 + $0x5a0] ss:$16 sps:$4 sm:$0xff]   ;;  %v8183_v6 = vld [vmem:[#allocation5 + $0x5a8] ss:$16 sps:$4 sm:$0xff]  }
 0x146   :  { %4955 = vmatpush1.bf16.msra.mxu0 %v8096_v7  ;;  %5471 = vmatpush1.bf16.msra.mxu1 %v8099_v8  ;;  %v8188_v7 = vld [vmem:[#allocation5 + $0x5c4] ss:$16 sps:$4 sm:$0xff]   ;;  %v8191_v8 = vld [vmem:[#allocation5 + $0x5cc] ss:$16 sps:$4 sm:$0xff]  }
 0x147   :  { %4967 = vmatprep.subr.bf16.mxu0 %v8104_v9  ;;  %5483 = vmatprep.subr.bf16.mxu1 %v8107_v12  ;;  %v8186_v9 = vld [vmem:[#allocation5 + $0x5c0] ss:$16 sps:$4 sm:$0xff]   ;;  %v8197_v12 = vld [vmem:[#allocation5 + $0x5ec] ss:$16 sps:$4 sm:$0xff]  }
 0x149   :  { %4957 = vmatmul.mubr.bf16.vlgmr.msra.gmra.mrb[0].mxu0 %v229_v15  ;;  %5473 = vmatmul.mubr.bf16.vlgmr.msra.gmra.mrb[0].mxu1 %v229_v15  ;;  %v8200_v15 = vld [vmem:[#allocation5 + $0x604] ss:$16 sps:$4 sm:$0xff]  }
 0x14a   :  { %4968 = vmatpush1.bf16.msra.mxu0 %v8102_v13  ;;  %5484 = vmatpush1.bf16.msra.mxu1 %v8105_v14  ;;  %v8192_v13 = vld [vmem:[#allocation5 + $0x5e0] ss:$16 sps:$4 sm:$0xff]   ;;  %v8195_v14 = vld [vmem:[#allocation5 + $0x5e8] ss:$16 sps:$4 sm:$0xff]  }
 0x14b   :  { %4969 = vmatprep.subr.bf16.mxu0 %v8110_v16  ;;  %5485 = vmatprep.subr.bf16.mxu1 %v8113_v17  ;;  %v183_v16 = vld [vmem:[#allocation2 + $0x20] sm:$0xff] }
 0x14c   :  { %4999 = vmatprep.mubr.bf16.mxu0 %v232_v22  ;;  %5515 = vmatprep.mubr.bf16.mxu1 %v232_v22  ;;  %v207_v17 = vld [vmem:[#allocation2 + $0xe0] sm:$0xff]  ;;  %v186_v22 = vld [vmem:[#allocation2 + $0x38] sm:$0xff] }
 0x14e   :  { %4970 = vmatpush1.bf16.msra.mxu0 %v8108_v20  ;;  %5486 = vmatpush1.bf16.msra.mxu1 %v8111_v21  ;;  %v8201_v20 = vld [vmem:[#allocation5 + $0x608] ss:$16 sps:$4 sm:$0xff]   ;;  %v231_v21 = vpack.c.bf16 %v207_v17, %v183_v16  ;;  %v8290_v17 = vld [vmem:[#allocation5 + $0x7e4] ss:$16 sps:$4 sm:$0xff]  }
 0x14f   :  { %4971 = vmatprep.subr.bf16.mxu0 %v8116_v23  ;;  %5487 = vmatprep.subr.bf16.mxu1 %v8119_v24  ;;  %v210_v23 = vld [vmem:[#allocation2 + $0xf8] sm:$0xff]  ;;  %v8206_v24 = vld [vmem:[#allocation5 + $0x624] ss:$16 sps:$4 sm:$0xff]  }
 0x150   :  { %v8285_v16 = vld [vmem:[#allocation5 + $0x7c8] ss:$16 sps:$4 sm:$0xff]  }
 0x152   :  { %4972 = vmatpush1.bf16.msra.mxu0 %v8114_v25  ;;  %5488 = vmatpush1.bf16.msra.mxu1 %v8117_v26  ;;  %v8209_v25 = vld [vmem:[#allocation5 + $0x62c] ss:$16 sps:$4 sm:$0xff]   ;;  %v234_v26 = vpack.c.bf16 %v210_v23, %v186_v22  ;;  %v185_v22 = vld [vmem:[#allocation2 + $0x30] sm:$0xff] }
 0x153   :  { %4973 = vmatprep.subr.bf16.mxu0 %v8122_v27  ;;  %5489 = vmatprep.subr.bf16.mxu1 %v8125_v28  ;;  %v8204_v27 = vld [vmem:[#allocation5 + $0x620] ss:$16 sps:$4 sm:$0xff]   ;;  %v8207_v28 = vld [vmem:[#allocation5 + $0x628] ss:$16 sps:$4 sm:$0xff]  }
 0x154   :  { %v209_v23 = vld [vmem:[#allocation2 + $0xf0] sm:$0xff] }
 0x156   :  { %4974 = vmatpush1.bf16.msra.mxu0 %v8120_v29  ;;  %5490 = vmatpush1.bf16.msra.mxu1 %v8123_v30  ;;  %v8212_v29 = vld [vmem:[#allocation5 + $0x644] ss:$16 sps:$4 sm:$0xff]   ;;  %v8215_v30 = vld [vmem:[#allocation5 + $0x64c] ss:$16 sps:$4 sm:$0xff]  }
 0x157   :  { %4975 = vmatprep.subr.bf16.mxu0 %v8128_v31  ;;  %5491 = vmatprep.subr.bf16.mxu1 %v8131_v32  ;;  %v8210_v31 = vld [vmem:[#allocation5 + $0x640] ss:$16 sps:$4 sm:$0xff]   ;;  %v8213_v32 = vld [vmem:[#allocation5 + $0x648] ss:$16 sps:$4 sm:$0xff]  }
 0x15a   :  { %4976 = vmatpush1.bf16.msra.mxu0 %v8126_v33  ;;  %5492 = vmatpush1.bf16.msra.mxu1 %v8129_v34  ;;  %v8218_v33 = vld [vmem:[#allocation5 + $0x664] ss:$16 sps:$4 sm:$0xff]   ;;  %v8221_v34 = vld [vmem:[#allocation5 + $0x66c] ss:$16 sps:$4 sm:$0xff]  }
 0x15b   :  { %4977 = vmatprep.subr.bf16.mxu0 %v8134_v35  ;;  %5493 = vmatprep.subr.bf16.mxu1 %v8137_v36  ;;  %v8216_v35 = vld [vmem:[#allocation5 + $0x660] ss:$16 sps:$4 sm:$0xff]   ;;  %v8219_v36 = vld [vmem:[#allocation5 + $0x668] ss:$16 sps:$4 sm:$0xff]  }
 0x15e   :  { %4978 = vmatpush1.bf16.msra.mxu0 %v8132_v37  ;;  %5494 = vmatpush1.bf16.msra.mxu1 %v8135_v38  ;;  %v8224_v37 = vld [vmem:[#allocation5 + $0x684] ss:$16 sps:$4 sm:$0xff]   ;;  %v8227_v38 = vld [vmem:[#allocation5 + $0x68c] ss:$16 sps:$4 sm:$0xff]  }
 0x15f   :  { %4979 = vmatprep.subr.bf16.mxu0 %v8140_v39  ;;  %5495 = vmatprep.subr.bf16.mxu1 %v8143_v40  ;;  %v8222_v39 = vld [vmem:[#allocation5 + $0x680] ss:$16 sps:$4 sm:$0xff]   ;;  %v8225_v40 = vld [vmem:[#allocation5 + $0x688] ss:$16 sps:$4 sm:$0xff]  }
 0x162   :  { %4980 = vmatpush1.bf16.msra.mxu0 %v8138_v41  ;;  %5496 = vmatpush1.bf16.msra.mxu1 %v8141_v42  ;;  %v8230_v41 = vld [vmem:[#allocation5 + $0x6a4] ss:$16 sps:$4 sm:$0xff]   ;;  %v8233_v42 = vld [vmem:[#allocation5 + $0x6ac] ss:$16 sps:$4 sm:$0xff]  }
 0x163   :  { %4981 = vmatprep.subr.bf16.mxu0 %v8146_v43  ;;  %5497 = vmatprep.subr.bf16.mxu1 %v8149_v44  ;;  %v8228_v43 = vld [vmem:[#allocation5 + $0x6a0] ss:$16 sps:$4 sm:$0xff]   ;;  %v8231_v44 = vld [vmem:[#allocation5 + $0x6a8] ss:$16 sps:$4 sm:$0xff]  }
 0x166   :  { %4982 = vmatpush1.bf16.msra.mxu0 %v8144_v45  ;;  %5498 = vmatpush1.bf16.msra.mxu1 %v8147_v46  ;;  %v8236_v45 = vld [vmem:[#allocation5 + $0x6c4] ss:$16 sps:$4 sm:$0xff]   ;;  %v8239_v46 = vld [vmem:[#allocation5 + $0x6cc] ss:$16 sps:$4 sm:$0xff]  }
 0x167   :  { %4983 = vmatprep.subr.bf16.mxu0 %v8152_v47  ;;  %5499 = vmatprep.subr.bf16.mxu1 %v8155_v48  ;;  %v8234_v47 = vld [vmem:[#allocation5 + $0x6c0] ss:$16 sps:$4 sm:$0xff]   ;;  %v8237_v48 = vld [vmem:[#allocation5 + $0x6c8] ss:$16 sps:$4 sm:$0xff]  }
 0x16a   :  { %4984 = vmatpush1.bf16.msra.mxu0 %v8150_v49  ;;  %5500 = vmatpush1.bf16.msra.mxu1 %v8153_v50  ;;  %v8242_v49 = vld [vmem:[#allocation5 + $0x6e4] ss:$16 sps:$4 sm:$0xff]   ;;  %v8245_v50 = vld [vmem:[#allocation5 + $0x6ec] ss:$16 sps:$4 sm:$0xff]  }
 0x16b   :  { %4985 = vmatprep.subr.bf16.mxu0 %v8158_v51  ;;  %5501 = vmatprep.subr.bf16.mxu1 %v8161_v52  ;;  %v8240_v51 = vld [vmem:[#allocation5 + $0x6e0] ss:$16 sps:$4 sm:$0xff]   ;;  %v8243_v52 = vld [vmem:[#allocation5 + $0x6e8] ss:$16 sps:$4 sm:$0xff]  }
 0x16e   :  { %4986 = vmatpush1.bf16.msra.mxu0 %v8156_v53  ;;  %5502 = vmatpush1.bf16.msra.mxu1 %v8159_v54  ;;  %v8248_v53 = vld [vmem:[#allocation5 + $0x704] ss:$16 sps:$4 sm:$0xff]   ;;  %v8251_v54 = vld [vmem:[#allocation5 + $0x70c] ss:$16 sps:$4 sm:$0xff]  }
 0x16f   :  { %4987 = vmatprep.subr.bf16.mxu0 %v8164_v55  ;;  %5503 = vmatprep.subr.bf16.mxu1 %v8167_v56  ;;  %v8246_v55 = vld [vmem:[#allocation5 + $0x700] ss:$16 sps:$4 sm:$0xff]   ;;  %v8249_v56 = vld [vmem:[#allocation5 + $0x708] ss:$16 sps:$4 sm:$0xff]  }
 0x172   :  { %4988 = vmatpush1.bf16.msra.mxu0 %v8162_v57  ;;  %5504 = vmatpush1.bf16.msra.mxu1 %v8165_v58  ;;  %v8254_v57 = vld [vmem:[#allocation5 + $0x724] ss:$16 sps:$4 sm:$0xff]   ;;  %v8257_v58 = vld [vmem:[#allocation5 + $0x72c] ss:$16 sps:$4 sm:$0xff]  }
 0x173   :  { %4989 = vmatprep.subr.bf16.mxu0 %v8170_v59  ;;  %5505 = vmatprep.subr.bf16.mxu1 %v8173_v60  ;;  %v8252_v59 = vld [vmem:[#allocation5 + $0x720] ss:$16 sps:$4 sm:$0xff]   ;;  %v8255_v60 = vld [vmem:[#allocation5 + $0x728] ss:$16 sps:$4 sm:$0xff]  }
 0x176   :  { %4990 = vmatpush1.bf16.msra.mxu0 %v8168_v61  ;;  %5506 = vmatpush1.bf16.msra.mxu1 %v8171_v62  ;;  %v8260_v61 = vld [vmem:[#allocation5 + $0x744] ss:$16 sps:$4 sm:$0xff]   ;;  %v8263_v62 = vld [vmem:[#allocation5 + $0x74c] ss:$16 sps:$4 sm:$0xff]  }
 0x177   :  { %4991 = vmatprep.subr.bf16.mxu0 %v8176_v63  ;;  %5507 = vmatprep.subr.bf16.mxu1 %v8179_v0  ;;  %v8258_v63 = vld [vmem:[#allocation5 + $0x740] ss:$16 sps:$4 sm:$0xff]   ;;  %v8261_v0 = vld [vmem:[#allocation5 + $0x748] ss:$16 sps:$4 sm:$0xff]  }
 0x17a   :  { %4992 = vmatpush1.bf16.msra.mxu0 %v8174_v1  ;;  %5508 = vmatpush1.bf16.msra.mxu1 %v8177_v2  ;;  %v8266_v1 = vld [vmem:[#allocation5 + $0x764] ss:$16 sps:$4 sm:$0xff]   ;;  %v8269_v2 = vld [vmem:[#allocation5 + $0x76c] ss:$16 sps:$4 sm:$0xff]  }
 0x17b   :  { %4993 = vmatprep.subr.bf16.mxu0 %v8182_v3  ;;  %5509 = vmatprep.subr.bf16.mxu1 %v8185_v4  ;;  %v8264_v3 = vld [vmem:[#allocation5 + $0x760] ss:$16 sps:$4 sm:$0xff]   ;;  %v8267_v4 = vld [vmem:[#allocation5 + $0x768] ss:$16 sps:$4 sm:$0xff]  }
 0x17e   :  { %4994 = vmatpush1.bf16.msra.mxu0 %v8180_v5  ;;  %5510 = vmatpush1.bf16.msra.mxu1 %v8183_v6  ;;  %v8272_v5 = vld [vmem:[#allocation5 + $0x784] ss:$16 sps:$4 sm:$0xff]   ;;  %v8275_v6 = vld [vmem:[#allocation5 + $0x78c] ss:$16 sps:$4 sm:$0xff]  }
 0x17f   :  { %4995 = vmatprep.subr.bf16.mxu0 %v8188_v7  ;;  %5511 = vmatprep.subr.bf16.mxu1 %v8191_v8  ;;  %v8270_v7 = vld [vmem:[#allocation5 + $0x780] ss:$16 sps:$4 sm:$0xff]   ;;  %v8273_v8 = vld [vmem:[#allocation5 + $0x788] ss:$16 sps:$4 sm:$0xff]  }
 0x182   :  { %4996 = vmatpush1.bf16.msra.mxu0 %v8186_v9  ;;  %5512 = vmatpush1.bf16.msra.mxu1 %v8189_v10  ;;  %v8278_v9 = vld [vmem:[#allocation5 + $0x7a4] ss:$16 sps:$4 sm:$0xff]   ;;  %v8281_v10 = vld [vmem:[#allocation5 + $0x7ac] ss:$16 sps:$4 sm:$0xff]  }
 0x183   :  { %4997 = vmatprep.subr.bf16.mxu0 %v8194_v11  ;;  %5513 = vmatprep.subr.bf16.mxu1 %v8197_v12  ;;  %v8276_v11 = vld [vmem:[#allocation5 + $0x7a0] ss:$16 sps:$4 sm:$0xff]   ;;  %v8279_v12 = vld [vmem:[#allocation5 + $0x7a8] ss:$16 sps:$4 sm:$0xff]  }
 0x186   :  { %4998 = vmatpush1.bf16.msra.mxu0 %v8192_v13  ;;  %5514 = vmatpush1.bf16.msra.mxu1 %v8195_v14  ;;  %v8284_v13 = vld [vmem:[#allocation5 + $0x7c4] ss:$16 sps:$4 sm:$0xff]   ;;  %v8287_v14 = vld [vmem:[#allocation5 + $0x7cc] ss:$16 sps:$4 sm:$0xff]  }
 0x187   :  { %5010 = vmatprep.subr.bf16.mxu0 %v8200_v15  ;;  %5526 = vmatprep.subr.bf16.mxu1 %v8203_v18  ;;  %v8282_v15 = vld [vmem:[#allocation5 + $0x7c0] ss:$16 sps:$4 sm:$0xff]   ;;  %v8293_v18 = vld [vmem:[#allocation5 + $0x7ec] ss:$16 sps:$4 sm:$0xff]  }
 0x189   :  { %5000 = vmatmul.mubr.bf16.vlgmr.msra.gmra.mrb[0].mxu0 %v231_v21  ;;  %5516 = vmatmul.mubr.bf16.vlgmr.msra.gmra.mrb[0].mxu1 %v231_v21  ;;  %v8296_v21 = vld [vmem:[#allocation5 + $0x804] ss:$16 sps:$4 sm:$0xff]  }
 0x18a   :  { %5011 = vmatpush1.bf16.msra.mxu0 %v8198_v19  ;;  %5527 = vmatpush1.bf16.msra.mxu1 %v8201_v20  ;;  %v8288_v19 = vld [vmem:[#allocation5 + $0x7e0] ss:$16 sps:$4 sm:$0xff]   ;;  %v8291_v20 = vld [vmem:[#allocation5 + $0x7e8] ss:$16 sps:$4 sm:$0xff]  }
 0x18b   :  { %5012 = vmatprep.subr.bf16.mxu0 %v8206_v24  ;;  %5528 = vmatprep.subr.bf16.mxu1 %v8209_v25  ;;  %v8299_v24 = vld [vmem:[#allocation5 + $0x80c] ss:$16 sps:$4 sm:$0xff]   ;;  %v8294_v25 = vld [vmem:[#allocation5 + $0x800] ss:$16 sps:$4 sm:$0xff]  }
 0x18c   :  { %5042 = vmatprep.mubr.bf16.mxu0 %v234_v26  ;;  %5558 = vmatprep.mubr.bf16.mxu1 %v234_v26  ;;  %v8297_v26 = vld [vmem:[#allocation5 + $0x808] ss:$16 sps:$4 sm:$0xff]  }
 0x18e   :  { %5013 = vmatpush1.bf16.msra.mxu0 %v8204_v27  ;;  %5529 = vmatpush1.bf16.msra.mxu1 %v8207_v28  ;;  %v233_v27 = vpack.c.bf16 %v209_v23, %v185_v22  ;;  %v188_v28 = vld [vmem:[#allocation2 + $0x48] sm:$0xff]  ;;  %v8386_v23 = vld [vmem:[#allocation5 + $0x9e4] ss:$16 sps:$4 sm:$0xff]  }
 0x18f   :  { %5014 = vmatprep.subr.bf16.mxu0 %v8212_v29  ;;  %5530 = vmatprep.subr.bf16.mxu1 %v8215_v30  ;;  %v212_v29 = vld [vmem:[#allocation2 + $0x108] sm:$0xff]  ;;  %v8302_v30 = vld [vmem:[#allocation5 + $0x824] ss:$16 sps:$4 sm:$0xff]  }
 0x190   :  { %v8381_v22 = vld [vmem:[#allocation5 + $0x9c8] ss:$16 sps:$4 sm:$0xff]  }
 0x192   :  { %5015 = vmatpush1.bf16.msra.mxu0 %v8210_v31  ;;  %5531 = vmatpush1.bf16.msra.mxu1 %v8213_v32  ;;  %v8305_v31 = vld [vmem:[#allocation5 + $0x82c] ss:$16 sps:$4 sm:$0xff]   ;;  %v236_v32 = vpack.c.bf16 %v212_v29, %v188_v28  ;;  %v187_v29 = vld [vmem:[#allocation2 + $0x40] sm:$0xff] }
 0x193   :  { %5016 = vmatprep.subr.bf16.mxu0 %v8218_v33  ;;  %5532 = vmatprep.subr.bf16.mxu1 %v8221_v34  ;;  %v8300_v33 = vld [vmem:[#allocation5 + $0x820] ss:$16 sps:$4 sm:$0xff]   ;;  %v8303_v34 = vld [vmem:[#allocation5 + $0x828] ss:$16 sps:$4 sm:$0xff]   ;;  %v8395_v28 = vld [vmem:[#allocation5 + $0xa0c] ss:$16 sps:$4 sm:$0xff]  }
 0x196   :  { %5017 = vmatpush1.bf16.msra.mxu0 %v8216_v35  ;;  %5533 = vmatpush1.bf16.msra.mxu1 %v8219_v36  ;;  %v8308_v35 = vld [vmem:[#allocation5 + $0x844] ss:$16 sps:$4 sm:$0xff]   ;;  %v8311_v36 = vld [vmem:[#allocation5 + $0x84c] ss:$16 sps:$4 sm:$0xff]  }
 0x197   :  { %5018 = vmatprep.subr.bf16.mxu0 %v8224_v37  ;;  %5534 = vmatprep.subr.bf16.mxu1 %v8227_v38  ;;  %v8306_v37 = vld [vmem:[#allocation5 + $0x840] ss:$16 sps:$4 sm:$0xff]   ;;  %v8309_v38 = vld [vmem:[#allocation5 + $0x848] ss:$16 sps:$4 sm:$0xff]  }
 0x19a   :  { %5019 = vmatpush1.bf16.msra.mxu0 %v8222_v39  ;;  %5535 = vmatpush1.bf16.msra.mxu1 %v8225_v40  ;;  %v8314_v39 = vld [vmem:[#allocation5 + $0x864] ss:$16 sps:$4 sm:$0xff]   ;;  %v8317_v40 = vld [vmem:[#allocation5 + $0x86c] ss:$16 sps:$4 sm:$0xff]  }
 0x19b   :  { %5020 = vmatprep.subr.bf16.mxu0 %v8230_v41  ;;  %5536 = vmatprep.subr.bf16.mxu1 %v8233_v42  ;;  %v8312_v41 = vld [vmem:[#allocation5 + $0x860] ss:$16 sps:$4 sm:$0xff]   ;;  %v8315_v42 = vld [vmem:[#allocation5 + $0x868] ss:$16 sps:$4 sm:$0xff]  }
 0x19e   :  { %5021 = vmatpush1.bf16.msra.mxu0 %v8228_v43  ;;  %5537 = vmatpush1.bf16.msra.mxu1 %v8231_v44  ;;  %v8320_v43 = vld [vmem:[#allocation5 + $0x884] ss:$16 sps:$4 sm:$0xff]   ;;  %v8323_v44 = vld [vmem:[#allocation5 + $0x88c] ss:$16 sps:$4 sm:$0xff]  }
 0x19f   :  { %5022 = vmatprep.subr.bf16.mxu0 %v8236_v45  ;;  %5538 = vmatprep.subr.bf16.mxu1 %v8239_v46  ;;  %v8318_v45 = vld [vmem:[#allocation5 + $0x880] ss:$16 sps:$4 sm:$0xff]   ;;  %v8321_v46 = vld [vmem:[#allocation5 + $0x888] ss:$16 sps:$4 sm:$0xff]  }
 0x1a2   :  { %5023 = vmatpush1.bf16.msra.mxu0 %v8234_v47  ;;  %5539 = vmatpush1.bf16.msra.mxu1 %v8237_v48  ;;  %v8326_v47 = vld [vmem:[#allocation5 + $0x8a4] ss:$16 sps:$4 sm:$0xff]   ;;  %v8329_v48 = vld [vmem:[#allocation5 + $0x8ac] ss:$16 sps:$4 sm:$0xff]  }
 0x1a3   :  { %5024 = vmatprep.subr.bf16.mxu0 %v8242_v49  ;;  %5540 = vmatprep.subr.bf16.mxu1 %v8245_v50  ;;  %v8324_v49 = vld [vmem:[#allocation5 + $0x8a0] ss:$16 sps:$4 sm:$0xff]   ;;  %v8327_v50 = vld [vmem:[#allocation5 + $0x8a8] ss:$16 sps:$4 sm:$0xff]  }
 0x1a6   :  { %5025 = vmatpush1.bf16.msra.mxu0 %v8240_v51  ;;  %5541 = vmatpush1.bf16.msra.mxu1 %v8243_v52  ;;  %v8332_v51 = vld [vmem:[#allocation5 + $0x8c4] ss:$16 sps:$4 sm:$0xff]   ;;  %v8335_v52 = vld [vmem:[#allocation5 + $0x8cc] ss:$16 sps:$4 sm:$0xff]  }
 0x1a7   :  { %5026 = vmatprep.subr.bf16.mxu0 %v8248_v53  ;;  %5542 = vmatprep.subr.bf16.mxu1 %v8251_v54  ;;  %v8330_v53 = vld [vmem:[#allocation5 + $0x8c0] ss:$16 sps:$4 sm:$0xff]   ;;  %v8333_v54 = vld [vmem:[#allocation5 + $0x8c8] ss:$16 sps:$4 sm:$0xff]  }
 0x1aa   :  { %5027 = vmatpush1.bf16.msra.mxu0 %v8246_v55  ;;  %5543 = vmatpush1.bf16.msra.mxu1 %v8249_v56  ;;  %v8338_v55 = vld [vmem:[#allocation5 + $0x8e4] ss:$16 sps:$4 sm:$0xff]   ;;  %v8341_v56 = vld [vmem:[#allocation5 + $0x8ec] ss:$16 sps:$4 sm:$0xff]  }
 0x1ab   :  { %5028 = vmatprep.subr.bf16.mxu0 %v8254_v57  ;;  %5544 = vmatprep.subr.bf16.mxu1 %v8257_v58  ;;  %v8336_v57 = vld [vmem:[#allocation5 + $0x8e0] ss:$16 sps:$4 sm:$0xff]   ;;  %v8339_v58 = vld [vmem:[#allocation5 + $0x8e8] ss:$16 sps:$4 sm:$0xff]  }
 0x1ae   :  { %5029 = vmatpush1.bf16.msra.mxu0 %v8252_v59  ;;  %5545 = vmatpush1.bf16.msra.mxu1 %v8255_v60  ;;  %v8344_v59 = vld [vmem:[#allocation5 + $0x904] ss:$16 sps:$4 sm:$0xff]   ;;  %v8347_v60 = vld [vmem:[#allocation5 + $0x90c] ss:$16 sps:$4 sm:$0xff]  }
 0x1af   :  { %5030 = vmatprep.subr.bf16.mxu0 %v8260_v61  ;;  %5546 = vmatprep.subr.bf16.mxu1 %v8263_v62  ;;  %v8342_v61 = vld [vmem:[#allocation5 + $0x900] ss:$16 sps:$4 sm:$0xff]   ;;  %v8345_v62 = vld [vmem:[#allocation5 + $0x908] ss:$16 sps:$4 sm:$0xff]  }
 0x1b2   :  { %5031 = vmatpush1.bf16.msra.mxu0 %v8258_v63  ;;  %5547 = vmatpush1.bf16.msra.mxu1 %v8261_v0  ;;  %v8350_v63 = vld [vmem:[#allocation5 + $0x924] ss:$16 sps:$4 sm:$0xff]   ;;  %v8353_v0 = vld [vmem:[#allocation5 + $0x92c] ss:$16 sps:$4 sm:$0xff]  }
 0x1b3   :  { %5032 = vmatprep.subr.bf16.mxu0 %v8266_v1  ;;  %5548 = vmatprep.subr.bf16.mxu1 %v8269_v2  ;;  %v8348_v1 = vld [vmem:[#allocation5 + $0x920] ss:$16 sps:$4 sm:$0xff]   ;;  %v8351_v2 = vld [vmem:[#allocation5 + $0x928] ss:$16 sps:$4 sm:$0xff]  }
 0x1b6   :  { %5033 = vmatpush1.bf16.msra.mxu0 %v8264_v3  ;;  %5549 = vmatpush1.bf16.msra.mxu1 %v8267_v4  ;;  %v8356_v3 = vld [vmem:[#allocation5 + $0x944] ss:$16 sps:$4 sm:$0xff]   ;;  %v8359_v4 = vld [vmem:[#allocation5 + $0x94c] ss:$16 sps:$4 sm:$0xff]  }
 0x1b7   :  { %5034 = vmatprep.subr.bf16.mxu0 %v8272_v5  ;;  %5550 = vmatprep.subr.bf16.mxu1 %v8275_v6  ;;  %v8354_v5 = vld [vmem:[#allocation5 + $0x940] ss:$16 sps:$4 sm:$0xff]   ;;  %v8357_v6 = vld [vmem:[#allocation5 + $0x948] ss:$16 sps:$4 sm:$0xff]  }
 0x1ba   :  { %5035 = vmatpush1.bf16.msra.mxu0 %v8270_v7  ;;  %5551 = vmatpush1.bf16.msra.mxu1 %v8273_v8  ;;  %v8362_v7 = vld [vmem:[#allocation5 + $0x964] ss:$16 sps:$4 sm:$0xff]   ;;  %v8365_v8 = vld [vmem:[#allocation5 + $0x96c] ss:$16 sps:$4 sm:$0xff]  }
 0x1bb   :  { %5036 = vmatprep.subr.bf16.mxu0 %v8278_v9  ;;  %5552 = vmatprep.subr.bf16.mxu1 %v8281_v10  ;;  %v8360_v9 = vld [vmem:[#allocation5 + $0x960] ss:$16 sps:$4 sm:$0xff]   ;;  %v8363_v10 = vld [vmem:[#allocation5 + $0x968] ss:$16 sps:$4 sm:$0xff]  }
 0x1be   :  { %5037 = vmatpush1.bf16.msra.mxu0 %v8276_v11  ;;  %5553 = vmatpush1.bf16.msra.mxu1 %v8279_v12  ;;  %v8368_v11 = vld [vmem:[#allocation5 + $0x984] ss:$16 sps:$4 sm:$0xff]   ;;  %v8371_v12 = vld [vmem:[#allocation5 + $0x98c] ss:$16 sps:$4 sm:$0xff]  }
 0x1bf   :  { %5038 = vmatprep.subr.bf16.mxu0 %v8284_v13  ;;  %5554 = vmatprep.subr.bf16.mxu1 %v8287_v14  ;;  %v8366_v13 = vld [vmem:[#allocation5 + $0x980] ss:$16 sps:$4 sm:$0xff]   ;;  %v8369_v14 = vld [vmem:[#allocation5 + $0x988] ss:$16 sps:$4 sm:$0xff]  }
 0x1c2   :  { %5039 = vmatpush1.bf16.msra.mxu0 %v8282_v15  ;;  %5555 = vmatpush1.bf16.msra.mxu1 %v8285_v16  ;;  %v8374_v15 = vld [vmem:[#allocation5 + $0x9a4] ss:$16 sps:$4 sm:$0xff]   ;;  %v8377_v16 = vld [vmem:[#allocation5 + $0x9ac] ss:$16 sps:$4 sm:$0xff]  }
 0x1c3   :  { %5040 = vmatprep.subr.bf16.mxu0 %v8290_v17  ;;  %5556 = vmatprep.subr.bf16.mxu1 %v8293_v18  ;;  %v8372_v17 = vld [vmem:[#allocation5 + $0x9a0] ss:$16 sps:$4 sm:$0xff]   ;;  %v8375_v18 = vld [vmem:[#allocation5 + $0x9a8] ss:$16 sps:$4 sm:$0xff]  }
 0x1c6   :  { %5041 = vmatpush1.bf16.msra.mxu0 %v8288_v19  ;;  %5557 = vmatpush1.bf16.msra.mxu1 %v8291_v20  ;;  %v8380_v19 = vld [vmem:[#allocation5 + $0x9c4] ss:$16 sps:$4 sm:$0xff]   ;;  %v8383_v20 = vld [vmem:[#allocation5 + $0x9cc] ss:$16 sps:$4 sm:$0xff]  }
 0x1c7   :  { %5053 = vmatprep.subr.bf16.mxu0 %v8296_v21  ;;  %5569 = vmatprep.subr.bf16.mxu1 %v8299_v24  ;;  %v8378_v21 = vld [vmem:[#allocation5 + $0x9c0] ss:$16 sps:$4 sm:$0xff]   ;;  %v8389_v24 = vld [vmem:[#allocation5 + $0x9ec] ss:$16 sps:$4 sm:$0xff]  }
 0x1c9   :  { %5043 = vmatmul.mubr.bf16.vlgmr.msra.gmra.mrb[0].mxu0 %v233_v27  ;;  %5559 = vmatmul.mubr.bf16.vlgmr.msra.gmra.mrb[0].mxu1 %v233_v27  ;;  %v8392_v27 = vld [vmem:[#allocation5 + $0xa04] ss:$16 sps:$4 sm:$0xff]  }
 0x1ca   :  { %5054 = vmatpush1.bf16.msra.mxu0 %v8294_v25  ;;  %5570 = vmatpush1.bf16.msra.mxu1 %v8297_v26  ;;  %v8384_v25 = vld [vmem:[#allocation5 + $0x9e0] ss:$16 sps:$4 sm:$0xff]   ;;  %v8387_v26 = vld [vmem:[#allocation5 + $0x9e8] ss:$16 sps:$4 sm:$0xff]  }
 0x1cb   :  { %5055 = vmatprep.subr.bf16.mxu0 %v8302_v30  ;;  %5571 = vmatprep.subr.bf16.mxu1 %v8305_v31  ;;  %v211_v30 = vld [vmem:[#allocation2 + $0x100] sm:$0xff]  ;;  %v190_v31 = vld [vmem:[#allocation2 + $0x58] sm:$0xff] }
 0x1cc   :  { %5085 = vmatprep.mubr.bf16.mxu0 %v236_v32  ;;  %5601 = vmatprep.mubr.bf16.mxu1 %v236_v32  ;;  %v214_v32 = vld [vmem:[#allocation2 + $0x118] sm:$0xff] }
 0x1ce   :  { %5056 = vmatpush1.bf16.msra.mxu0 %v8300_v33  ;;  %5572 = vmatpush1.bf16.msra.mxu1 %v8303_v34  ;;  %v235_v33 = vpack.c.bf16 %v211_v30, %v187_v29  ;;  %v8390_v34 = vld [vmem:[#allocation5 + $0xa00] ss:$16 sps:$4 sm:$0xff]   ;;  %v8482_v29 = vld [vmem:[#allocation5 + $0xbe4] ss:$16 sps:$4 sm:$0xff]   ;;  %v8485_v30 = vld [vmem:[#allocation5 + $0xbec] ss:$16 sps:$4 sm:$0xff]  }
 0x1cf   :  { %5057 = vmatprep.subr.bf16.mxu0 %v8308_v35  ;;  %5573 = vmatprep.subr.bf16.mxu1 %v8311_v36  ;;  %v8393_v35 = vld [vmem:[#allocation5 + $0xa08] ss:$16 sps:$4 sm:$0xff]   ;;  %v8398_v36 = vld [vmem:[#allocation5 + $0xa24] ss:$16 sps:$4 sm:$0xff]  }
 0x1d2   :  { %5058 = vmatpush1.bf16.msra.mxu0 %v8306_v37  ;;  %5574 = vmatpush1.bf16.msra.mxu1 %v8309_v38  ;;  %v8401_v37 = vld [vmem:[#allocation5 + $0xa2c] ss:$16 sps:$4 sm:$0xff]   ;;  %v238_v38 = vpack.c.bf16 %v214_v32, %v190_v31  ;;  %v8480_v31 = vld [vmem:[#allocation5 + $0xbe0] ss:$16 sps:$4 sm:$0xff]   ;;  %v8483_v32 = vld [vmem:[#allocation5 + $0xbe8] ss:$16 sps:$4 sm:$0xff]  }
 0x1d3   :  { %5059 = vmatprep.subr.bf16.mxu0 %v8314_v39  ;;  %5575 = vmatprep.subr.bf16.mxu1 %v8317_v40  ;;  %v8396_v39 = vld [vmem:[#allocation5 + $0xa20] ss:$16 sps:$4 sm:$0xff]   ;;  %v8399_v40 = vld [vmem:[#allocation5 + $0xa28] ss:$16 sps:$4 sm:$0xff]  }
 0x1d6   :  { %5060 = vmatpush1.bf16.msra.mxu0 %v8312_v41  ;;  %5576 = vmatpush1.bf16.msra.mxu1 %v8315_v42  ;;  %v8404_v41 = vld [vmem:[#allocation5 + $0xa44] ss:$16 sps:$4 sm:$0xff]   ;;  %v8407_v42 = vld [vmem:[#allocation5 + $0xa4c] ss:$16 sps:$4 sm:$0xff]  }
 0x1d7   :  { %5061 = vmatprep.subr.bf16.mxu0 %v8320_v43  ;;  %5577 = vmatprep.subr.bf16.mxu1 %v8323_v44  ;;  %v8402_v43 = vld [vmem:[#allocation5 + $0xa40] ss:$16 sps:$4 sm:$0xff]   ;;  %v8405_v44 = vld [vmem:[#allocation5 + $0xa48] ss:$16 sps:$4 sm:$0xff]  }
 0x1da   :  { %5062 = vmatpush1.bf16.msra.mxu0 %v8318_v45  ;;  %5578 = vmatpush1.bf16.msra.mxu1 %v8321_v46  ;;  %v8410_v45 = vld [vmem:[#allocation5 + $0xa64] ss:$16 sps:$4 sm:$0xff]   ;;  %v8413_v46 = vld [vmem:[#allocation5 + $0xa6c] ss:$16 sps:$4 sm:$0xff]  }
 0x1db   :  { %5063 = vmatprep.subr.bf16.mxu0 %v8326_v47  ;;  %5579 = vmatprep.subr.bf16.mxu1 %v8329_v48  ;;  %v8408_v47 = vld [vmem:[#allocation5 + $0xa60] ss:$16 sps:$4 sm:$0xff]   ;;  %v8411_v48 = vld [vmem:[#allocation5 + $0xa68] ss:$16 sps:$4 sm:$0xff]  }
 0x1de   :  { %5064 = vmatpush1.bf16.msra.mxu0 %v8324_v49  ;;  %5580 = vmatpush1.bf16.msra.mxu1 %v8327_v50  ;;  %v8416_v49 = vld [vmem:[#allocation5 + $0xa84] ss:$16 sps:$4 sm:$0xff]   ;;  %v8419_v50 = vld [vmem:[#allocation5 + $0xa8c] ss:$16 sps:$4 sm:$0xff]  }
 0x1df   :  { %5065 = vmatprep.subr.bf16.mxu0 %v8332_v51  ;;  %5581 = vmatprep.subr.bf16.mxu1 %v8335_v52  ;;  %v8414_v51 = vld [vmem:[#allocation5 + $0xa80] ss:$16 sps:$4 sm:$0xff]   ;;  %v8417_v52 = vld [vmem:[#allocation5 + $0xa88] ss:$16 sps:$4 sm:$0xff]  }
 0x1e2   :  { %5066 = vmatpush1.bf16.msra.mxu0 %v8330_v53  ;;  %5582 = vmatpush1.bf16.msra.mxu1 %v8333_v54  ;;  %v8422_v53 = vld [vmem:[#allocation5 + $0xaa4] ss:$16 sps:$4 sm:$0xff]   ;;  %v8425_v54 = vld [vmem:[#allocation5 + $0xaac] ss:$16 sps:$4 sm:$0xff]  }
 0x1e3   :  { %5067 = vmatprep.subr.bf16.mxu0 %v8338_v55  ;;  %5583 = vmatprep.subr.bf16.mxu1 %v8341_v56  ;;  %v8420_v55 = vld [vmem:[#allocation5 + $0xaa0] ss:$16 sps:$4 sm:$0xff]   ;;  %v8423_v56 = vld [vmem:[#allocation5 + $0xaa8] ss:$16 sps:$4 sm:$0xff]  }
 0x1e6   :  { %5068 = vmatpush1.bf16.msra.mxu0 %v8336_v57  ;;  %5584 = vmatpush1.bf16.msra.mxu1 %v8339_v58  ;;  %v8428_v57 = vld [vmem:[#allocation5 + $0xac4] ss:$16 sps:$4 sm:$0xff]   ;;  %v8431_v58 = vld [vmem:[#allocation5 + $0xacc] ss:$16 sps:$4 sm:$0xff]  }
 0x1e7   :  { %5069 = vmatprep.subr.bf16.mxu0 %v8344_v59  ;;  %5585 = vmatprep.subr.bf16.mxu1 %v8347_v60  ;;  %v8426_v59 = vld [vmem:[#allocation5 + $0xac0] ss:$16 sps:$4 sm:$0xff]   ;;  %v8429_v60 = vld [vmem:[#allocation5 + $0xac8] ss:$16 sps:$4 sm:$0xff]  }
 0x1ea   :  { %5070 = vmatpush1.bf16.msra.mxu0 %v8342_v61  ;;  %5586 = vmatpush1.bf16.msra.mxu1 %v8345_v62  ;;  %v8434_v61 = vld [vmem:[#allocation5 + $0xae4] ss:$16 sps:$4 sm:$0xff]   ;;  %v8437_v62 = vld [vmem:[#allocation5 + $0xaec] ss:$16 sps:$4 sm:$0xff]  }
 0x1eb   :  { %5071 = vmatprep.subr.bf16.mxu0 %v8350_v63  ;;  %5587 = vmatprep.subr.bf16.mxu1 %v8353_v0  ;;  %v8432_v63 = vld [vmem:[#allocation5 + $0xae0] ss:$16 sps:$4 sm:$0xff]   ;;  %v8435_v0 = vld [vmem:[#allocation5 + $0xae8] ss:$16 sps:$4 sm:$0xff]  }
 0x1ee   :  { %5072 = vmatpush1.bf16.msra.mxu0 %v8348_v1  ;;  %5588 = vmatpush1.bf16.msra.mxu1 %v8351_v2  ;;  %v8440_v1 = vld [vmem:[#allocation5 + $0xb04] ss:$16 sps:$4 sm:$0xff]   ;;  %v8443_v2 = vld [vmem:[#allocation5 + $0xb0c] ss:$16 sps:$4 sm:$0xff]  }
 0x1ef   :  { %5073 = vmatprep.subr.bf16.mxu0 %v8356_v3  ;;  %5589 = vmatprep.subr.bf16.mxu1 %v8359_v4  ;;  %v8438_v3 = vld [vmem:[#allocation5 + $0xb00] ss:$16 sps:$4 sm:$0xff]   ;;  %v8441_v4 = vld [vmem:[#allocation5 + $0xb08] ss:$16 sps:$4 sm:$0xff]  }
 0x1f2   :  { %5074 = vmatpush1.bf16.msra.mxu0 %v8354_v5  ;;  %5590 = vmatpush1.bf16.msra.mxu1 %v8357_v6  ;;  %v8446_v5 = vld [vmem:[#allocation5 + $0xb24] ss:$16 sps:$4 sm:$0xff]   ;;  %v8449_v6 = vld [vmem:[#allocation5 + $0xb2c] ss:$16 sps:$4 sm:$0xff]  }
 0x1f3   :  { %5075 = vmatprep.subr.bf16.mxu0 %v8362_v7  ;;  %5591 = vmatprep.subr.bf16.mxu1 %v8365_v8  ;;  %v8444_v7 = vld [vmem:[#allocation5 + $0xb20] ss:$16 sps:$4 sm:$0xff]   ;;  %v8447_v8 = vld [vmem:[#allocation5 + $0xb28] ss:$16 sps:$4 sm:$0xff]  }
 0x1f6   :  { %5076 = vmatpush1.bf16.msra.mxu0 %v8360_v9  ;;  %5592 = vmatpush1.bf16.msra.mxu1 %v8363_v10  ;;  %v8452_v9 = vld [vmem:[#allocation5 + $0xb44] ss:$16 sps:$4 sm:$0xff]   ;;  %v8455_v10 = vld [vmem:[#allocation5 + $0xb4c] ss:$16 sps:$4 sm:$0xff]  }
 0x1f7   :  { %5077 = vmatprep.subr.bf16.mxu0 %v8368_v11  ;;  %5593 = vmatprep.subr.bf16.mxu1 %v8371_v12  ;;  %v8450_v11 = vld [vmem:[#allocation5 + $0xb40] ss:$16 sps:$4 sm:$0xff]   ;;  %v8453_v12 = vld [vmem:[#allocation5 + $0xb48] ss:$16 sps:$4 sm:$0xff]  }
 0x1fa   :  { %5078 = vmatpush1.bf16.msra.mxu0 %v8366_v13  ;;  %5594 = vmatpush1.bf16.msra.mxu1 %v8369_v14  ;;  %v8458_v13 = vld [vmem:[#allocation5 + $0xb64] ss:$16 sps:$4 sm:$0xff]   ;;  %v8461_v14 = vld [vmem:[#allocation5 + $0xb6c] ss:$16 sps:$4 sm:$0xff]  }
 0x1fb   :  { %5079 = vmatprep.subr.bf16.mxu0 %v8374_v15  ;;  %5595 = vmatprep.subr.bf16.mxu1 %v8377_v16  ;;  %v8456_v15 = vld [vmem:[#allocation5 + $0xb60] ss:$16 sps:$4 sm:$0xff]   ;;  %v8459_v16 = vld [vmem:[#allocation5 + $0xb68] ss:$16 sps:$4 sm:$0xff]  }
 0x1fe   :  { %5080 = vmatpush1.bf16.msra.mxu0 %v8372_v17  ;;  %5596 = vmatpush1.bf16.msra.mxu1 %v8375_v18  ;;  %v8464_v17 = vld [vmem:[#allocation5 + $0xb84] ss:$16 sps:$4 sm:$0xff]   ;;  %v8467_v18 = vld [vmem:[#allocation5 + $0xb8c] ss:$16 sps:$4 sm:$0xff]  }
 0x1ff   :  { %5081 = vmatprep.subr.bf16.mxu0 %v8380_v19  ;;  %5597 = vmatprep.subr.bf16.mxu1 %v8383_v20  ;;  %v8462_v19 = vld [vmem:[#allocation5 + $0xb80] ss:$16 sps:$4 sm:$0xff]   ;;  %v8465_v20 = vld [vmem:[#allocation5 + $0xb88] ss:$16 sps:$4 sm:$0xff]  }
 0x202   :  { %5082 = vmatpush1.bf16.msra.mxu0 %v8378_v21  ;;  %5598 = vmatpush1.bf16.msra.mxu1 %v8381_v22  ;;  %v8470_v21 = vld [vmem:[#allocation5 + $0xba4] ss:$16 sps:$4 sm:$0xff]   ;;  %v8473_v22 = vld [vmem:[#allocation5 + $0xbac] ss:$16 sps:$4 sm:$0xff]  }
 0x203   :  { %5083 = vmatprep.subr.bf16.mxu0 %v8386_v23  ;;  %5599 = vmatprep.subr.bf16.mxu1 %v8389_v24  ;;  %v8468_v23 = vld [vmem:[#allocation5 + $0xba0] ss:$16 sps:$4 sm:$0xff]   ;;  %v8471_v24 = vld [vmem:[#allocation5 + $0xba8] ss:$16 sps:$4 sm:$0xff]  }
 0x206   :  { %5084 = vmatpush1.bf16.msra.mxu0 %v8384_v25  ;;  %5600 = vmatpush1.bf16.msra.mxu1 %v8387_v26  ;;  %v8476_v25 = vld [vmem:[#allocation5 + $0xbc4] ss:$16 sps:$4 sm:$0xff]   ;;  %v8479_v26 = vld [vmem:[#allocation5 + $0xbcc] ss:$16 sps:$4 sm:$0xff]  }
 0x207   :  { %5096 = vmatprep.subr.bf16.mxu0 %v8392_v27  ;;  %5612 = vmatprep.subr.bf16.mxu1 %v8395_v28  ;;  %v8474_v27 = vld [vmem:[#allocation5 + $0xbc0] ss:$16 sps:$4 sm:$0xff]   ;;  %v8477_v28 = vld [vmem:[#allocation5 + $0xbc8] ss:$16 sps:$4 sm:$0xff]  }
 0x209   :  { %5086 = vmatmul.mubr.bf16.vlgmr.msra.gmra.mrb[0].mxu0 %v235_v33  ;;  %5602 = vmatmul.mubr.bf16.vlgmr.msra.gmra.mrb[0].mxu1 %v235_v33  ;;  %v8488_v33 = vld [vmem:[#allocation5 + $0xc04] ss:$16 sps:$4 sm:$0xff]  }
 0x20a   :  { %5097 = vmatpush1.bf16.msra.mxu0 %v8390_v34  ;;  %5613 = vmatpush1.bf16.msra.mxu1 %v8393_v35  ;;  %v8491_v34 = vld [vmem:[#allocation5 + $0xc0c] ss:$16 sps:$4 sm:$0xff]   ;;  %v189_v35 = vld [vmem:[#allocation2 + $0x50] sm:$0xff] }
 0x20b   :  { %5098 = vmatprep.subr.bf16.mxu0 %v8398_v36  ;;  %5614 = vmatprep.subr.bf16.mxu1 %v8401_v37  ;;  %v213_v36 = vld [vmem:[#allocation2 + $0x110] sm:$0xff]  ;;  %v192_v37 = vld [vmem:[#allocation2 + $0x68] sm:$0xff] }
 0x20c   :  { %5128 = vmatprep.mubr.bf16.mxu0 %v238_v38  ;;  %5644 = vmatprep.mubr.bf16.mxu1 %v238_v38  ;;  %v216_v38 = vld [vmem:[#allocation2 + $0x128] sm:$0xff] }
 0x20e   :  { %5099 = vmatpush1.bf16.msra.mxu0 %v8396_v39  ;;  %5615 = vmatpush1.bf16.msra.mxu1 %v8399_v40  ;;  %v237_v39 = vpack.c.bf16 %v213_v36, %v189_v35  ;;  %v8486_v40 = vld [vmem:[#allocation5 + $0xc00] ss:$16 sps:$4 sm:$0xff]   ;;  %v8578_v35 = vld [vmem:[#allocation5 + $0xde4] ss:$16 sps:$4 sm:$0xff]   ;;  %v8581_v36 = vld [vmem:[#allocation5 + $0xdec] ss:$16 sps:$4 sm:$0xff]  }
 0x20f   :  { %5100 = vmatprep.subr.bf16.mxu0 %v8404_v41  ;;  %5616 = vmatprep.subr.bf16.mxu1 %v8407_v42  ;;  %v8489_v41 = vld [vmem:[#allocation5 + $0xc08] ss:$16 sps:$4 sm:$0xff]   ;;  %v8494_v42 = vld [vmem:[#allocation5 + $0xc24] ss:$16 sps:$4 sm:$0xff]  }
 0x212   :  { %5101 = vmatpush1.bf16.msra.mxu0 %v8402_v43  ;;  %5617 = vmatpush1.bf16.msra.mxu1 %v8405_v44  ;;  %v8497_v43 = vld [vmem:[#allocation5 + $0xc2c] ss:$16 sps:$4 sm:$0xff]   ;;  %v240_v44 = vpack.c.bf16 %v216_v38, %v192_v37  ;;  %v8576_v37 = vld [vmem:[#allocation5 + $0xde0] ss:$16 sps:$4 sm:$0xff]   ;;  %v8579_v38 = vld [vmem:[#allocation5 + $0xde8] ss:$16 sps:$4 sm:$0xff]  }
 0x213   :  { %5102 = vmatprep.subr.bf16.mxu0 %v8410_v45  ;;  %5618 = vmatprep.subr.bf16.mxu1 %v8413_v46  ;;  %v8492_v45 = vld [vmem:[#allocation5 + $0xc20] ss:$16 sps:$4 sm:$0xff]   ;;  %v8495_v46 = vld [vmem:[#allocation5 + $0xc28] ss:$16 sps:$4 sm:$0xff]  }
 0x216   :  { %5103 = vmatpush1.bf16.msra.mxu0 %v8408_v47  ;;  %5619 = vmatpush1.bf16.msra.mxu1 %v8411_v48  ;;  %v8500_v47 = vld [vmem:[#allocation5 + $0xc44] ss:$16 sps:$4 sm:$0xff]   ;;  %v8503_v48 = vld [vmem:[#allocation5 + $0xc4c] ss:$16 sps:$4 sm:$0xff]  }
 0x217   :  { %5104 = vmatprep.subr.bf16.mxu0 %v8416_v49  ;;  %5620 = vmatprep.subr.bf16.mxu1 %v8419_v50  ;;  %v8498_v49 = vld [vmem:[#allocation5 + $0xc40] ss:$16 sps:$4 sm:$0xff]   ;;  %v8501_v50 = vld [vmem:[#allocation5 + $0xc48] ss:$16 sps:$4 sm:$0xff]  }
 0x21a   :  { %5105 = vmatpush1.bf16.msra.mxu0 %v8414_v51  ;;  %5621 = vmatpush1.bf16.msra.mxu1 %v8417_v52  ;;  %v8506_v51 = vld [vmem:[#allocation5 + $0xc64] ss:$16 sps:$4 sm:$0xff]   ;;  %v8509_v52 = vld [vmem:[#allocation5 + $0xc6c] ss:$16 sps:$4 sm:$0xff]  }
 0x21b   :  { %5106 = vmatprep.subr.bf16.mxu0 %v8422_v53  ;;  %5622 = vmatprep.subr.bf16.mxu1 %v8425_v54  ;;  %v8504_v53 = vld [vmem:[#allocation5 + $0xc60] ss:$16 sps:$4 sm:$0xff]   ;;  %v8507_v54 = vld [vmem:[#allocation5 + $0xc68] ss:$16 sps:$4 sm:$0xff]  }
 0x21e   :  { %5107 = vmatpush1.bf16.msra.mxu0 %v8420_v55  ;;  %5623 = vmatpush1.bf16.msra.mxu1 %v8423_v56  ;;  %v8512_v55 = vld [vmem:[#allocation5 + $0xc84] ss:$16 sps:$4 sm:$0xff]   ;;  %v8515_v56 = vld [vmem:[#allocation5 + $0xc8c] ss:$16 sps:$4 sm:$0xff]  }
 0x21f   :  { %5108 = vmatprep.subr.bf16.mxu0 %v8428_v57  ;;  %5624 = vmatprep.subr.bf16.mxu1 %v8431_v58  ;;  %v8510_v57 = vld [vmem:[#allocation5 + $0xc80] ss:$16 sps:$4 sm:$0xff]   ;;  %v8513_v58 = vld [vmem:[#allocation5 + $0xc88] ss:$16 sps:$4 sm:$0xff]  }
 0x222   :  { %5109 = vmatpush1.bf16.msra.mxu0 %v8426_v59  ;;  %5625 = vmatpush1.bf16.msra.mxu1 %v8429_v60  ;;  %v8518_v59 = vld [vmem:[#allocation5 + $0xca4] ss:$16 sps:$4 sm:$0xff]   ;;  %v8521_v60 = vld [vmem:[#allocation5 + $0xcac] ss:$16 sps:$4 sm:$0xff]  }
 0x223   :  { %5110 = vmatprep.subr.bf16.mxu0 %v8434_v61  ;;  %5626 = vmatprep.subr.bf16.mxu1 %v8437_v62  ;;  %v8516_v61 = vld [vmem:[#allocation5 + $0xca0] ss:$16 sps:$4 sm:$0xff]   ;;  %v8519_v62 = vld [vmem:[#allocation5 + $0xca8] ss:$16 sps:$4 sm:$0xff]  }
 0x226   :  { %5111 = vmatpush1.bf16.msra.mxu0 %v8432_v63  ;;  %5627 = vmatpush1.bf16.msra.mxu1 %v8435_v0  ;;  %v8524_v63 = vld [vmem:[#allocation5 + $0xcc4] ss:$16 sps:$4 sm:$0xff]   ;;  %v8527_v0 = vld [vmem:[#allocation5 + $0xccc] ss:$16 sps:$4 sm:$0xff]  }
 0x227   :  { %5112 = vmatprep.subr.bf16.mxu0 %v8440_v1  ;;  %5628 = vmatprep.subr.bf16.mxu1 %v8443_v2  ;;  %v8522_v1 = vld [vmem:[#allocation5 + $0xcc0] ss:$16 sps:$4 sm:$0xff]   ;;  %v8525_v2 = vld [vmem:[#allocation5 + $0xcc8] ss:$16 sps:$4 sm:$0xff]  }
 0x22a   :  { %5113 = vmatpush1.bf16.msra.mxu0 %v8438_v3  ;;  %5629 = vmatpush1.bf16.msra.mxu1 %v8441_v4  ;;  %v8530_v3 = vld [vmem:[#allocation5 + $0xce4] ss:$16 sps:$4 sm:$0xff]   ;;  %v8533_v4 = vld [vmem:[#allocation5 + $0xcec] ss:$16 sps:$4 sm:$0xff]  }
 0x22b   :  { %5114 = vmatprep.subr.bf16.mxu0 %v8446_v5  ;;  %5630 = vmatprep.subr.bf16.mxu1 %v8449_v6  ;;  %v8528_v5 = vld [vmem:[#allocation5 + $0xce0] ss:$16 sps:$4 sm:$0xff]   ;;  %v8531_v6 = vld [vmem:[#allocation5 + $0xce8] ss:$16 sps:$4 sm:$0xff]  }
 0x22e   :  { %5115 = vmatpush1.bf16.msra.mxu0 %v8444_v7  ;;  %5631 = vmatpush1.bf16.msra.mxu1 %v8447_v8  ;;  %v8536_v7 = vld [vmem:[#allocation5 + $0xd04] ss:$16 sps:$4 sm:$0xff]   ;;  %v8539_v8 = vld [vmem:[#allocation5 + $0xd0c] ss:$16 sps:$4 sm:$0xff]  }
 0x22f   :  { %5116 = vmatprep.subr.bf16.mxu0 %v8452_v9  ;;  %5632 = vmatprep.subr.bf16.mxu1 %v8455_v10  ;;  %v8534_v9 = vld [vmem:[#allocation5 + $0xd00] ss:$16 sps:$4 sm:$0xff]   ;;  %v8537_v10 = vld [vmem:[#allocation5 + $0xd08] ss:$16 sps:$4 sm:$0xff]  }
 0x232   :  { %5117 = vmatpush1.bf16.msra.mxu0 %v8450_v11  ;;  %5633 = vmatpush1.bf16.msra.mxu1 %v8453_v12  ;;  %v8542_v11 = vld [vmem:[#allocation5 + $0xd24] ss:$16 sps:$4 sm:$0xff]   ;;  %v8545_v12 = vld [vmem:[#allocation5 + $0xd2c] ss:$16 sps:$4 sm:$0xff]  }
 0x233   :  { %5118 = vmatprep.subr.bf16.mxu0 %v8458_v13  ;;  %5634 = vmatprep.subr.bf16.mxu1 %v8461_v14  ;;  %v8540_v13 = vld [vmem:[#allocation5 + $0xd20] ss:$16 sps:$4 sm:$0xff]   ;;  %v8543_v14 = vld [vmem:[#allocation5 + $0xd28] ss:$16 sps:$4 sm:$0xff]  }
 0x236   :  { %5119 = vmatpush1.bf16.msra.mxu0 %v8456_v15  ;;  %5635 = vmatpush1.bf16.msra.mxu1 %v8459_v16  ;;  %v8548_v15 = vld [vmem:[#allocation5 + $0xd44] ss:$16 sps:$4 sm:$0xff]   ;;  %v8551_v16 = vld [vmem:[#allocation5 + $0xd4c] ss:$16 sps:$4 sm:$0xff]  }
 0x237   :  { %5120 = vmatprep.subr.bf16.mxu0 %v8464_v17  ;;  %5636 = vmatprep.subr.bf16.mxu1 %v8467_v18  ;;  %v8546_v17 = vld [vmem:[#allocation5 + $0xd40] ss:$16 sps:$4 sm:$0xff]   ;;  %v8549_v18 = vld [vmem:[#allocation5 + $0xd48] ss:$16 sps:$4 sm:$0xff]  }
 0x23a   :  { %5121 = vmatpush1.bf16.msra.mxu0 %v8462_v19  ;;  %5637 = vmatpush1.bf16.msra.mxu1 %v8465_v20  ;;  %v8554_v19 = vld [vmem:[#allocation5 + $0xd64] ss:$16 sps:$4 sm:$0xff]   ;;  %v8557_v20 = vld [vmem:[#allocation5 + $0xd6c] ss:$16 sps:$4 sm:$0xff]  }
 0x23b   :  { %5122 = vmatprep.subr.bf16.mxu0 %v8470_v21  ;;  %5638 = vmatprep.subr.bf16.mxu1 %v8473_v22  ;;  %v8552_v21 = vld [vmem:[#allocation5 + $0xd60] ss:$16 sps:$4 sm:$0xff]   ;;  %v8555_v22 = vld [vmem:[#allocation5 + $0xd68] ss:$16 sps:$4 sm:$0xff]  }
 0x23e   :  { %5123 = vmatpush1.bf16.msra.mxu0 %v8468_v23  ;;  %5639 = vmatpush1.bf16.msra.mxu1 %v8471_v24  ;;  %v8560_v23 = vld [vmem:[#allocation5 + $0xd84] ss:$16 sps:$4 sm:$0xff]   ;;  %v8563_v24 = vld [vmem:[#allocation5 + $0xd8c] ss:$16 sps:$4 sm:$0xff]  }
 0x23f   :  { %5124 = vmatprep.subr.bf16.mxu0 %v8476_v25  ;;  %5640 = vmatprep.subr.bf16.mxu1 %v8479_v26  ;;  %v8558_v25 = vld [vmem:[#allocation5 + $0xd80] ss:$16 sps:$4 sm:$0xff]   ;;  %v8561_v26 = vld [vmem:[#allocation5 + $0xd88] ss:$16 sps:$4 sm:$0xff]  }
 0x242   :  { %5125 = vmatpush1.bf16.msra.mxu0 %v8474_v27  ;;  %5641 = vmatpush1.bf16.msra.mxu1 %v8477_v28  ;;  %v8566_v27 = vld [vmem:[#allocation5 + $0xda4] ss:$16 sps:$4 sm:$0xff]   ;;  %v8569_v28 = vld [vmem:[#allocation5 + $0xdac] ss:$16 sps:$4 sm:$0xff]  }
 0x243   :  { %5126 = vmatprep.subr.bf16.mxu0 %v8482_v29  ;;  %5642 = vmatprep.subr.bf16.mxu1 %v8485_v30  ;;  %v8564_v29 = vld [vmem:[#allocation5 + $0xda0] ss:$16 sps:$4 sm:$0xff]   ;;  %v8567_v30 = vld [vmem:[#allocation5 + $0xda8] ss:$16 sps:$4 sm:$0xff]  }
 0x246   :  { %5127 = vmatpush1.bf16.msra.mxu0 %v8480_v31  ;;  %5643 = vmatpush1.bf16.msra.mxu1 %v8483_v32  ;;  %v8572_v31 = vld [vmem:[#allocation5 + $0xdc4] ss:$16 sps:$4 sm:$0xff]   ;;  %v8575_v32 = vld [vmem:[#allocation5 + $0xdcc] ss:$16 sps:$4 sm:$0xff]  }
 0x247   :  { %5139 = vmatprep.subr.bf16.mxu0 %v8488_v33  ;;  %5655 = vmatprep.subr.bf16.mxu1 %v8491_v34  ;;  %v8570_v33 = vld [vmem:[#allocation5 + $0xdc0] ss:$16 sps:$4 sm:$0xff]   ;;  %v8573_v34 = vld [vmem:[#allocation5 + $0xdc8] ss:$16 sps:$4 sm:$0xff]  }
 0x249   :  { %5129 = vmatmul.mubr.bf16.vlgmr.msra.gmra.mrb[0].mxu0 %v237_v39  ;;  %5645 = vmatmul.mubr.bf16.vlgmr.msra.gmra.mrb[0].mxu1 %v237_v39  ;;  %v8584_v39 = vld [vmem:[#allocation5 + $0xe04] ss:$16 sps:$4 sm:$0xff]  }
 0x24a   :  { %5140 = vmatpush1.bf16.msra.mxu0 %v8486_v40  ;;  %5656 = vmatpush1.bf16.msra.mxu1 %v8489_v41  ;;  %v8587_v40 = vld [vmem:[#allocation5 + $0xe0c] ss:$16 sps:$4 sm:$0xff]   ;;  %v191_v41 = vld [vmem:[#allocation2 + $0x60] sm:$0xff] }
 0x24b   :  { %5141 = vmatprep.subr.bf16.mxu0 %v8494_v42  ;;  %5657 = vmatprep.subr.bf16.mxu1 %v8497_v43  ;;  %v215_v42 = vld [vmem:[#allocation2 + $0x120] sm:$0xff]  ;;  %v194_v43 = vld [vmem:[#allocation2 + $0x78] sm:$0xff] }
 0x24c   :  { %5171 = vmatprep.mubr.bf16.mxu0 %v240_v44  ;;  %5687 = vmatprep.mubr.bf16.mxu1 %v240_v44  ;;  %v218_v44 = vld [vmem:[#allocation2 + $0x138] sm:$0xff] }
 0x24e   :  { %5142 = vmatpush1.bf16.msra.mxu0 %v8492_v45  ;;  %5658 = vmatpush1.bf16.msra.mxu1 %v8495_v46  ;;  %v239_v45 = vpack.c.bf16 %v215_v42, %v191_v41  ;;  %v8582_v46 = vld [vmem:[#allocation5 + $0xe00] ss:$16 sps:$4 sm:$0xff]   ;;  %v8674_v41 = vld [vmem:[#allocation5 + $0xfe4] ss:$16 sps:$4 sm:$0xff]   ;;  %v8677_v42 = vld [vmem:[#allocation5 + $0xfec] ss:$16 sps:$4 sm:$0xff]  }
 0x24f   :  { %5143 = vmatprep.subr.bf16.mxu0 %v8500_v47  ;;  %5659 = vmatprep.subr.bf16.mxu1 %v8503_v48  ;;  %v8585_v47 = vld [vmem:[#allocation5 + $0xe08] ss:$16 sps:$4 sm:$0xff]   ;;  %v8590_v48 = vld [vmem:[#allocation5 + $0xe24] ss:$16 sps:$4 sm:$0xff]  }
 0x252   :  { %5144 = vmatpush1.bf16.msra.mxu0 %v8498_v49  ;;  %5660 = vmatpush1.bf16.msra.mxu1 %v8501_v50  ;;  %v8593_v49 = vld [vmem:[#allocation5 + $0xe2c] ss:$16 sps:$4 sm:$0xff]   ;;  %v242_v50 = vpack.c.bf16 %v218_v44, %v194_v43  ;;  %v8672_v43 = vld [vmem:[#allocation5 + $0xfe0] ss:$16 sps:$4 sm:$0xff]   ;;  %v8675_v44 = vld [vmem:[#allocation5 + $0xfe8] ss:$16 sps:$4 sm:$0xff]  }
 0x253   :  { %5145 = vmatprep.subr.bf16.mxu0 %v8506_v51  ;;  %5661 = vmatprep.subr.bf16.mxu1 %v8509_v52  ;;  %v8588_v51 = vld [vmem:[#allocation5 + $0xe20] ss:$16 sps:$4 sm:$0xff]   ;;  %v8591_v52 = vld [vmem:[#allocation5 + $0xe28] ss:$16 sps:$4 sm:$0xff]  }
 0x256   :  { %5146 = vmatpush1.bf16.msra.mxu0 %v8504_v53  ;;  %5662 = vmatpush1.bf16.msra.mxu1 %v8507_v54  ;;  %v8596_v53 = vld [vmem:[#allocation5 + $0xe44] ss:$16 sps:$4 sm:$0xff]   ;;  %v8599_v54 = vld [vmem:[#allocation5 + $0xe4c] ss:$16 sps:$4 sm:$0xff]  }
 0x257   :  { %5147 = vmatprep.subr.bf16.mxu0 %v8512_v55  ;;  %5663 = vmatprep.subr.bf16.mxu1 %v8515_v56  ;;  %v8594_v55 = vld [vmem:[#allocation5 + $0xe40] ss:$16 sps:$4 sm:$0xff]   ;;  %v8597_v56 = vld [vmem:[#allocation5 + $0xe48] ss:$16 sps:$4 sm:$0xff]  }
 0x25a   :  { %5148 = vmatpush1.bf16.msra.mxu0 %v8510_v57  ;;  %5664 = vmatpush1.bf16.msra.mxu1 %v8513_v58  ;;  %v8602_v57 = vld [vmem:[#allocation5 + $0xe64] ss:$16 sps:$4 sm:$0xff]   ;;  %v8605_v58 = vld [vmem:[#allocation5 + $0xe6c] ss:$16 sps:$4 sm:$0xff]  }
 0x25b   :  { %5149 = vmatprep.subr.bf16.mxu0 %v8518_v59  ;;  %5665 = vmatprep.subr.bf16.mxu1 %v8521_v60  ;;  %v8600_v59 = vld [vmem:[#allocation5 + $0xe60] ss:$16 sps:$4 sm:$0xff]   ;;  %v8603_v60 = vld [vmem:[#allocation5 + $0xe68] ss:$16 sps:$4 sm:$0xff]  }
 0x25e   :  { %5150 = vmatpush1.bf16.msra.mxu0 %v8516_v61  ;;  %5666 = vmatpush1.bf16.msra.mxu1 %v8519_v62  ;;  %v8608_v61 = vld [vmem:[#allocation5 + $0xe84] ss:$16 sps:$4 sm:$0xff]   ;;  %v8611_v62 = vld [vmem:[#allocation5 + $0xe8c] ss:$16 sps:$4 sm:$0xff]  }
 0x25f   :  { %5151 = vmatprep.subr.bf16.mxu0 %v8524_v63  ;;  %5667 = vmatprep.subr.bf16.mxu1 %v8527_v0  ;;  %v8606_v63 = vld [vmem:[#allocation5 + $0xe80] ss:$16 sps:$4 sm:$0xff]   ;;  %v8609_v0 = vld [vmem:[#allocation5 + $0xe88] ss:$16 sps:$4 sm:$0xff]  }
 0x262   :  { %5152 = vmatpush1.bf16.msra.mxu0 %v8522_v1  ;;  %5668 = vmatpush1.bf16.msra.mxu1 %v8525_v2  ;;  %v8614_v1 = vld [vmem:[#allocation5 + $0xea4] ss:$16 sps:$4 sm:$0xff]   ;;  %v8617_v2 = vld [vmem:[#allocation5 + $0xeac] ss:$16 sps:$4 sm:$0xff]  }
 0x263   :  { %5153 = vmatprep.subr.bf16.mxu0 %v8530_v3  ;;  %5669 = vmatprep.subr.bf16.mxu1 %v8533_v4  ;;  %v8612_v3 = vld [vmem:[#allocation5 + $0xea0] ss:$16 sps:$4 sm:$0xff]   ;;  %v8615_v4 = vld [vmem:[#allocation5 + $0xea8] ss:$16 sps:$4 sm:$0xff]  }
 0x266   :  { %5154 = vmatpush1.bf16.msra.mxu0 %v8528_v5  ;;  %5670 = vmatpush1.bf16.msra.mxu1 %v8531_v6  ;;  %v8620_v5 = vld [vmem:[#allocation5 + $0xec4] ss:$16 sps:$4 sm:$0xff]   ;;  %v8623_v6 = vld [vmem:[#allocation5 + $0xecc] ss:$16 sps:$4 sm:$0xff]  }
 0x267   :  { %5155 = vmatprep.subr.bf16.mxu0 %v8536_v7  ;;  %5671 = vmatprep.subr.bf16.mxu1 %v8539_v8  ;;  %v8618_v7 = vld [vmem:[#allocation5 + $0xec0] ss:$16 sps:$4 sm:$0xff]   ;;  %v8621_v8 = vld [vmem:[#allocation5 + $0xec8] ss:$16 sps:$4 sm:$0xff]  }
 0x26a   :  { %5156 = vmatpush1.bf16.msra.mxu0 %v8534_v9  ;;  %5672 = vmatpush1.bf16.msra.mxu1 %v8537_v10  ;;  %v8626_v9 = vld [vmem:[#allocation5 + $0xee4] ss:$16 sps:$4 sm:$0xff]   ;;  %v8629_v10 = vld [vmem:[#allocation5 + $0xeec] ss:$16 sps:$4 sm:$0xff]  }
 0x26b   :  { %5157 = vmatprep.subr.bf16.mxu0 %v8542_v11  ;;  %5673 = vmatprep.subr.bf16.mxu1 %v8545_v12  ;;  %v8624_v11 = vld [vmem:[#allocation5 + $0xee0] ss:$16 sps:$4 sm:$0xff]   ;;  %v8627_v12 = vld [vmem:[#allocation5 + $0xee8] ss:$16 sps:$4 sm:$0xff]  }
 0x26e   :  { %5158 = vmatpush1.bf16.msra.mxu0 %v8540_v13  ;;  %5674 = vmatpush1.bf16.msra.mxu1 %v8543_v14  ;;  %v8632_v13 = vld [vmem:[#allocation5 + $0xf04] ss:$16 sps:$4 sm:$0xff]   ;;  %v8635_v14 = vld [vmem:[#allocation5 + $0xf0c] ss:$16 sps:$4 sm:$0xff]  }
 0x26f   :  { %5159 = vmatprep.subr.bf16.mxu0 %v8548_v15  ;;  %5675 = vmatprep.subr.bf16.mxu1 %v8551_v16  ;;  %v8630_v15 = vld [vmem:[#allocation5 + $0xf00] ss:$16 sps:$4 sm:$0xff]   ;;  %v8633_v16 = vld [vmem:[#allocation5 + $0xf08] ss:$16 sps:$4 sm:$0xff]  }
 0x272   :  { %5160 = vmatpush1.bf16.msra.mxu0 %v8546_v17  ;;  %5676 = vmatpush1.bf16.msra.mxu1 %v8549_v18  ;;  %v8638_v17 = vld [vmem:[#allocation5 + $0xf24] ss:$16 sps:$4 sm:$0xff]   ;;  %v8641_v18 = vld [vmem:[#allocation5 + $0xf2c] ss:$16 sps:$4 sm:$0xff]  }
 0x273   :  { %5161 = vmatprep.subr.bf16.mxu0 %v8554_v19  ;;  %5677 = vmatprep.subr.bf16.mxu1 %v8557_v20  ;;  %v8636_v19 = vld [vmem:[#allocation5 + $0xf20] ss:$16 sps:$4 sm:$0xff]   ;;  %v8639_v20 = vld [vmem:[#allocation5 + $0xf28] ss:$16 sps:$4 sm:$0xff]  }
 0x276   :  { %5162 = vmatpush1.bf16.msra.mxu0 %v8552_v21  ;;  %5678 = vmatpush1.bf16.msra.mxu1 %v8555_v22  ;;  %v8644_v21 = vld [vmem:[#allocation5 + $0xf44] ss:$16 sps:$4 sm:$0xff]   ;;  %v8647_v22 = vld [vmem:[#allocation5 + $0xf4c] ss:$16 sps:$4 sm:$0xff]  }
 0x277   :  { %5163 = vmatprep.subr.bf16.mxu0 %v8560_v23  ;;  %5679 = vmatprep.subr.bf16.mxu1 %v8563_v24  ;;  %v8642_v23 = vld [vmem:[#allocation5 + $0xf40] ss:$16 sps:$4 sm:$0xff]   ;;  %v8645_v24 = vld [vmem:[#allocation5 + $0xf48] ss:$16 sps:$4 sm:$0xff]  }
 0x27a   :  { %5164 = vmatpush1.bf16.msra.mxu0 %v8558_v25  ;;  %5680 = vmatpush1.bf16.msra.mxu1 %v8561_v26  ;;  %v8650_v25 = vld [vmem:[#allocation5 + $0xf64] ss:$16 sps:$4 sm:$0xff]   ;;  %v8653_v26 = vld [vmem:[#allocation5 + $0xf6c] ss:$16 sps:$4 sm:$0xff]  }
 0x27b   :  { %5165 = vmatprep.subr.bf16.mxu0 %v8566_v27  ;;  %5681 = vmatprep.subr.bf16.mxu1 %v8569_v28  ;;  %v8648_v27 = vld [vmem:[#allocation5 + $0xf60] ss:$16 sps:$4 sm:$0xff]   ;;  %v8651_v28 = vld [vmem:[#allocation5 + $0xf68] ss:$16 sps:$4 sm:$0xff]  }
 0x27e   :  { %5166 = vmatpush1.bf16.msra.mxu0 %v8564_v29  ;;  %5682 = vmatpush1.bf16.msra.mxu1 %v8567_v30  ;;  %v8656_v29 = vld [vmem:[#allocation5 + $0xf84] ss:$16 sps:$4 sm:$0xff]   ;;  %v8659_v30 = vld [vmem:[#allocation5 + $0xf8c] ss:$16 sps:$4 sm:$0xff]  }
 0x27f   :  { %5167 = vmatprep.subr.bf16.mxu0 %v8572_v31  ;;  %5683 = vmatprep.subr.bf16.mxu1 %v8575_v32  ;;  %v8654_v31 = vld [vmem:[#allocation5 + $0xf80] ss:$16 sps:$4 sm:$0xff]   ;;  %v8657_v32 = vld [vmem:[#allocation5 + $0xf88] ss:$16 sps:$4 sm:$0xff]  }
 0x282   :  { %5168 = vmatpush1.bf16.msra.mxu0 %v8570_v33  ;;  %5684 = vmatpush1.bf16.msra.mxu1 %v8573_v34  ;;  %v8662_v33 = vld [vmem:[#allocation5 + $0xfa4] ss:$16 sps:$4 sm:$0xff]   ;;  %v8665_v34 = vld [vmem:[#allocation5 + $0xfac] ss:$16 sps:$4 sm:$0xff]  }
 0x283   :  { %5169 = vmatprep.subr.bf16.mxu0 %v8578_v35  ;;  %5685 = vmatprep.subr.bf16.mxu1 %v8581_v36  ;;  %v8660_v35 = vld [vmem:[#allocation5 + $0xfa0] ss:$16 sps:$4 sm:$0xff]   ;;  %v8663_v36 = vld [vmem:[#allocation5 + $0xfa8] ss:$16 sps:$4 sm:$0xff]  }
 0x286   :  { %5170 = vmatpush1.bf16.msra.mxu0 %v8576_v37  ;;  %5686 = vmatpush1.bf16.msra.mxu1 %v8579_v38  ;;  %v8668_v37 = vld [vmem:[#allocation5 + $0xfc4] ss:$16 sps:$4 sm:$0xff]   ;;  %v8671_v38 = vld [vmem:[#allocation5 + $0xfcc] ss:$16 sps:$4 sm:$0xff]  }
 0x287   :  { %5182 = vmatprep.subr.bf16.mxu0 %v8584_v39  ;;  %5698 = vmatprep.subr.bf16.mxu1 %v8587_v40  ;;  %v8666_v39 = vld [vmem:[#allocation5 + $0xfc0] ss:$16 sps:$4 sm:$0xff]   ;;  %v8669_v40 = vld [vmem:[#allocation5 + $0xfc8] ss:$16 sps:$4 sm:$0xff]  }
 0x289   :  { %5172 = vmatmul.mubr.bf16.vlgmr.msra.gmra.mrb[0].mxu0 %v239_v45  ;;  %5688 = vmatmul.mubr.bf16.vlgmr.msra.gmra.mrb[0].mxu1 %v239_v45  ;;  %v8680_v45 = vld [vmem:[#allocation5 + $0x1004] ss:$16 sps:$4 sm:$0xff]  }
 0x28a   :  { %5183 = vmatpush1.bf16.msra.mxu0 %v8582_v46  ;;  %5699 = vmatpush1.bf16.msra.mxu1 %v8585_v47  ;;  %v8683_v46 = vld [vmem:[#allocation5 + $0x100c] ss:$16 sps:$4 sm:$0xff]   ;;  %v193_v47 = vld [vmem:[#allocation2 + $0x70] sm:$0xff] }
 0x28b   :  { %5184 = vmatprep.subr.bf16.mxu0 %v8590_v48  ;;  %5700 = vmatprep.subr.bf16.mxu1 %v8593_v49  ;;  %v217_v48 = vld [vmem:[#allocation2 + $0x130] sm:$0xff]  ;;  %v196_v49 = vld [vmem:[#allocation2 + $0x88] sm:$0xff] }
 0x28c   :  { %5214 = vmatprep.mubr.bf16.mxu0 %v242_v50  ;;  %5730 = vmatprep.mubr.bf16.mxu1 %v242_v50  ;;  %v220_v50 = vld [vmem:[#allocation2 + $0x148] sm:$0xff] }
 0x28e   :  { %5185 = vmatpush1.bf16.msra.mxu0 %v8588_v51  ;;  %5701 = vmatpush1.bf16.msra.mxu1 %v8591_v52  ;;  %v241_v51 = vpack.c.bf16 %v217_v48, %v193_v47  ;;  %v8678_v52 = vld [vmem:[#allocation5 + $0x1000] ss:$16 sps:$4 sm:$0xff]   ;;  %v8770_v47 = vld [vmem:[#allocation5 + $0x11e4] ss:$16 sps:$4 sm:$0xff]   ;;  %v8773_v48 = vld [vmem:[#allocation5 + $0x11ec] ss:$16 sps:$4 sm:$0xff]  }
 0x28f   :  { %5186 = vmatprep.subr.bf16.mxu0 %v8596_v53  ;;  %5702 = vmatprep.subr.bf16.mxu1 %v8599_v54  ;;  %v8681_v53 = vld [vmem:[#allocation5 + $0x1008] ss:$16 sps:$4 sm:$0xff]   ;;  %v8686_v54 = vld [vmem:[#allocation5 + $0x1024] ss:$16 sps:$4 sm:$0xff]  }
 0x292   :  { %5187 = vmatpush1.bf16.msra.mxu0 %v8594_v55  ;;  %5703 = vmatpush1.bf16.msra.mxu1 %v8597_v56  ;;  %v8689_v55 = vld [vmem:[#allocation5 + $0x102c] ss:$16 sps:$4 sm:$0xff]   ;;  %v244_v56 = vpack.c.bf16 %v220_v50, %v196_v49  ;;  %v8768_v49 = vld [vmem:[#allocation5 + $0x11e0] ss:$16 sps:$4 sm:$0xff]   ;;  %v8771_v50 = vld [vmem:[#allocation5 + $0x11e8] ss:$16 sps:$4 sm:$0xff]  }
 0x293   :  { %5188 = vmatprep.subr.bf16.mxu0 %v8602_v57  ;;  %5704 = vmatprep.subr.bf16.mxu1 %v8605_v58  ;;  %v8684_v57 = vld [vmem:[#allocation5 + $0x1020] ss:$16 sps:$4 sm:$0xff]   ;;  %v8687_v58 = vld [vmem:[#allocation5 + $0x1028] ss:$16 sps:$4 sm:$0xff]  }
 0x296   :  { %5189 = vmatpush1.bf16.msra.mxu0 %v8600_v59  ;;  %5705 = vmatpush1.bf16.msra.mxu1 %v8603_v60  ;;  %v8692_v59 = vld [vmem:[#allocation5 + $0x1044] ss:$16 sps:$4 sm:$0xff]   ;;  %v8695_v60 = vld [vmem:[#allocation5 + $0x104c] ss:$16 sps:$4 sm:$0xff]  }
 0x297   :  { %5190 = vmatprep.subr.bf16.mxu0 %v8608_v61  ;;  %5706 = vmatprep.subr.bf16.mxu1 %v8611_v62  ;;  %v8690_v61 = vld [vmem:[#allocation5 + $0x1040] ss:$16 sps:$4 sm:$0xff]   ;;  %v8693_v62 = vld [vmem:[#allocation5 + $0x1048] ss:$16 sps:$4 sm:$0xff]  }
 0x29a   :  { %5191 = vmatpush1.bf16.msra.mxu0 %v8606_v63  ;;  %5707 = vmatpush1.bf16.msra.mxu1 %v8609_v0  ;;  %v8698_v63 = vld [vmem:[#allocation5 + $0x1064] ss:$16 sps:$4 sm:$0xff]   ;;  %v8701_v0 = vld [vmem:[#allocation5 + $0x106c] ss:$16 sps:$4 sm:$0xff]  }
 0x29b   :  { %5192 = vmatprep.subr.bf16.mxu0 %v8614_v1  ;;  %5708 = vmatprep.subr.bf16.mxu1 %v8617_v2  ;;  %v8696_v1 = vld [vmem:[#allocation5 + $0x1060] ss:$16 sps:$4 sm:$0xff]   ;;  %v8699_v2 = vld [vmem:[#allocation5 + $0x1068] ss:$16 sps:$4 sm:$0xff]  }
 0x29e   :  { %5193 = vmatpush1.bf16.msra.mxu0 %v8612_v3  ;;  %5709 = vmatpush1.bf16.msra.mxu1 %v8615_v4  ;;  %v8704_v3 = vld [vmem:[#allocation5 + $0x1084] ss:$16 sps:$4 sm:$0xff]   ;;  %v8707_v4 = vld [vmem:[#allocation5 + $0x108c] ss:$16 sps:$4 sm:$0xff]  }
 0x29f   :  { %5194 = vmatprep.subr.bf16.mxu0 %v8620_v5  ;;  %5710 = vmatprep.subr.bf16.mxu1 %v8623_v6  ;;  %v8702_v5 = vld [vmem:[#allocation5 + $0x1080] ss:$16 sps:$4 sm:$0xff]   ;;  %v8705_v6 = vld [vmem:[#allocation5 + $0x1088] ss:$16 sps:$4 sm:$0xff]  }
 0x2a2   :  { %5195 = vmatpush1.bf16.msra.mxu0 %v8618_v7  ;;  %5711 = vmatpush1.bf16.msra.mxu1 %v8621_v8  ;;  %v8710_v7 = vld [vmem:[#allocation5 + $0x10a4] ss:$16 sps:$4 sm:$0xff]   ;;  %v8713_v8 = vld [vmem:[#allocation5 + $0x10ac] ss:$16 sps:$4 sm:$0xff]  }
 0x2a3   :  { %5196 = vmatprep.subr.bf16.mxu0 %v8626_v9  ;;  %5712 = vmatprep.subr.bf16.mxu1 %v8629_v10  ;;  %v8708_v9 = vld [vmem:[#allocation5 + $0x10a0] ss:$16 sps:$4 sm:$0xff]   ;;  %v8711_v10 = vld [vmem:[#allocation5 + $0x10a8] ss:$16 sps:$4 sm:$0xff]  }
 0x2a6   :  { %5197 = vmatpush1.bf16.msra.mxu0 %v8624_v11  ;;  %5713 = vmatpush1.bf16.msra.mxu1 %v8627_v12  ;;  %v8716_v11 = vld [vmem:[#allocation5 + $0x10c4] ss:$16 sps:$4 sm:$0xff]   ;;  %v8719_v12 = vld [vmem:[#allocation5 + $0x10cc] ss:$16 sps:$4 sm:$0xff]  }
 0x2a7   :  { %5198 = vmatprep.subr.bf16.mxu0 %v8632_v13  ;;  %5714 = vmatprep.subr.bf16.mxu1 %v8635_v14  ;;  %v8714_v13 = vld [vmem:[#allocation5 + $0x10c0] ss:$16 sps:$4 sm:$0xff]   ;;  %v8717_v14 = vld [vmem:[#allocation5 + $0x10c8] ss:$16 sps:$4 sm:$0xff]  }
 0x2aa   :  { %5199 = vmatpush1.bf16.msra.mxu0 %v8630_v15  ;;  %5715 = vmatpush1.bf16.msra.mxu1 %v8633_v16  ;;  %v8722_v15 = vld [vmem:[#allocation5 + $0x10e4] ss:$16 sps:$4 sm:$0xff]   ;;  %v8725_v16 = vld [vmem:[#allocation5 + $0x10ec] ss:$16 sps:$4 sm:$0xff]  }
 0x2ab   :  { %5200 = vmatprep.subr.bf16.mxu0 %v8638_v17  ;;  %5716 = vmatprep.subr.bf16.mxu1 %v8641_v18  ;;  %v8720_v17 = vld [vmem:[#allocation5 + $0x10e0] ss:$16 sps:$4 sm:$0xff]   ;;  %v8723_v18 = vld [vmem:[#allocation5 + $0x10e8] ss:$16 sps:$4 sm:$0xff]  }
 0x2ae   :  { %5201 = vmatpush1.bf16.msra.mxu0 %v8636_v19  ;;  %5717 = vmatpush1.bf16.msra.mxu1 %v8639_v20  ;;  %v8728_v19 = vld [vmem:[#allocation5 + $0x1104] ss:$16 sps:$4 sm:$0xff]   ;;  %v8731_v20 = vld [vmem:[#allocation5 + $0x110c] ss:$16 sps:$4 sm:$0xff]  }
 0x2af   :  { %5202 = vmatprep.subr.bf16.mxu0 %v8644_v21  ;;  %5718 = vmatprep.subr.bf16.mxu1 %v8647_v22  ;;  %v8726_v21 = vld [vmem:[#allocation5 + $0x1100] ss:$16 sps:$4 sm:$0xff]   ;;  %v8729_v22 = vld [vmem:[#allocation5 + $0x1108] ss:$16 sps:$4 sm:$0xff]  }
 0x2b2   :  { %5203 = vmatpush1.bf16.msra.mxu0 %v8642_v23  ;;  %5719 = vmatpush1.bf16.msra.mxu1 %v8645_v24  ;;  %v8734_v23 = vld [vmem:[#allocation5 + $0x1124] ss:$16 sps:$4 sm:$0xff]   ;;  %v8737_v24 = vld [vmem:[#allocation5 + $0x112c] ss:$16 sps:$4 sm:$0xff]  }
 0x2b3   :  { %5204 = vmatprep.subr.bf16.mxu0 %v8650_v25  ;;  %5720 = vmatprep.subr.bf16.mxu1 %v8653_v26  ;;  %v8732_v25 = vld [vmem:[#allocation5 + $0x1120] ss:$16 sps:$4 sm:$0xff]   ;;  %v8735_v26 = vld [vmem:[#allocation5 + $0x1128] ss:$16 sps:$4 sm:$0xff]  }
 0x2b6   :  { %5205 = vmatpush1.bf16.msra.mxu0 %v8648_v27  ;;  %5721 = vmatpush1.bf16.msra.mxu1 %v8651_v28  ;;  %v8740_v27 = vld [vmem:[#allocation5 + $0x1144] ss:$16 sps:$4 sm:$0xff]   ;;  %v8743_v28 = vld [vmem:[#allocation5 + $0x114c] ss:$16 sps:$4 sm:$0xff]  }
 0x2b7   :  { %5206 = vmatprep.subr.bf16.mxu0 %v8656_v29  ;;  %5722 = vmatprep.subr.bf16.mxu1 %v8659_v30  ;;  %v8738_v29 = vld [vmem:[#allocation5 + $0x1140] ss:$16 sps:$4 sm:$0xff]   ;;  %v8741_v30 = vld [vmem:[#allocation5 + $0x1148] ss:$16 sps:$4 sm:$0xff]  }
 0x2ba   :  { %5207 = vmatpush1.bf16.msra.mxu0 %v8654_v31  ;;  %5723 = vmatpush1.bf16.msra.mxu1 %v8657_v32  ;;  %v8746_v31 = vld [vmem:[#allocation5 + $0x1164] ss:$16 sps:$4 sm:$0xff]   ;;  %v8749_v32 = vld [vmem:[#allocation5 + $0x116c] ss:$16 sps:$4 sm:$0xff]  }
 0x2bb   :  { %5208 = vmatprep.subr.bf16.mxu0 %v8662_v33  ;;  %5724 = vmatprep.subr.bf16.mxu1 %v8665_v34  ;;  %v8744_v33 = vld [vmem:[#allocation5 + $0x1160] ss:$16 sps:$4 sm:$0xff]   ;;  %v8747_v34 = vld [vmem:[#allocation5 + $0x1168] ss:$16 sps:$4 sm:$0xff]  }
 0x2be   :  { %5209 = vmatpush1.bf16.msra.mxu0 %v8660_v35  ;;  %5725 = vmatpush1.bf16.msra.mxu1 %v8663_v36  ;;  %v8752_v35 = vld [vmem:[#allocation5 + $0x1184] ss:$16 sps:$4 sm:$0xff]   ;;  %v8755_v36 = vld [vmem:[#allocation5 + $0x118c] ss:$16 sps:$4 sm:$0xff]  }
 0x2bf   :  { %5210 = vmatprep.subr.bf16.mxu0 %v8668_v37  ;;  %5726 = vmatprep.subr.bf16.mxu1 %v8671_v38  ;;  %v8750_v37 = vld [vmem:[#allocation5 + $0x1180] ss:$16 sps:$4 sm:$0xff]   ;;  %v8753_v38 = vld [vmem:[#allocation5 + $0x1188] ss:$16 sps:$4 sm:$0xff]  }
 0x2c2   :  { %5211 = vmatpush1.bf16.msra.mxu0 %v8666_v39  ;;  %5727 = vmatpush1.bf16.msra.mxu1 %v8669_v40  ;;  %v8758_v39 = vld [vmem:[#allocation5 + $0x11a4] ss:$16 sps:$4 sm:$0xff]   ;;  %v8761_v40 = vld [vmem:[#allocation5 + $0x11ac] ss:$16 sps:$4 sm:$0xff]  }
 0x2c3   :  { %5212 = vmatprep.subr.bf16.mxu0 %v8674_v41  ;;  %5728 = vmatprep.subr.bf16.mxu1 %v8677_v42  ;;  %v8756_v41 = vld [vmem:[#allocation5 + $0x11a0] ss:$16 sps:$4 sm:$0xff]   ;;  %v8759_v42 = vld [vmem:[#allocation5 + $0x11a8] ss:$16 sps:$4 sm:$0xff]  }
 0x2c6   :  { %5213 = vmatpush1.bf16.msra.mxu0 %v8672_v43  ;;  %5729 = vmatpush1.bf16.msra.mxu1 %v8675_v44  ;;  %v8764_v43 = vld [vmem:[#allocation5 + $0x11c4] ss:$16 sps:$4 sm:$0xff]   ;;  %v8767_v44 = vld [vmem:[#allocation5 + $0x11cc] ss:$16 sps:$4 sm:$0xff]  }
 0x2c7   :  { %5225 = vmatprep.subr.bf16.mxu0 %v8680_v45  ;;  %5741 = vmatprep.subr.bf16.mxu1 %v8683_v46  ;;  %v8762_v45 = vld [vmem:[#allocation5 + $0x11c0] ss:$16 sps:$4 sm:$0xff]   ;;  %v8765_v46 = vld [vmem:[#allocation5 + $0x11c8] ss:$16 sps:$4 sm:$0xff]  }
 0x2c9   :  { %5215 = vmatmul.mubr.bf16.vlgmr.msra.gmra.mrb[0].mxu0 %v241_v51  ;;  %5731 = vmatmul.mubr.bf16.vlgmr.msra.gmra.mrb[0].mxu1 %v241_v51  ;;  %v195_v51 = vld [vmem:[#allocation2 + $0x80] sm:$0xff] }
 0x2ca   :  { %5226 = vmatpush1.bf16.msra.mxu0 %v8678_v52  ;;  %5742 = vmatpush1.bf16.msra.mxu1 %v8681_v53  ;;  %v219_v52 = vld [vmem:[#allocation2 + $0x140] sm:$0xff] }
 0x2cb   :  { %5227 = vmatprep.subr.bf16.mxu0 %v8686_v54  ;;  %5743 = vmatprep.subr.bf16.mxu1 %v8689_v55  ;;  %v8776_v53 = vld [vmem:[#allocation5 + $0x1204] ss:$16 sps:$4 sm:$0xff]   ;;  %v8779_v54 = vld [vmem:[#allocation5 + $0x120c] ss:$16 sps:$4 sm:$0xff]   ;;  %v243_v55 = vpack.c.bf16 %v219_v52, %v195_v51  ;;  %v8858_v51 = vld [vmem:[#allocation5 + $0x13c0] ss:$16 sps:$4 sm:$0xff]  }
 0x2cc   :  { %5257 = vmatprep.mubr.bf16.mxu0 %v244_v56  ;;  %5773 = vmatprep.mubr.bf16.mxu1 %v244_v56  ;;  %v198_v56 = vld [vmem:[#allocation2 + $0x98] sm:$0xff] }
 0x2cd   :  { %v8861_v52 = vld [vmem:[#allocation5 + $0x13c8] ss:$16 sps:$4 sm:$0xff]  }
 0x2ce   :  { %5228 = vmatpush1.bf16.msra.mxu0 %v8684_v57  ;;  %5744 = vmatpush1.bf16.msra.mxu1 %v8687_v58  ;;  %v222_v57 = vld [vmem:[#allocation2 + $0x158] sm:$0xff]  ;;  %v8774_v58 = vld [vmem:[#allocation5 + $0x1200] ss:$16 sps:$4 sm:$0xff]  }
 0x2cf   :  { %5229 = vmatprep.subr.bf16.mxu0 %v8692_v59  ;;  %5745 = vmatprep.subr.bf16.mxu1 %v8695_v60  ;;  %v8777_v59 = vld [vmem:[#allocation5 + $0x1208] ss:$16 sps:$4 sm:$0xff]   ;;  %v8782_v60 = vld [vmem:[#allocation5 + $0x1224] ss:$16 sps:$4 sm:$0xff]  }
 0x2d2   :  { %5230 = vmatpush1.bf16.msra.mxu0 %v8690_v61  ;;  %5746 = vmatpush1.bf16.msra.mxu1 %v8693_v62  ;;  %v8785_v61 = vld [vmem:[#allocation5 + $0x122c] ss:$16 sps:$4 sm:$0xff]   ;;  %v246_v62 = vpack.c.bf16 %v222_v57, %v198_v56  ;;  %v8867_v56 = vld [vmem:[#allocation5 + $0x13e8] ss:$16 sps:$4 sm:$0xff]   ;;  %v197_v57 = vld [vmem:[#allocation2 + $0x90] sm:$0xff] }
 0x2d3   :  { %5231 = vmatprep.subr.bf16.mxu0 %v8698_v63  ;;  %5747 = vmatprep.subr.bf16.mxu1 %v8701_v0  ;;  %v8780_v63 = vld [vmem:[#allocation5 + $0x1220] ss:$16 sps:$4 sm:$0xff]   ;;  %v8783_v0 = vld [vmem:[#allocation5 + $0x1228] ss:$16 sps:$4 sm:$0xff]  }
 0x2d6   :  { %5232 = vmatpush1.bf16.msra.mxu0 %v8696_v1  ;;  %5748 = vmatpush1.bf16.msra.mxu1 %v8699_v2  ;;  %v8788_v1 = vld [vmem:[#allocation5 + $0x1244] ss:$16 sps:$4 sm:$0xff]   ;;  %v8791_v2 = vld [vmem:[#allocation5 + $0x124c] ss:$16 sps:$4 sm:$0xff]  }
 0x2d7   :  { %5233 = vmatprep.subr.bf16.mxu0 %v8704_v3  ;;  %5749 = vmatprep.subr.bf16.mxu1 %v8707_v4  ;;  %v8786_v3 = vld [vmem:[#allocation5 + $0x1240] ss:$16 sps:$4 sm:$0xff]   ;;  %v8789_v4 = vld [vmem:[#allocation5 + $0x1248] ss:$16 sps:$4 sm:$0xff]  }
 0x2da   :  { %5234 = vmatpush1.bf16.msra.mxu0 %v8702_v5  ;;  %5750 = vmatpush1.bf16.msra.mxu1 %v8705_v6  ;;  %v8794_v5 = vld [vmem:[#allocation5 + $0x1264] ss:$16 sps:$4 sm:$0xff]   ;;  %v8797_v6 = vld [vmem:[#allocation5 + $0x126c] ss:$16 sps:$4 sm:$0xff]  }
 0x2db   :  { %5235 = vmatprep.subr.bf16.mxu0 %v8710_v7  ;;  %5751 = vmatprep.subr.bf16.mxu1 %v8713_v8  ;;  %v8792_v7 = vld [vmem:[#allocation5 + $0x1260] ss:$16 sps:$4 sm:$0xff]   ;;  %v8795_v8 = vld [vmem:[#allocation5 + $0x1268] ss:$16 sps:$4 sm:$0xff]  }
 0x2de   :  { %5236 = vmatpush1.bf16.msra.mxu0 %v8708_v9  ;;  %5752 = vmatpush1.bf16.msra.mxu1 %v8711_v10  ;;  %v8800_v9 = vld [vmem:[#allocation5 + $0x1284] ss:$16 sps:$4 sm:$0xff]   ;;  %v8803_v10 = vld [vmem:[#allocation5 + $0x128c] ss:$16 sps:$4 sm:$0xff]  }
 0x2df   :  { %5237 = vmatprep.subr.bf16.mxu0 %v8716_v11  ;;  %5753 = vmatprep.subr.bf16.mxu1 %v8719_v12  ;;  %v8798_v11 = vld [vmem:[#allocation5 + $0x1280] ss:$16 sps:$4 sm:$0xff]   ;;  %v8801_v12 = vld [vmem:[#allocation5 + $0x1288] ss:$16 sps:$4 sm:$0xff]  }
 0x2e2   :  { %5238 = vmatpush1.bf16.msra.mxu0 %v8714_v13  ;;  %5754 = vmatpush1.bf16.msra.mxu1 %v8717_v14  ;;  %v8806_v13 = vld [vmem:[#allocation5 + $0x12a4] ss:$16 sps:$4 sm:$0xff]   ;;  %v8809_v14 = vld [vmem:[#allocation5 + $0x12ac] ss:$16 sps:$4 sm:$0xff]  }
 0x2e3   :  { %5239 = vmatprep.subr.bf16.mxu0 %v8722_v15  ;;  %5755 = vmatprep.subr.bf16.mxu1 %v8725_v16  ;;  %v8804_v15 = vld [vmem:[#allocation5 + $0x12a0] ss:$16 sps:$4 sm:$0xff]   ;;  %v8807_v16 = vld [vmem:[#allocation5 + $0x12a8] ss:$16 sps:$4 sm:$0xff]  }
 0x2e6   :  { %5240 = vmatpush1.bf16.msra.mxu0 %v8720_v17  ;;  %5756 = vmatpush1.bf16.msra.mxu1 %v8723_v18  ;;  %v8812_v17 = vld [vmem:[#allocation5 + $0x12c4] ss:$16 sps:$4 sm:$0xff]   ;;  %v8815_v18 = vld [vmem:[#allocation5 + $0x12cc] ss:$16 sps:$4 sm:$0xff]  }
 0x2e7   :  { %5241 = vmatprep.subr.bf16.mxu0 %v8728_v19  ;;  %5757 = vmatprep.subr.bf16.mxu1 %v8731_v20  ;;  %v8810_v19 = vld [vmem:[#allocation5 + $0x12c0] ss:$16 sps:$4 sm:$0xff]   ;;  %v8813_v20 = vld [vmem:[#allocation5 + $0x12c8] ss:$16 sps:$4 sm:$0xff]  }
 0x2ea   :  { %5242 = vmatpush1.bf16.msra.mxu0 %v8726_v21  ;;  %5758 = vmatpush1.bf16.msra.mxu1 %v8729_v22  ;;  %v8818_v21 = vld [vmem:[#allocation5 + $0x12e4] ss:$16 sps:$4 sm:$0xff]   ;;  %v8821_v22 = vld [vmem:[#allocation5 + $0x12ec] ss:$16 sps:$4 sm:$0xff]  }
 0x2eb   :  { %5243 = vmatprep.subr.bf16.mxu0 %v8734_v23  ;;  %5759 = vmatprep.subr.bf16.mxu1 %v8737_v24  ;;  %v8816_v23 = vld [vmem:[#allocation5 + $0x12e0] ss:$16 sps:$4 sm:$0xff]   ;;  %v8819_v24 = vld [vmem:[#allocation5 + $0x12e8] ss:$16 sps:$4 sm:$0xff]  }
 0x2ee   :  { %5244 = vmatpush1.bf16.msra.mxu0 %v8732_v25  ;;  %5760 = vmatpush1.bf16.msra.mxu1 %v8735_v26  ;;  %v8824_v25 = vld [vmem:[#allocation5 + $0x1304] ss:$16 sps:$4 sm:$0xff]   ;;  %v8827_v26 = vld [vmem:[#allocation5 + $0x130c] ss:$16 sps:$4 sm:$0xff]  }
 0x2ef   :  { %5245 = vmatprep.subr.bf16.mxu0 %v8740_v27  ;;  %5761 = vmatprep.subr.bf16.mxu1 %v8743_v28  ;;  %v8822_v27 = vld [vmem:[#allocation5 + $0x1300] ss:$16 sps:$4 sm:$0xff]   ;;  %v8825_v28 = vld [vmem:[#allocation5 + $0x1308] ss:$16 sps:$4 sm:$0xff]  }
 0x2f2   :  { %5246 = vmatpush1.bf16.msra.mxu0 %v8738_v29  ;;  %5762 = vmatpush1.bf16.msra.mxu1 %v8741_v30  ;;  %v8830_v29 = vld [vmem:[#allocation5 + $0x1324] ss:$16 sps:$4 sm:$0xff]   ;;  %v8833_v30 = vld [vmem:[#allocation5 + $0x132c] ss:$16 sps:$4 sm:$0xff]  }
 0x2f3   :  { %5247 = vmatprep.subr.bf16.mxu0 %v8746_v31  ;;  %5763 = vmatprep.subr.bf16.mxu1 %v8749_v32  ;;  %v8828_v31 = vld [vmem:[#allocation5 + $0x1320] ss:$16 sps:$4 sm:$0xff]   ;;  %v8831_v32 = vld [vmem:[#allocation5 + $0x1328] ss:$16 sps:$4 sm:$0xff]  }
 0x2f6   :  { %5248 = vmatpush1.bf16.msra.mxu0 %v8744_v33  ;;  %5764 = vmatpush1.bf16.msra.mxu1 %v8747_v34  ;;  %v8836_v33 = vld [vmem:[#allocation5 + $0x1344] ss:$16 sps:$4 sm:$0xff]   ;;  %v8839_v34 = vld [vmem:[#allocation5 + $0x134c] ss:$16 sps:$4 sm:$0xff]  }
 0x2f7   :  { %5249 = vmatprep.subr.bf16.mxu0 %v8752_v35  ;;  %5765 = vmatprep.subr.bf16.mxu1 %v8755_v36  ;;  %v8834_v35 = vld [vmem:[#allocation5 + $0x1340] ss:$16 sps:$4 sm:$0xff]   ;;  %v8837_v36 = vld [vmem:[#allocation5 + $0x1348] ss:$16 sps:$4 sm:$0xff]  }
 0x2fa   :  { %5250 = vmatpush1.bf16.msra.mxu0 %v8750_v37  ;;  %5766 = vmatpush1.bf16.msra.mxu1 %v8753_v38  ;;  %v8842_v37 = vld [vmem:[#allocation5 + $0x1364] ss:$16 sps:$4 sm:$0xff]   ;;  %v8845_v38 = vld [vmem:[#allocation5 + $0x136c] ss:$16 sps:$4 sm:$0xff]  }
 0x2fb   :  { %5251 = vmatprep.subr.bf16.mxu0 %v8758_v39  ;;  %5767 = vmatprep.subr.bf16.mxu1 %v8761_v40  ;;  %v8840_v39 = vld [vmem:[#allocation5 + $0x1360] ss:$16 sps:$4 sm:$0xff]   ;;  %v8843_v40 = vld [vmem:[#allocation5 + $0x1368] ss:$16 sps:$4 sm:$0xff]  }
 0x2fe   :  { %5252 = vmatpush1.bf16.msra.mxu0 %v8756_v41  ;;  %5768 = vmatpush1.bf16.msra.mxu1 %v8759_v42  ;;  %v8848_v41 = vld [vmem:[#allocation5 + $0x1384] ss:$16 sps:$4 sm:$0xff]   ;;  %v8851_v42 = vld [vmem:[#allocation5 + $0x138c] ss:$16 sps:$4 sm:$0xff]  }
 0x2ff   :  { %5253 = vmatprep.subr.bf16.mxu0 %v8764_v43  ;;  %5769 = vmatprep.subr.bf16.mxu1 %v8767_v44  ;;  %v8846_v43 = vld [vmem:[#allocation5 + $0x1380] ss:$16 sps:$4 sm:$0xff]   ;;  %v8849_v44 = vld [vmem:[#allocation5 + $0x1388] ss:$16 sps:$4 sm:$0xff]  }
 0x302   :  { %5254 = vmatpush1.bf16.msra.mxu0 %v8762_v45  ;;  %5770 = vmatpush1.bf16.msra.mxu1 %v8765_v46  ;;  %v8854_v45 = vld [vmem:[#allocation5 + $0x13a4] ss:$16 sps:$4 sm:$0xff]   ;;  %v8857_v46 = vld [vmem:[#allocation5 + $0x13ac] ss:$16 sps:$4 sm:$0xff]  }
 0x303   :  { %5255 = vmatprep.subr.bf16.mxu0 %v8770_v47  ;;  %5771 = vmatprep.subr.bf16.mxu1 %v8773_v48  ;;  %v8852_v47 = vld [vmem:[#allocation5 + $0x13a0] ss:$16 sps:$4 sm:$0xff]   ;;  %v8855_v48 = vld [vmem:[#allocation5 + $0x13a8] ss:$16 sps:$4 sm:$0xff]  }
 0x306   :  { %5256 = vmatpush1.bf16.msra.mxu0 %v8768_v49  ;;  %5772 = vmatpush1.bf16.msra.mxu1 %v8771_v50  ;;  %v8860_v49 = vld [vmem:[#allocation5 + $0x13c4] ss:$16 sps:$4 sm:$0xff]   ;;  %v8863_v50 = vld [vmem:[#allocation5 + $0x13cc] ss:$16 sps:$4 sm:$0xff]  }
 0x307   :  { %5268 = vmatprep.subr.bf16.mxu0 %v8776_v53  ;;  %5784 = vmatprep.subr.bf16.mxu1 %v8779_v54  ;;  %v8866_v53 = vld [vmem:[#allocation5 + $0x13e4] ss:$16 sps:$4 sm:$0xff]   ;;  %v8869_v54 = vld [vmem:[#allocation5 + $0x13ec] ss:$16 sps:$4 sm:$0xff]  }
 0x309   :  { %5258 = vmatmul.mubr.bf16.vlgmr.msra.gmra.mrb[0].mxu0 %v243_v55  ;;  %5774 = vmatmul.mubr.bf16.vlgmr.msra.gmra.mrb[0].mxu1 %v243_v55  ;;  %v8864_v55 = vld [vmem:[#allocation5 + $0x13e0] ss:$16 sps:$4 sm:$0xff]  }
 0x30a   :  { %5269 = vmatpush1.bf16.msra.mxu0 %v8774_v58  ;;  %5785 = vmatpush1.bf16.msra.mxu1 %v8777_v59  ;;  %v221_v58 = vld [vmem:[#allocation2 + $0x150] sm:$0xff] }
 0x30b   :  { %5270 = vmatprep.subr.bf16.mxu0 %v8782_v60  ;;  %5786 = vmatprep.subr.bf16.mxu1 %v8785_v61  ;;  %v8872_v59 = vld [vmem:[#allocation5 + $0x1404] ss:$16 sps:$4 sm:$0xff]   ;;  %v8875_v60 = vld [vmem:[#allocation5 + $0x140c] ss:$16 sps:$4 sm:$0xff]   ;;  %v245_v61 = vpack.c.bf16 %v221_v58, %v197_v57  ;;  %v8954_v57 = vld [vmem:[#allocation5 + $0x15c0] ss:$16 sps:$4 sm:$0xff]  }
 0x30c   :  { %5300 = vmatprep.mubr.bf16.mxu0 %v246_v62  ;;  %5816 = vmatprep.mubr.bf16.mxu1 %v246_v62  ;;  %v200_v62 = vld [vmem:[#allocation2 + $0xa8] sm:$0xff] }
 0x30d   :  { %v8957_v58 = vld [vmem:[#allocation5 + $0x15c8] ss:$16 sps:$4 sm:$0xff]  }
 0x30e   :  { %5271 = vmatpush1.bf16.msra.mxu0 %v8780_v63  ;;  %5787 = vmatpush1.bf16.msra.mxu1 %v8783_v0  ;;  %v224_v63 = vld [vmem:[#allocation2 + $0x168] sm:$0xff]  ;;  %v8870_v0 = vld [vmem:[#allocation5 + $0x1400] ss:$16 sps:$4 sm:$0xff]  }
 0x30f   :  { %5272 = vmatprep.subr.bf16.mxu0 %v8788_v1  ;;  %5788 = vmatprep.subr.bf16.mxu1 %v8791_v2  ;;  %v8873_v1 = vld [vmem:[#allocation5 + $0x1408] ss:$16 sps:$4 sm:$0xff]   ;;  %v8878_v2 = vld [vmem:[#allocation5 + $0x1424] ss:$16 sps:$4 sm:$0xff]  }
 0x312   :  { %5273 = vmatpush1.bf16.msra.mxu0 %v8786_v3  ;;  %5789 = vmatpush1.bf16.msra.mxu1 %v8789_v4  ;;  %v8881_v3 = vld [vmem:[#allocation5 + $0x142c] ss:$16 sps:$4 sm:$0xff]   ;;  %v248_v4 = vpack.c.bf16 %v224_v63, %v200_v62  ;;  %v8963_v62 = vld [vmem:[#allocation5 + $0x15e8] ss:$16 sps:$4 sm:$0xff]   ;;  %v199_v63 = vld [vmem:[#allocation2 + $0xa0] sm:$0xff] }
 0x313   :  { %5274 = vmatprep.subr.bf16.mxu0 %v8794_v5  ;;  %5790 = vmatprep.subr.bf16.mxu1 %v8797_v6  ;;  %v8876_v5 = vld [vmem:[#allocation5 + $0x1420] ss:$16 sps:$4 sm:$0xff]   ;;  %v8879_v6 = vld [vmem:[#allocation5 + $0x1428] ss:$16 sps:$4 sm:$0xff]  }
 0x316   :  { %5275 = vmatpush1.bf16.msra.mxu0 %v8792_v7  ;;  %5791 = vmatpush1.bf16.msra.mxu1 %v8795_v8  ;;  %v8884_v7 = vld [vmem:[#allocation5 + $0x1444] ss:$16 sps:$4 sm:$0xff]   ;;  %v8887_v8 = vld [vmem:[#allocation5 + $0x144c] ss:$16 sps:$4 sm:$0xff]  }
 0x317   :  { %5276 = vmatprep.subr.bf16.mxu0 %v8800_v9  ;;  %5792 = vmatprep.subr.bf16.mxu1 %v8803_v10  ;;  %v8882_v9 = vld [vmem:[#allocation5 + $0x1440] ss:$16 sps:$4 sm:$0xff]   ;;  %v8885_v10 = vld [vmem:[#allocation5 + $0x1448] ss:$16 sps:$4 sm:$0xff]  }
 0x31a   :  { %5277 = vmatpush1.bf16.msra.mxu0 %v8798_v11  ;;  %5793 = vmatpush1.bf16.msra.mxu1 %v8801_v12  ;;  %v8890_v11 = vld [vmem:[#allocation5 + $0x1464] ss:$16 sps:$4 sm:$0xff]   ;;  %v8893_v12 = vld [vmem:[#allocation5 + $0x146c] ss:$16 sps:$4 sm:$0xff]  }
 0x31b   :  { %5278 = vmatprep.subr.bf16.mxu0 %v8806_v13  ;;  %5794 = vmatprep.subr.bf16.mxu1 %v8809_v14  ;;  %v8888_v13 = vld [vmem:[#allocation5 + $0x1460] ss:$16 sps:$4 sm:$0xff]   ;;  %v8891_v14 = vld [vmem:[#allocation5 + $0x1468] ss:$16 sps:$4 sm:$0xff]  }
 0x31e   :  { %5279 = vmatpush1.bf16.msra.mxu0 %v8804_v15  ;;  %5795 = vmatpush1.bf16.msra.mxu1 %v8807_v16  ;;  %v8896_v15 = vld [vmem:[#allocation5 + $0x1484] ss:$16 sps:$4 sm:$0xff]   ;;  %v8899_v16 = vld [vmem:[#allocation5 + $0x148c] ss:$16 sps:$4 sm:$0xff]  }
 0x31f   :  { %5280 = vmatprep.subr.bf16.mxu0 %v8812_v17  ;;  %5796 = vmatprep.subr.bf16.mxu1 %v8815_v18  ;;  %v8894_v17 = vld [vmem:[#allocation5 + $0x1480] ss:$16 sps:$4 sm:$0xff]   ;;  %v8897_v18 = vld [vmem:[#allocation5 + $0x1488] ss:$16 sps:$4 sm:$0xff]  }
 0x322   :  { %5281 = vmatpush1.bf16.msra.mxu0 %v8810_v19  ;;  %5797 = vmatpush1.bf16.msra.mxu1 %v8813_v20  ;;  %v8902_v19 = vld [vmem:[#allocation5 + $0x14a4] ss:$16 sps:$4 sm:$0xff]   ;;  %v8905_v20 = vld [vmem:[#allocation5 + $0x14ac] ss:$16 sps:$4 sm:$0xff]  }
 0x323   :  { %5282 = vmatprep.subr.bf16.mxu0 %v8818_v21  ;;  %5798 = vmatprep.subr.bf16.mxu1 %v8821_v22  ;;  %v8900_v21 = vld [vmem:[#allocation5 + $0x14a0] ss:$16 sps:$4 sm:$0xff]   ;;  %v8903_v22 = vld [vmem:[#allocation5 + $0x14a8] ss:$16 sps:$4 sm:$0xff]  }
 0x326   :  { %5283 = vmatpush1.bf16.msra.mxu0 %v8816_v23  ;;  %5799 = vmatpush1.bf16.msra.mxu1 %v8819_v24  ;;  %v8908_v23 = vld [vmem:[#allocation5 + $0x14c4] ss:$16 sps:$4 sm:$0xff]   ;;  %v8911_v24 = vld [vmem:[#allocation5 + $0x14cc] ss:$16 sps:$4 sm:$0xff]  }
 0x327   :  { %5284 = vmatprep.subr.bf16.mxu0 %v8824_v25  ;;  %5800 = vmatprep.subr.bf16.mxu1 %v8827_v26  ;;  %v8906_v25 = vld [vmem:[#allocation5 + $0x14c0] ss:$16 sps:$4 sm:$0xff]   ;;  %v8909_v26 = vld [vmem:[#allocation5 + $0x14c8] ss:$16 sps:$4 sm:$0xff]  }
 0x32a   :  { %5285 = vmatpush1.bf16.msra.mxu0 %v8822_v27  ;;  %5801 = vmatpush1.bf16.msra.mxu1 %v8825_v28  ;;  %v8914_v27 = vld [vmem:[#allocation5 + $0x14e4] ss:$16 sps:$4 sm:$0xff]   ;;  %v8917_v28 = vld [vmem:[#allocation5 + $0x14ec] ss:$16 sps:$4 sm:$0xff]  }
 0x32b   :  { %5286 = vmatprep.subr.bf16.mxu0 %v8830_v29  ;;  %5802 = vmatprep.subr.bf16.mxu1 %v8833_v30  ;;  %v8912_v29 = vld [vmem:[#allocation5 + $0x14e0] ss:$16 sps:$4 sm:$0xff]   ;;  %v8915_v30 = vld [vmem:[#allocation5 + $0x14e8] ss:$16 sps:$4 sm:$0xff]  }
 0x32e   :  { %5287 = vmatpush1.bf16.msra.mxu0 %v8828_v31  ;;  %5803 = vmatpush1.bf16.msra.mxu1 %v8831_v32  ;;  %v8920_v31 = vld [vmem:[#allocation5 + $0x1504] ss:$16 sps:$4 sm:$0xff]   ;;  %v8923_v32 = vld [vmem:[#allocation5 + $0x150c] ss:$16 sps:$4 sm:$0xff]  }
 0x32f   :  { %5288 = vmatprep.subr.bf16.mxu0 %v8836_v33  ;;  %5804 = vmatprep.subr.bf16.mxu1 %v8839_v34  ;;  %v8918_v33 = vld [vmem:[#allocation5 + $0x1500] ss:$16 sps:$4 sm:$0xff]   ;;  %v8921_v34 = vld [vmem:[#allocation5 + $0x1508] ss:$16 sps:$4 sm:$0xff]  }
 0x332   :  { %5289 = vmatpush1.bf16.msra.mxu0 %v8834_v35  ;;  %5805 = vmatpush1.bf16.msra.mxu1 %v8837_v36  ;;  %v8926_v35 = vld [vmem:[#allocation5 + $0x1524] ss:$16 sps:$4 sm:$0xff]   ;;  %v8929_v36 = vld [vmem:[#allocation5 + $0x152c] ss:$16 sps:$4 sm:$0xff]  }
 0x333   :  { %5290 = vmatprep.subr.bf16.mxu0 %v8842_v37  ;;  %5806 = vmatprep.subr.bf16.mxu1 %v8845_v38  ;;  %v8924_v37 = vld [vmem:[#allocation5 + $0x1520] ss:$16 sps:$4 sm:$0xff]   ;;  %v8927_v38 = vld [vmem:[#allocation5 + $0x1528] ss:$16 sps:$4 sm:$0xff]  }
 0x336   :  { %5291 = vmatpush1.bf16.msra.mxu0 %v8840_v39  ;;  %5807 = vmatpush1.bf16.msra.mxu1 %v8843_v40  ;;  %v8932_v39 = vld [vmem:[#allocation5 + $0x1544] ss:$16 sps:$4 sm:$0xff]   ;;  %v8935_v40 = vld [vmem:[#allocation5 + $0x154c] ss:$16 sps:$4 sm:$0xff]  }
 0x337   :  { %5292 = vmatprep.subr.bf16.mxu0 %v8848_v41  ;;  %5808 = vmatprep.subr.bf16.mxu1 %v8851_v42  ;;  %v8930_v41 = vld [vmem:[#allocation5 + $0x1540] ss:$16 sps:$4 sm:$0xff]   ;;  %v8933_v42 = vld [vmem:[#allocation5 + $0x1548] ss:$16 sps:$4 sm:$0xff]  }
 0x33a   :  { %5293 = vmatpush1.bf16.msra.mxu0 %v8846_v43  ;;  %5809 = vmatpush1.bf16.msra.mxu1 %v8849_v44  ;;  %v8938_v43 = vld [vmem:[#allocation5 + $0x1564] ss:$16 sps:$4 sm:$0xff]   ;;  %v8941_v44 = vld [vmem:[#allocation5 + $0x156c] ss:$16 sps:$4 sm:$0xff]  }
 0x33b   :  { %5294 = vmatprep.subr.bf16.mxu0 %v8854_v45  ;;  %5810 = vmatprep.subr.bf16.mxu1 %v8857_v46  ;;  %v8936_v45 = vld [vmem:[#allocation5 + $0x1560] ss:$16 sps:$4 sm:$0xff]   ;;  %v8939_v46 = vld [vmem:[#allocation5 + $0x1568] ss:$16 sps:$4 sm:$0xff]  }
 0x33e   :  { %5295 = vmatpush1.bf16.msra.mxu0 %v8852_v47  ;;  %5811 = vmatpush1.bf16.msra.mxu1 %v8855_v48  ;;  %v8944_v47 = vld [vmem:[#allocation5 + $0x1584] ss:$16 sps:$4 sm:$0xff]   ;;  %v8947_v48 = vld [vmem:[#allocation5 + $0x158c] ss:$16 sps:$4 sm:$0xff]  }
 0x33f   :  { %5296 = vmatprep.subr.bf16.mxu0 %v8860_v49  ;;  %5812 = vmatprep.subr.bf16.mxu1 %v8863_v50  ;;  %v8942_v49 = vld [vmem:[#allocation5 + $0x1580] ss:$16 sps:$4 sm:$0xff]   ;;  %v8945_v50 = vld [vmem:[#allocation5 + $0x1588] ss:$16 sps:$4 sm:$0xff]  }
 0x342   :  { %5297 = vmatpush1.bf16.msra.mxu0 %v8858_v51  ;;  %5813 = vmatpush1.bf16.msra.mxu1 %v8861_v52  ;;  %v8950_v51 = vld [vmem:[#allocation5 + $0x15a4] ss:$16 sps:$4 sm:$0xff]   ;;  %v8953_v52 = vld [vmem:[#allocation5 + $0x15ac] ss:$16 sps:$4 sm:$0xff]  }
 0x343   :  { %5298 = vmatprep.subr.bf16.mxu0 %v8866_v53  ;;  %5814 = vmatprep.subr.bf16.mxu1 %v8869_v54  ;;  %v8948_v53 = vld [vmem:[#allocation5 + $0x15a0] ss:$16 sps:$4 sm:$0xff]   ;;  %v8951_v54 = vld [vmem:[#allocation5 + $0x15a8] ss:$16 sps:$4 sm:$0xff]  }
 0x346   :  { %5299 = vmatpush1.bf16.msra.mxu0 %v8864_v55  ;;  %5815 = vmatpush1.bf16.msra.mxu1 %v8867_v56  ;;  %v8956_v55 = vld [vmem:[#allocation5 + $0x15c4] ss:$16 sps:$4 sm:$0xff]   ;;  %v8959_v56 = vld [vmem:[#allocation5 + $0x15cc] ss:$16 sps:$4 sm:$0xff]  }
 0x347   :  { %5311 = vmatprep.subr.bf16.mxu0 %v8872_v59  ;;  %5827 = vmatprep.subr.bf16.mxu1 %v8875_v60  ;;  %v8962_v59 = vld [vmem:[#allocation5 + $0x15e4] ss:$16 sps:$4 sm:$0xff]   ;;  %v8965_v60 = vld [vmem:[#allocation5 + $0x15ec] ss:$16 sps:$4 sm:$0xff]  }
 0x349   :  { %5301 = vmatmul.mubr.bf16.vlgmr.msra.gmra.mrb[0].mxu0 %v245_v61  ;;  %5817 = vmatmul.mubr.bf16.vlgmr.msra.gmra.mrb[0].mxu1 %v245_v61  ;;  %v8960_v61 = vld [vmem:[#allocation5 + $0x15e0] ss:$16 sps:$4 sm:$0xff]  }
 0x34a   :  { %5312 = vmatpush1.bf16.msra.mxu0 %v8870_v0  ;;  %5828 = vmatpush1.bf16.msra.mxu1 %v8873_v1  ;;  %v223_v0 = vld [vmem:[#allocation2 + $0x160] sm:$0xff] }
 0x34b   :  { %5313 = vmatprep.subr.bf16.mxu0 %v8878_v2  ;;  %5829 = vmatprep.subr.bf16.mxu1 %v8881_v3  ;;  %v8968_v1 = vld [vmem:[#allocation5 + $0x1604] ss:$16 sps:$4 sm:$0xff]   ;;  %v8971_v2 = vld [vmem:[#allocation5 + $0x160c] ss:$16 sps:$4 sm:$0xff]   ;;  %v247_v3 = vpack.c.bf16 %v223_v0, %v199_v63  ;;  %v9050_v63 = vld [vmem:[#allocation5 + $0x17c0] ss:$16 sps:$4 sm:$0xff]  }
 0x34c   :  { %5343 = vmatprep.mubr.bf16.mxu0 %v248_v4  ;;  %5859 = vmatprep.mubr.bf16.mxu1 %v248_v4  ;;  %v202_v4 = vld [vmem:[#allocation2 + $0xb8] sm:$0xff] }
 0x34d   :  { %v9053_v0 = vld [vmem:[#allocation5 + $0x17c8] ss:$16 sps:$4 sm:$0xff]  }
 0x34e   :  { %5314 = vmatpush1.bf16.msra.mxu0 %v8876_v5  ;;  %5830 = vmatpush1.bf16.msra.mxu1 %v8879_v6  ;;  %v226_v5 = vld [vmem:[#allocation2 + $0x178] sm:$0xff]  ;;  %v8966_v6 = vld [vmem:[#allocation5 + $0x1600] ss:$16 sps:$4 sm:$0xff]  }
 0x34f   :  { %5315 = vmatprep.subr.bf16.mxu0 %v8884_v7  ;;  %5831 = vmatprep.subr.bf16.mxu1 %v8887_v8  ;;  %v8969_v7 = vld [vmem:[#allocation5 + $0x1608] ss:$16 sps:$4 sm:$0xff]   ;;  %v8974_v8 = vld [vmem:[#allocation5 + $0x1624] ss:$16 sps:$4 sm:$0xff]  }
 0x352   :  { %5316 = vmatpush1.bf16.msra.mxu0 %v8882_v9  ;;  %5832 = vmatpush1.bf16.msra.mxu1 %v8885_v10  ;;  %v8977_v9 = vld [vmem:[#allocation5 + $0x162c] ss:$16 sps:$4 sm:$0xff]   ;;  %v250_v10 = vpack.c.bf16 %v226_v5, %v202_v4  ;;  %v9059_v4 = vld [vmem:[#allocation5 + $0x17e8] ss:$16 sps:$4 sm:$0xff]   ;;  %v201_v5 = vld [vmem:[#allocation2 + $0xb0] sm:$0xff] }
 0x353   :  { %5317 = vmatprep.subr.bf16.mxu0 %v8890_v11  ;;  %5833 = vmatprep.subr.bf16.mxu1 %v8893_v12  ;;  %v8972_v11 = vld [vmem:[#allocation5 + $0x1620] ss:$16 sps:$4 sm:$0xff]   ;;  %v8975_v12 = vld [vmem:[#allocation5 + $0x1628] ss:$16 sps:$4 sm:$0xff]  }
 0x356   :  { %5318 = vmatpush1.bf16.msra.mxu0 %v8888_v13  ;;  %5834 = vmatpush1.bf16.msra.mxu1 %v8891_v14  ;;  %v8980_v13 = vld [vmem:[#allocation5 + $0x1644] ss:$16 sps:$4 sm:$0xff]   ;;  %v8983_v14 = vld [vmem:[#allocation5 + $0x164c] ss:$16 sps:$4 sm:$0xff]  }
 0x357   :  { %5319 = vmatprep.subr.bf16.mxu0 %v8896_v15  ;;  %5835 = vmatprep.subr.bf16.mxu1 %v8899_v16  ;;  %v8978_v15 = vld [vmem:[#allocation5 + $0x1640] ss:$16 sps:$4 sm:$0xff]   ;;  %v8981_v16 = vld [vmem:[#allocation5 + $0x1648] ss:$16 sps:$4 sm:$0xff]  }
 0x35a   :  { %5320 = vmatpush1.bf16.msra.mxu0 %v8894_v17  ;;  %5836 = vmatpush1.bf16.msra.mxu1 %v8897_v18  ;;  %v8986_v17 = vld [vmem:[#allocation5 + $0x1664] ss:$16 sps:$4 sm:$0xff]   ;;  %v8989_v18 = vld [vmem:[#allocation5 + $0x166c] ss:$16 sps:$4 sm:$0xff]  }
 0x35b   :  { %5321 = vmatprep.subr.bf16.mxu0 %v8902_v19  ;;  %5837 = vmatprep.subr.bf16.mxu1 %v8905_v20  ;;  %v8984_v19 = vld [vmem:[#allocation5 + $0x1660] ss:$16 sps:$4 sm:$0xff]   ;;  %v8987_v20 = vld [vmem:[#allocation5 + $0x1668] ss:$16 sps:$4 sm:$0xff]  }
 0x35e   :  { %5322 = vmatpush1.bf16.msra.mxu0 %v8900_v21  ;;  %5838 = vmatpush1.bf16.msra.mxu1 %v8903_v22  ;;  %v8992_v21 = vld [vmem:[#allocation5 + $0x1684] ss:$16 sps:$4 sm:$0xff]   ;;  %v8995_v22 = vld [vmem:[#allocation5 + $0x168c] ss:$16 sps:$4 sm:$0xff]  }
 0x35f   :  { %5323 = vmatprep.subr.bf16.mxu0 %v8908_v23  ;;  %5839 = vmatprep.subr.bf16.mxu1 %v8911_v24  ;;  %v8990_v23 = vld [vmem:[#allocation5 + $0x1680] ss:$16 sps:$4 sm:$0xff]   ;;  %v8993_v24 = vld [vmem:[#allocation5 + $0x1688] ss:$16 sps:$4 sm:$0xff]  }
 0x362   :  { %5324 = vmatpush1.bf16.msra.mxu0 %v8906_v25  ;;  %5840 = vmatpush1.bf16.msra.mxu1 %v8909_v26  ;;  %v8998_v25 = vld [vmem:[#allocation5 + $0x16a4] ss:$16 sps:$4 sm:$0xff]   ;;  %v9001_v26 = vld [vmem:[#allocation5 + $0x16ac] ss:$16 sps:$4 sm:$0xff]  }
 0x363   :  { %5325 = vmatprep.subr.bf16.mxu0 %v8914_v27  ;;  %5841 = vmatprep.subr.bf16.mxu1 %v8917_v28  ;;  %v8996_v27 = vld [vmem:[#allocation5 + $0x16a0] ss:$16 sps:$4 sm:$0xff]   ;;  %v8999_v28 = vld [vmem:[#allocation5 + $0x16a8] ss:$16 sps:$4 sm:$0xff]  }
 0x366   :  { %5326 = vmatpush1.bf16.msra.mxu0 %v8912_v29  ;;  %5842 = vmatpush1.bf16.msra.mxu1 %v8915_v30  ;;  %v9004_v29 = vld [vmem:[#allocation5 + $0x16c4] ss:$16 sps:$4 sm:$0xff]   ;;  %v9007_v30 = vld [vmem:[#allocation5 + $0x16cc] ss:$16 sps:$4 sm:$0xff]  }
 0x367   :  { %5327 = vmatprep.subr.bf16.mxu0 %v8920_v31  ;;  %5843 = vmatprep.subr.bf16.mxu1 %v8923_v32  ;;  %v9002_v31 = vld [vmem:[#allocation5 + $0x16c0] ss:$16 sps:$4 sm:$0xff]   ;;  %v9005_v32 = vld [vmem:[#allocation5 + $0x16c8] ss:$16 sps:$4 sm:$0xff]  }
 0x36a   :  { %5328 = vmatpush1.bf16.msra.mxu0 %v8918_v33  ;;  %5844 = vmatpush1.bf16.msra.mxu1 %v8921_v34  ;;  %v9010_v33 = vld [vmem:[#allocation5 + $0x16e4] ss:$16 sps:$4 sm:$0xff]   ;;  %v9013_v34 = vld [vmem:[#allocation5 + $0x16ec] ss:$16 sps:$4 sm:$0xff]  }
 0x36b   :  { %5329 = vmatprep.subr.bf16.mxu0 %v8926_v35  ;;  %5845 = vmatprep.subr.bf16.mxu1 %v8929_v36  ;;  %v9008_v35 = vld [vmem:[#allocation5 + $0x16e0] ss:$16 sps:$4 sm:$0xff]   ;;  %v9011_v36 = vld [vmem:[#allocation5 + $0x16e8] ss:$16 sps:$4 sm:$0xff]  }
 0x36e   :  { %5330 = vmatpush1.bf16.msra.mxu0 %v8924_v37  ;;  %5846 = vmatpush1.bf16.msra.mxu1 %v8927_v38  ;;  %v9016_v37 = vld [vmem:[#allocation5 + $0x1704] ss:$16 sps:$4 sm:$0xff]   ;;  %v9019_v38 = vld [vmem:[#allocation5 + $0x170c] ss:$16 sps:$4 sm:$0xff]  }
 0x36f   :  { %5331 = vmatprep.subr.bf16.mxu0 %v8932_v39  ;;  %5847 = vmatprep.subr.bf16.mxu1 %v8935_v40  ;;  %v9014_v39 = vld [vmem:[#allocation5 + $0x1700] ss:$16 sps:$4 sm:$0xff]   ;;  %v9017_v40 = vld [vmem:[#allocation5 + $0x1708] ss:$16 sps:$4 sm:$0xff]  }
 0x372   :  { %5332 = vmatpush1.bf16.msra.mxu0 %v8930_v41  ;;  %5848 = vmatpush1.bf16.msra.mxu1 %v8933_v42  ;;  %v9022_v41 = vld [vmem:[#allocation5 + $0x1724] ss:$16 sps:$4 sm:$0xff]   ;;  %v9025_v42 = vld [vmem:[#allocation5 + $0x172c] ss:$16 sps:$4 sm:$0xff]  }
 0x373   :  { %5333 = vmatprep.subr.bf16.mxu0 %v8938_v43  ;;  %5849 = vmatprep.subr.bf16.mxu1 %v8941_v44  ;;  %v9020_v43 = vld [vmem:[#allocation5 + $0x1720] ss:$16 sps:$4 sm:$0xff]   ;;  %v9023_v44 = vld [vmem:[#allocation5 + $0x1728] ss:$16 sps:$4 sm:$0xff]  }
 0x376   :  { %5334 = vmatpush1.bf16.msra.mxu0 %v8936_v45  ;;  %5850 = vmatpush1.bf16.msra.mxu1 %v8939_v46  ;;  %v9028_v45 = vld [vmem:[#allocation5 + $0x1744] ss:$16 sps:$4 sm:$0xff]   ;;  %v9031_v46 = vld [vmem:[#allocation5 + $0x174c] ss:$16 sps:$4 sm:$0xff]  }
 0x377   :  { %5335 = vmatprep.subr.bf16.mxu0 %v8944_v47  ;;  %5851 = vmatprep.subr.bf16.mxu1 %v8947_v48  ;;  %v9026_v47 = vld [vmem:[#allocation5 + $0x1740] ss:$16 sps:$4 sm:$0xff]   ;;  %v9029_v48 = vld [vmem:[#allocation5 + $0x1748] ss:$16 sps:$4 sm:$0xff]  }
 0x37a   :  { %5336 = vmatpush1.bf16.msra.mxu0 %v8942_v49  ;;  %5852 = vmatpush1.bf16.msra.mxu1 %v8945_v50  ;;  %v9034_v49 = vld [vmem:[#allocation5 + $0x1764] ss:$16 sps:$4 sm:$0xff]   ;;  %v9037_v50 = vld [vmem:[#allocation5 + $0x176c] ss:$16 sps:$4 sm:$0xff]  }
 0x37b   :  { %5337 = vmatprep.subr.bf16.mxu0 %v8950_v51  ;;  %5853 = vmatprep.subr.bf16.mxu1 %v8953_v52  ;;  %v9032_v51 = vld [vmem:[#allocation5 + $0x1760] ss:$16 sps:$4 sm:$0xff]   ;;  %v9035_v52 = vld [vmem:[#allocation5 + $0x1768] ss:$16 sps:$4 sm:$0xff]  }
 0x37e   :  { %5338 = vmatpush1.bf16.msra.mxu0 %v8948_v53  ;;  %5854 = vmatpush1.bf16.msra.mxu1 %v8951_v54  ;;  %v9040_v53 = vld [vmem:[#allocation5 + $0x1784] ss:$16 sps:$4 sm:$0xff]   ;;  %v9043_v54 = vld [vmem:[#allocation5 + $0x178c] ss:$16 sps:$4 sm:$0xff]  }
 0x37f   :  { %5339 = vmatprep.subr.bf16.mxu0 %v8956_v55  ;;  %5855 = vmatprep.subr.bf16.mxu1 %v8959_v56  ;;  %v9038_v55 = vld [vmem:[#allocation5 + $0x1780] ss:$16 sps:$4 sm:$0xff]   ;;  %v9041_v56 = vld [vmem:[#allocation5 + $0x1788] ss:$16 sps:$4 sm:$0xff]  }
 0x382   :  { %5340 = vmatpush1.bf16.msra.mxu0 %v8954_v57  ;;  %5856 = vmatpush1.bf16.msra.mxu1 %v8957_v58  ;;  %v9046_v57 = vld [vmem:[#allocation5 + $0x17a4] ss:$16 sps:$4 sm:$0xff]   ;;  %v9049_v58 = vld [vmem:[#allocation5 + $0x17ac] ss:$16 sps:$4 sm:$0xff]  }
 0x383   :  { %5341 = vmatprep.subr.bf16.mxu0 %v8962_v59  ;;  %5857 = vmatprep.subr.bf16.mxu1 %v8965_v60  ;;  %v9044_v59 = vld [vmem:[#allocation5 + $0x17a0] ss:$16 sps:$4 sm:$0xff]   ;;  %v9047_v60 = vld [vmem:[#allocation5 + $0x17a8] ss:$16 sps:$4 sm:$0xff]  }
 0x386   :  { %5342 = vmatpush1.bf16.msra.mxu0 %v8960_v61  ;;  %5858 = vmatpush1.bf16.msra.mxu1 %v8963_v62  ;;  %v9052_v61 = vld [vmem:[#allocation5 + $0x17c4] ss:$16 sps:$4 sm:$0xff]   ;;  %v9055_v62 = vld [vmem:[#allocation5 + $0x17cc] ss:$16 sps:$4 sm:$0xff]  }
 0x387   :  { %5354 = vmatprep.subr.bf16.mxu0 %v8968_v1  ;;  %5870 = vmatprep.subr.bf16.mxu1 %v8971_v2  ;;  %v9058_v1 = vld [vmem:[#allocation5 + $0x17e4] ss:$16 sps:$4 sm:$0xff]   ;;  %v9061_v2 = vld [vmem:[#allocation5 + $0x17ec] ss:$16 sps:$4 sm:$0xff]  }
 0x389   :  { %5344 = vmatmul.mubr.bf16.vlgmr.msra.gmra.mrb[0].mxu0 %v247_v3  ;;  %5860 = vmatmul.mubr.bf16.vlgmr.msra.gmra.mrb[0].mxu1 %v247_v3  ;;  %v9056_v3 = vld [vmem:[#allocation5 + $0x17e0] ss:$16 sps:$4 sm:$0xff]  }
 0x38a   :  { %5355 = vmatpush1.bf16.msra.mxu0 %v8966_v6  ;;  %5871 = vmatpush1.bf16.msra.mxu1 %v8969_v7  ;;  %v225_v6 = vld [vmem:[#allocation2 + $0x170] sm:$0xff] }
 0x38b   :  { %5356 = vmatprep.subr.bf16.mxu0 %v8974_v8  ;;  %5872 = vmatprep.subr.bf16.mxu1 %v8977_v9  ;;  %v9064_v7 = vld [vmem:[#allocation8 + $0x4] ss:$8 sps:$4 sm:$0xff]   ;;  %v249_v8 = vpack.c.bf16 %v225_v6, %v201_v5  ;;  %v9062_v9 = vld [vmem:[#allocation8] ss:$8 sps:$4 sm:$0xff]  }
 0x38c   :  { %5386 = vmatprep.mubr.bf16.mxu0 %v250_v10  ;;  %5902 = vmatprep.mubr.bf16.mxu1 %v250_v10  ;;  %v9067_v10 = vld [vmem:[#allocation8 + $0x14] ss:$8 sps:$4 sm:$0xff]  }
 0x38e   :  { %5357 = vmatpush1.bf16.msra.mxu0 %v8972_v11  ;;  %5873 = vmatpush1.bf16.msra.mxu1 %v8975_v12  ;;  %v9065_v11 = vld [vmem:[#allocation8 + $0x10] ss:$8 sps:$4 sm:$0xff]   ;;  %v9070_v12 = vld [vmem:[#allocation8 + $0x24] ss:$8 sps:$4 sm:$0xff]  }
 0x38f   :  { %5358 = vmatprep.subr.bf16.mxu0 %v8980_v13  ;;  %5874 = vmatprep.subr.bf16.mxu1 %v8983_v14  ;;  %v9068_v13 = vld [vmem:[#allocation8 + $0x20] ss:$8 sps:$4 sm:$0xff]   ;;  %v9073_v14 = vld [vmem:[#allocation8 + $0x34] ss:$8 sps:$4 sm:$0xff]  }
 0x392   :  { %5359 = vmatpush1.bf16.msra.mxu0 %v8978_v15  ;;  %5875 = vmatpush1.bf16.msra.mxu1 %v8981_v16  ;;  %v9071_v15 = vld [vmem:[#allocation8 + $0x30] ss:$8 sps:$4 sm:$0xff]   ;;  %v9076_v16 = vld [vmem:[#allocation8 + $0x44] ss:$8 sps:$4 sm:$0xff]  }
 0x393   :  { %5360 = vmatprep.subr.bf16.mxu0 %v8986_v17  ;;  %5876 = vmatprep.subr.bf16.mxu1 %v8989_v18  ;;  %v9074_v17 = vld [vmem:[#allocation8 + $0x40] ss:$8 sps:$4 sm:$0xff]   ;;  %v9079_v18 = vld [vmem:[#allocation8 + $0x54] ss:$8 sps:$4 sm:$0xff]  }
 0x396   :  { %5361 = vmatpush1.bf16.msra.mxu0 %v8984_v19  ;;  %5877 = vmatpush1.bf16.msra.mxu1 %v8987_v20  ;;  %v9077_v19 = vld [vmem:[#allocation8 + $0x50] ss:$8 sps:$4 sm:$0xff]   ;;  %v9082_v20 = vld [vmem:[#allocation8 + $0x64] ss:$8 sps:$4 sm:$0xff]  }
 0x397   :  { %5362 = vmatprep.subr.bf16.mxu0 %v8992_v21  ;;  %5878 = vmatprep.subr.bf16.mxu1 %v8995_v22  ;;  %v9080_v21 = vld [vmem:[#allocation8 + $0x60] ss:$8 sps:$4 sm:$0xff]   ;;  %v9085_v22 = vld [vmem:[#allocation8 + $0x74] ss:$8 sps:$4 sm:$0xff]  }
 0x39a   :  { %5363 = vmatpush1.bf16.msra.mxu0 %v8990_v23  ;;  %5879 = vmatpush1.bf16.msra.mxu1 %v8993_v24  ;;  %v9083_v23 = vld [vmem:[#allocation8 + $0x70] ss:$8 sps:$4 sm:$0xff]   ;;  %v9088_v24 = vld [vmem:[#allocation8 + $0x84] ss:$8 sps:$4 sm:$0xff]  }
 0x39b   :  { %5364 = vmatprep.subr.bf16.mxu0 %v8998_v25  ;;  %5880 = vmatprep.subr.bf16.mxu1 %v9001_v26  ;;  %v9086_v25 = vld [vmem:[#allocation8 + $0x80] ss:$8 sps:$4 sm:$0xff]   ;;  %v9091_v26 = vld [vmem:[#allocation8 + $0x94] ss:$8 sps:$4 sm:$0xff]  }
 0x39e   :  { %5365 = vmatpush1.bf16.msra.mxu0 %v8996_v27  ;;  %5881 = vmatpush1.bf16.msra.mxu1 %v8999_v28  ;;  %v9089_v27 = vld [vmem:[#allocation8 + $0x90] ss:$8 sps:$4 sm:$0xff]   ;;  %v9094_v28 = vld [vmem:[#allocation8 + $0xa4] ss:$8 sps:$4 sm:$0xff]  }
 0x39f   :  { %5366 = vmatprep.subr.bf16.mxu0 %v9004_v29  ;;  %5882 = vmatprep.subr.bf16.mxu1 %v9007_v30  ;;  %v9092_v29 = vld [vmem:[#allocation8 + $0xa0] ss:$8 sps:$4 sm:$0xff]   ;;  %v9097_v30 = vld [vmem:[#allocation8 + $0xb4] ss:$8 sps:$4 sm:$0xff]  }
 0x3a2   :  { %5367 = vmatpush1.bf16.msra.mxu0 %v9002_v31  ;;  %5883 = vmatpush1.bf16.msra.mxu1 %v9005_v32  ;;  %v9095_v31 = vld [vmem:[#allocation8 + $0xb0] ss:$8 sps:$4 sm:$0xff]   ;;  %v9100_v32 = vld [vmem:[#allocation8 + $0xc4] ss:$8 sps:$4 sm:$0xff]  }
 0x3a3   :  { %5368 = vmatprep.subr.bf16.mxu0 %v9010_v33  ;;  %5884 = vmatprep.subr.bf16.mxu1 %v9013_v34  ;;  %v9098_v33 = vld [vmem:[#allocation8 + $0xc0] ss:$8 sps:$4 sm:$0xff]   ;;  %v9103_v34 = vld [vmem:[#allocation8 + $0xd4] ss:$8 sps:$4 sm:$0xff]  }
 0x3a6   :  { %5369 = vmatpush1.bf16.msra.mxu0 %v9008_v35  ;;  %5885 = vmatpush1.bf16.msra.mxu1 %v9011_v36  ;;  %v9101_v35 = vld [vmem:[#allocation8 + $0xd0] ss:$8 sps:$4 sm:$0xff]   ;;  %v9106_v36 = vld [vmem:[#allocation8 + $0xe4] ss:$8 sps:$4 sm:$0xff]  }
 0x3a7   :  { %5370 = vmatprep.subr.bf16.mxu0 %v9016_v37  ;;  %5886 = vmatprep.subr.bf16.mxu1 %v9019_v38  ;;  %v9104_v37 = vld [vmem:[#allocation8 + $0xe0] ss:$8 sps:$4 sm:$0xff]   ;;  %v9109_v38 = vld [vmem:[#allocation8 + $0xf4] ss:$8 sps:$4 sm:$0xff]  }
 0x3aa   :  { %5371 = vmatpush1.bf16.msra.mxu0 %v9014_v39  ;;  %5887 = vmatpush1.bf16.msra.mxu1 %v9017_v40  ;;  %v9107_v39 = vld [vmem:[#allocation8 + $0xf0] ss:$8 sps:$4 sm:$0xff]   ;;  %v9112_v40 = vld [vmem:[#allocation8 + $0x104] ss:$8 sps:$4 sm:$0xff]  }
 0x3ab   :  { %5372 = vmatprep.subr.bf16.mxu0 %v9022_v41  ;;  %5888 = vmatprep.subr.bf16.mxu1 %v9025_v42  ;;  %v9158_v41 = vld [vmem:[#allocation11 + $0x40] sm:$0xff]  }
 0x3ac   :  { %v9159_v42 = vld [vmem:[#allocation11] sm:$0xff]  }
 0x3ae   :  { %5373 = vmatpush1.bf16.msra.mxu0 %v9020_v43  ;;  %5889 = vmatpush1.bf16.msra.mxu1 %v9023_v44  ;;  %v9160_v43 = vld [vmem:[#allocation11 + $0x48] sm:$0xff]  }
 0x3af   :  { %5374 = vmatprep.subr.bf16.mxu0 %v9028_v45  ;;  %5890 = vmatprep.subr.bf16.mxu1 %v9031_v46  ;;  %v9161_v44 = vld [vmem:[#allocation11 + $0x8] sm:$0xff]   ;;  %v9162_v45 = vld [vmem:[#allocation11 + $0x50] sm:$0xff]  }
 0x3b0   :  { %v9163_v46 = vld [vmem:[#allocation11 + $0x10] sm:$0xff]  }
 0x3b2   :  { %5375 = vmatpush1.bf16.msra.mxu0 %v9026_v47  ;;  %5891 = vmatpush1.bf16.msra.mxu1 %v9029_v48  ;;  %v9164_v47 = vld [vmem:[#allocation11 + $0x58] sm:$0xff]  }
 0x3b3   :  { %5376 = vmatprep.subr.bf16.mxu0 %v9034_v49  ;;  %5892 = vmatprep.subr.bf16.mxu1 %v9037_v50  ;;  %v9165_v48 = vld [vmem:[#allocation11 + $0x18] sm:$0xff]   ;;  %v9166_v49 = vld [vmem:[#allocation11 + $0x60] sm:$0xff]  }
 0x3b4   :  { %v9167_v50 = vld [vmem:[#allocation11 + $0x20] sm:$0xff]  }
 0x3b6   :  { %5377 = vmatpush1.bf16.msra.mxu0 %v9032_v51  ;;  %5893 = vmatpush1.bf16.msra.mxu1 %v9035_v52  ;;  %v9168_v51 = vld [vmem:[#allocation11 + $0x68] sm:$0xff]   ;;  %v1021_v52 = vlaneseq }
 0x3b7   :  { %5378 = vmatprep.subr.bf16.mxu0 %v9040_v53  ;;  %5894 = vmatprep.subr.bf16.mxu1 %v9043_v54 }
 0x3b8   :  { %v9694_v53 = vshrl.u32 %v1021_v52, 7  ;;  %v9171_v52 = vld [vmem:[#allocation11 + $0x30] sm:$0xff]  }
 0x3ba   :  { %5379 = vmatpush1.bf16.msra.mxu0 %v9038_v55  ;;  %5895 = vmatpush1.bf16.msra.mxu1 %v9041_v56  ;;  %v1023_v54 = vsub.s32 0, %v9694_v53  ;;  %v1031_v55 = vsub.s32 2, %v9694_v53  ;;  %v1019_v56 = vld [vmem:[#allocation7] sm:$0xf] }
 0x3bb   :  { %5380 = vmatprep.subr.bf16.mxu0 %v9046_v57  ;;  %5896 = vmatprep.subr.bf16.mxu1 %v9049_v58  ;;  %v1027_v57 = vsub.s32 1, %v9694_v53  ;;  %v1035_v58 = vsub.s32 3, %v9694_v53  ;;  %v9175_v53 = vld [vmem:[#allocation14 + $0x8] sm:$0xff]  }
 0x3be   :  { %5381 = vmatpush1.bf16.msra.mxu0 %v9044_v59  ;;  %5897 = vmatpush1.bf16.msra.mxu1 %v9047_v60  ;;  %v1024_v59 = vrot.slane %v1019_v56, %v1023_v54  ;;  %v1032_v60 = vrot.slane %v1019_v56, %v1031_v55  ;;  %v9172_v55 = vld [vmem:[#allocation11 + $0x78] sm:$0xff]  }
 0x3bf   :  { %5382 = vmatprep.subr.bf16.mxu0 %v9052_v61  ;;  %5898 = vmatprep.subr.bf16.mxu1 %v9055_v62 }
 0x3c2   :  { %5383 = vmatpush1.bf16.msra.mxu0 %v9050_v63  ;;  %5899 = vmatpush1.bf16.msra.mxu1 %v9053_v0  ;;  %v1028_v63 = vrot.slane %v1019_v56, %v1027_v57  ;;  %v1036_v0 = vrot.slane %v1019_v56, %v1035_v58  ;;  %v9173_v56 = vld [vmem:[#allocation11 + $0x38] sm:$0xff]   ;;  %v9487_v58 = vmov 0.0  }
 0x3c3   :  { %5384 = vmatprep.subr.bf16.mxu0 %v9058_v1  ;;  %5900 = vmatprep.subr.bf16.mxu1 %v9061_v2 }
 0x3c6   :  { %5385 = vmatpush1.bf16.msra.mxu0 %v9056_v3  ;;  %5901 = vmatpush1.bf16.msra.mxu1 %v9059_v4 }
 0x3c7   :  { %6313 = vmatprep.subr.bf16.mxu0 %v9064_v7  ;;  %7704 = vmatprep.subr.bf16.mxu1 %v9158_v41  ;;  %v9143_v41 = vld [vmem:[#allocation8 + $0x1b0] ss:$8 sps:$4 sm:$0xff]  }
 0x3c9   :  { %5387 = vmatmul.mubr.bf16.vlgmr.msra.gmra.mrb[0].mxu0 %v249_v8  ;;  %5903 = vmatmul.mubr.bf16.vlgmr.msra.gmra.mrb[0].mxu1 %v249_v8 }
 0x3ca   :  { %6314 = vmatpush1.bf16.msra.mxu0 %v9062_v9  ;;  %7705 = vmatpush3.bf16.msra.mxu1 %v9159_v42  ;;  %v9148_v42 = vld [vmem:[#allocation8 + $0x1c4] ss:$8 sps:$4 sm:$0xff]  }
 0x3cb   :  { %6315 = vmatprep.subr.bf16.mxu0 %v9067_v10  ;;  %7706 = vmatprep.subr.bf16.mxu1 %v9160_v43  ;;  %v9146_v43 = vld [vmem:[#allocation8 + $0x1c0] ss:$8 sps:$4 sm:$0xff]  }
 0x3ce   :  { %6316 = vmatpush1.bf16.msra.mxu0 %v9065_v11  ;;  %7707 = vmatpush3.bf16.msra.mxu1 %v9161_v44  ;;  %v9151_v44 = vld [vmem:[#allocation8 + $0x1d4] ss:$8 sps:$4 sm:$0xff]  }
 0x3cf   :  { %6317 = vmatprep.subr.bf16.mxu0 %v9070_v12  ;;  %7708 = vmatprep.subr.bf16.mxu1 %v9162_v45  ;;  %v9149_v45 = vld [vmem:[#allocation8 + $0x1d0] ss:$8 sps:$4 sm:$0xff]  }
 0x3d2   :  { %6318 = vmatpush1.bf16.msra.mxu0 %v9068_v13  ;;  %7709 = vmatpush3.bf16.msra.mxu1 %v9163_v46  ;;  %v9154_v46 = vld [vmem:[#allocation8 + $0x1e4] ss:$8 sps:$4 sm:$0xff]  }
 0x3d3   :  { %6319 = vmatprep.subr.bf16.mxu0 %v9073_v14  ;;  %7710 = vmatprep.subr.bf16.mxu1 %v9164_v47  ;;  %v9152_v47 = vld [vmem:[#allocation8 + $0x1e0] ss:$8 sps:$4 sm:$0xff]  }
 0x3d6   :  { %6320 = vmatpush1.bf16.msra.mxu0 %v9071_v15  ;;  %7711 = vmatpush3.bf16.msra.mxu1 %v9165_v48  ;;  %v9157_v48 = vld [vmem:[#allocation8 + $0x1f4] ss:$8 sps:$4 sm:$0xff]  }
 0x3d7   :  { %6321 = vmatprep.subr.bf16.mxu0 %v9076_v16  ;;  %7712 = vmatprep.subr.bf16.mxu1 %v9166_v49  ;;  %v9155_v49 = vld [vmem:[#allocation8 + $0x1f0] ss:$8 sps:$4 sm:$0xff]  }
 0x3da   :  { %6322 = vmatpush1.bf16.msra.mxu0 %v9074_v17  ;;  %7713 = vmatpush3.bf16.msra.mxu1 %v9167_v50  ;;  %v9169_v50 = vld [vmem:[#allocation11 + $0x28] sm:$0xff]  }
 0x3db   :  { %6323 = vmatprep.subr.bf16.mxu0 %v9079_v18  ;;  %7714 = vmatprep.subr.bf16.mxu1 %v9168_v51  ;;  %v9170_v51 = vld [vmem:[#allocation11 + $0x70] sm:$0xff]  }
 0x3de   :  { %6324 = vmatpush1.bf16.msra.mxu0 %v9077_v19  ;;  %v9110_v19 = vld [vmem:[#allocation8 + $0x100] ss:$8 sps:$4 sm:$0xff]   ;;  %7715 = vmatpush3.bf16.msra.mxu1 %v9169_v50 }
 0x3df   :  { %6325 = vmatprep.subr.bf16.mxu0 %v9082_v20  ;;  %v9115_v20 = vld [vmem:[#allocation8 + $0x114] ss:$8 sps:$4 sm:$0xff]   ;;  %7716 = vmatprep.subr.bf16.mxu1 %v9170_v51 }
 0x3e2   :  { %6326 = vmatpush1.bf16.msra.mxu0 %v9080_v21  ;;  %v9113_v21 = vld [vmem:[#allocation8 + $0x110] ss:$8 sps:$4 sm:$0xff]   ;;  %7717 = vmatpush3.bf16.msra.mxu1 %v9171_v52 }
 0x3e3   :  { %6327 = vmatprep.subr.bf16.mxu0 %v9085_v22  ;;  %v9118_v22 = vld [vmem:[#allocation8 + $0x124] ss:$8 sps:$4 sm:$0xff]   ;;  %7718 = vmatprep.subr.bf16.mxu1 %v9172_v55 }
 0x3e6   :  { %6328 = vmatpush1.bf16.msra.mxu0 %v9083_v23  ;;  %v9116_v23 = vld [vmem:[#allocation8 + $0x120] ss:$8 sps:$4 sm:$0xff]   ;;  %7719 = vmatpush3.bf16.msra.mxu1 %v9173_v56 }
 0x3e7   :  { %6329 = vmatprep.subr.bf16.mxu0 %v9088_v24  ;;  %v9121_v24 = vld [vmem:[#allocation8 + $0x134] ss:$8 sps:$4 sm:$0xff]   ;;  %7744 = vmatprep.subr.bf16.mxu1 %v9487_v58 }
 0x3ea   :  { %6330 = vmatpush1.bf16.msra.mxu0 %v9086_v25  ;;  %v9119_v25 = vld [vmem:[#allocation8 + $0x130] ss:$8 sps:$4 sm:$0xff]  }
 0x3eb   :  { %6331 = vmatprep.subr.bf16.mxu0 %v9091_v26  ;;  %v9124_v26 = vld [vmem:[#allocation8 + $0x144] ss:$8 sps:$4 sm:$0xff]  }
 0x3ee   :  { %6332 = vmatpush1.bf16.msra.mxu0 %v9089_v27  ;;  %v9122_v27 = vld [vmem:[#allocation8 + $0x140] ss:$8 sps:$4 sm:$0xff]  }
 0x3ef   :  { %6333 = vmatprep.subr.bf16.mxu0 %v9094_v28  ;;  %v9127_v28 = vld [vmem:[#allocation8 + $0x154] ss:$8 sps:$4 sm:$0xff]  }
 0x3f2   :  { %6334 = vmatpush1.bf16.msra.mxu0 %v9092_v29  ;;  %v9125_v29 = vld [vmem:[#allocation8 + $0x150] ss:$8 sps:$4 sm:$0xff]  }
 0x3f3   :  { %6335 = vmatprep.subr.bf16.mxu0 %v9097_v30  ;;  %v9130_v30 = vld [vmem:[#allocation8 + $0x164] ss:$8 sps:$4 sm:$0xff]  }
 0x3f6   :  { %6336 = vmatpush1.bf16.msra.mxu0 %v9095_v31  ;;  %v9128_v31 = vld [vmem:[#allocation8 + $0x160] ss:$8 sps:$4 sm:$0xff]  }
 0x3f7   :  { %6337 = vmatprep.subr.bf16.mxu0 %v9100_v32  ;;  %v9133_v32 = vld [vmem:[#allocation8 + $0x174] ss:$8 sps:$4 sm:$0xff]  }
 0x3fa   :  { %6338 = vmatpush1.bf16.msra.mxu0 %v9098_v33  ;;  %v9131_v33 = vld [vmem:[#allocation8 + $0x170] ss:$8 sps:$4 sm:$0xff]  }
 0x3fb   :  { %6339 = vmatprep.subr.bf16.mxu0 %v9103_v34  ;;  %v9136_v34 = vld [vmem:[#allocation8 + $0x184] ss:$8 sps:$4 sm:$0xff]  }
 0x3fe   :  { %6340 = vmatpush1.bf16.msra.mxu0 %v9101_v35  ;;  %v9134_v35 = vld [vmem:[#allocation8 + $0x180] ss:$8 sps:$4 sm:$0xff]  }
 0x3ff   :  { %6341 = vmatprep.subr.bf16.mxu0 %v9106_v36  ;;  %v9139_v36 = vld [vmem:[#allocation8 + $0x194] ss:$8 sps:$4 sm:$0xff]  }
 0x402   :  { %6342 = vmatpush1.bf16.msra.mxu0 %v9104_v37  ;;  %v9137_v37 = vld [vmem:[#allocation8 + $0x190] ss:$8 sps:$4 sm:$0xff]  }
 0x403   :  { %6343 = vmatprep.subr.bf16.mxu0 %v9109_v38  ;;  %v9142_v38 = vld [vmem:[#allocation8 + $0x1a4] ss:$8 sps:$4 sm:$0xff]  }
 0x406   :  { %6344 = vmatpush1.bf16.msra.mxu0 %v9107_v39  ;;  %v9140_v39 = vld [vmem:[#allocation8 + $0x1a0] ss:$8 sps:$4 sm:$0xff]  }
 0x407   :  { %6356 = vmatprep.subr.bf16.mxu0 %v9112_v40  ;;  %v9145_v40 = vld [vmem:[#allocation8 + $0x1b4] ss:$8 sps:$4 sm:$0xff]  }
 0x49c   :  { %v5388_v61 = vpop.f32.mrb[0].mxu0  ;;  %v5904_v62 = vpop.f32.mrb[0].mxu1 }
 0x49d   :  { %v5390_v1 = vpop.f32.mrb[1].mxu0  ;;  %v5906_v2 = vpop.f32.mrb[1].mxu1  ;;  %v7784_v5 = vadd.f32 %v5388_v61, %v1024_v59  ;;  %v9704_v6 = vadd.f32 %v5904_v62, %v1032_v60 }
 0x49e   :  { %v5392_v3 = vpop.f32.mrb[2].mxu0  ;;  %v5908_v4 = vpop.f32.mrb[2].mxu1  ;;  %v7785_v11 = vadd.f32 %v5390_v1, %v1028_v63  ;;  %v7789_v12 = vadd.f32 %v5906_v2, %v1036_v0 }
 0x49f   :  { %v7786_v7 = vadd.f32 %v5392_v3, %v1024_v59  ;;  %v9706_v8 = vadd.f32 %v5908_v4, %v1032_v60  ;;  %v5394_v9 = vpop.f32.mrb[3].mxu0  ;;  %v5910_v10 = vpop.f32.mrb[3].mxu1  ;;  %v5981_v59 = vld [vmem:[#allocation10] sm:$0x3] }
 0x4a0   :  { %v7787_v13 = vadd.f32 %v5394_v9, %v1028_v63  ;;  %v7791_v14 = vadd.f32 %v5910_v10, %v1036_v0  ;;  %v5986_v60 = vrot.slane %v5981_v59, %v1023_v54  ;;  %v5990_v61 = vrot.slane %v5981_v59, %v1027_v57  ;;  %v9176_v54 = vld [vmem:[#allocation14 + $0x10] sm:$0xff]   ;;  %v9177_v57 = vld [vmem:[#allocation14 + $0x18] sm:$0xff]  }
 0x4a1   :  { %v5913_v15 = vpack.c.bf16 %v7786_v7, %v7784_v5  ;;  %v5915_v16 = vpack.c.bf16 %v9706_v8, %v9704_v6 }
 0x4a2   :  { %v5914_v17 = vpack.c.bf16 %v7787_v13, %v7785_v11  ;;  %v5916_v18 = vpack.c.bf16 %v7791_v14, %v7789_v12  ;;  %v9174_v12 = vld [vmem:[#allocation14] sm:$0xff]   ;;  %v9179_v14 = vld [vmem:[#allocation14 + $0x28] sm:$0xff]  }
 0x4a3   :  { %v9178_v13 = vld [vmem:[#allocation14 + $0x20] sm:$0xff]  }
 0x4a4   :  { %6345 = vmatprep.mubr.bf16.mxu0 %v5914_v17 }
 0x4a5   :  { %6346 = vmatmul.mubr.bf16.vlgmr.msra.gmra.mrb[4].mxu0 %v5913_v15  ;;  %v9180_v15 = vld [vmem:[#allocation14 + $0x30] sm:$0xff]  }
 0x4a6   :  { %6357 = vmatpush1.bf16.msra.mxu0 %v9110_v19  ;;  %6388 = vmatprep.mubr.bf16.mxu0 %v5916_v18  ;;  %v7669_v18 = vld [vmem:[#allocation13] ss:$0 sm:$0xff] }
 0x4a7   :  { %6358 = vmatprep.subr.bf16.mxu0 %v9115_v20 }
 0x4aa   :  { %6359 = vmatpush1.bf16.msra.mxu0 %v9113_v21 }
 0x4ab   :  { %6360 = vmatprep.subr.bf16.mxu0 %v9118_v22 }
 0x4ae   :  { %6361 = vmatpush1.bf16.msra.mxu0 %v9116_v23 }
 0x4af   :  { %6362 = vmatprep.subr.bf16.mxu0 %v9121_v24 }
 0x4b2   :  { %6363 = vmatpush1.bf16.msra.mxu0 %v9119_v25 }
 0x4b3   :  { %6364 = vmatprep.subr.bf16.mxu0 %v9124_v26 }
 0x4b6   :  { %6365 = vmatpush1.bf16.msra.mxu0 %v9122_v27 }
 0x4b7   :  { %6366 = vmatprep.subr.bf16.mxu0 %v9127_v28  ;;  %v9182_v28 = vld [vmem:[#allocation17] sm:$0xff]  }
 0x4ba   :  { %6367 = vmatpush1.bf16.msra.mxu0 %v9125_v29 }
 0x4bb   :  { %6368 = vmatprep.subr.bf16.mxu0 %v9130_v30  ;;  %v9183_v30 = vld [vmem:[#allocation17 + $0x8] sm:$0xff]  }
 0x4be   :  { %6369 = vmatpush1.bf16.msra.mxu0 %v9128_v31  ;;  %v9184_v31 = vld [vmem:[#allocation17 + $0x10] sm:$0xff]  }
 0x4bf   :  { %6370 = vmatprep.subr.bf16.mxu0 %v9133_v32  ;;  %v9185_v32 = vld [vmem:[#allocation17 + $0x18] sm:$0xff]  }
 0x4c2   :  { %6371 = vmatpush1.bf16.msra.mxu0 %v9131_v33  ;;  %v9186_v33 = vld [vmem:[#allocation17 + $0x20] sm:$0xff]  }
 0x4c3   :  { %6372 = vmatprep.subr.bf16.mxu0 %v9136_v34  ;;  %v9187_v34 = vld [vmem:[#allocation17 + $0x28] sm:$0xff]  }
 0x4c6   :  { %6373 = vmatpush1.bf16.msra.mxu0 %v9134_v35  ;;  %v9188_v35 = vld [vmem:[#allocation17 + $0x30] sm:$0xff]  }
 0x4c7   :  { %6374 = vmatprep.subr.bf16.mxu0 %v9139_v36  ;;  %v9189_v36 = vld [vmem:[#allocation17 + $0x38] sm:$0xff]  }
 0x4ca   :  { %6375 = vmatpush1.bf16.msra.mxu0 %v9137_v37  ;;  %v7686_v37 = vld [vmem:[#allocation16] ss:$0 sm:$0xff] }
 0x4cb   :  { %6376 = vmatprep.subr.bf16.mxu0 %v9142_v38 }
 0x4ce   :  { %6377 = vmatpush1.bf16.msra.mxu0 %v9140_v39 }
 0x4cf   :  { %6378 = vmatprep.subr.bf16.mxu0 %v9145_v40 }
 0x4d2   :  { %6379 = vmatpush1.bf16.msra.mxu0 %v9143_v41 }
 0x4d3   :  { %6380 = vmatprep.subr.bf16.mxu0 %v9148_v42 }
 0x4d6   :  { %6381 = vmatpush1.bf16.msra.mxu0 %v9146_v43 }
 0x4d7   :  { %6382 = vmatprep.subr.bf16.mxu0 %v9151_v44 }
 0x4da   :  { %6383 = vmatpush1.bf16.msra.mxu0 %v9149_v45 }
 0x4db   :  { %6384 = vmatprep.subr.bf16.mxu0 %v9154_v46 }
 0x4de   :  { %6385 = vmatpush1.bf16.msra.mxu0 %v9152_v47  ;;  %v7695_v47 = vld [vmem:[#allocation19] ss:$0 sm:$0xff] }
 0x4df   :  { %6386 = vmatprep.subr.bf16.mxu0 %v9157_v48 }
 0x4e2   :  { %6387 = vmatpush1.bf16.msra.mxu0 %v9155_v49 }
 0x4e5   :  { %6389 = vmatmul.mubr.bf16.vlgmr.msra.gmra.mrb[4].mxu0 %v5915_v16  ;;  %v9181_v16 = vld [vmem:[#allocation14 + $0x38] sm:$0xff]  }
 0x5b8   :  { %v6390_v62 = vpop.f32.mrb[4].mxu0 }
 0x5b9   :  { %v7792_v63 = vadd.f32 %v6390_v62, %v5986_v60  ;;  %v6392_v0 = vpop.f32.mrb[5].mxu0 }
 0x5ba   :  { %v7793_v1 = vadd.f32 %v6392_v0, %v5990_v61  ;;  %v6394_v2 = vpop.f32.mrb[6].mxu0 }
 0x5bb   :  { %v7794_v3 = vadd.f32 %v6394_v2, %v5986_v60  ;;  %v6396_v4 = vpop.f32.mrb[7].mxu0  ;;  %v6399_v6 = vmax.f32 %v7792_v63, 0.0 }
 0x5bc   :  { %v7795_v5 = vadd.f32 %v6396_v4, %v5990_v61  ;;  %v6400_v8 = vmax.f32 %v7793_v1, 0.0 }
 0x5bd   :  { %v6401_v7 = vmax.f32 %v7794_v3, 0.0 }
 0x5be   :  { %v6402_v9 = vmax.f32 %v7795_v5, 0.0 }
 0x5bf   :  { %v6403_v10 = vpack.c.bf16 %v6401_v7, %v6399_v6 }
 0x5c0   :  { %v6404_v11 = vpack.c.bf16 %v6402_v9, %v6400_v8 }
 0x5c2   :  { %6572 = vmatprep.mubr.bf16.mxu1 %v6404_v11 }
 0x5c3   :  { %6573 = vmatmul.mubr.bf16.vlgmr.msra.gmra.mrb[4].mxu1 %v6403_v10 }
 0x5c4   :  { %7745 = vmatpush3.bf16.msra.mxu1 %v9174_v12  ;;  %7760 = vmatprep.mubr.msk.bf16.mxu1 %vm9488_vm0, %v9487_v58 }
 0x5c5   :  { %7746 = vmatprep.subr.bf16.mxu1 %v9487_v58 }
 0x5c8   :  { %7747 = vmatpush3.bf16.msra.mxu1 %v9175_v53 }
 0x5c9   :  { %7748 = vmatprep.subr.bf16.mxu1 %v9487_v58 }
 0x5cc   :  { %7749 = vmatpush3.bf16.msra.mxu1 %v9176_v54 }
 0x5cd   :  { %7750 = vmatprep.subr.bf16.mxu1 %v9487_v58 }
 0x5d0   :  { %7751 = vmatpush3.bf16.msra.mxu1 %v9177_v57 }
 0x5d1   :  { %7752 = vmatprep.subr.bf16.mxu1 %v9487_v58 }
 0x5d4   :  { %7753 = vmatpush3.bf16.msra.mxu1 %v9178_v13 }
 0x5d5   :  { %7754 = vmatprep.subr.bf16.mxu1 %v9487_v58 }
 0x5d8   :  { %7755 = vmatpush3.bf16.msra.mxu1 %v9179_v14 }
 0x5d9   :  { %7756 = vmatprep.subr.bf16.mxu1 %v9487_v58 }
 0x5dc   :  { %7757 = vmatpush3.bf16.msra.mxu1 %v9180_v15 }
 0x5dd   :  { %7758 = vmatprep.subr.bf16.mxu1 %v9487_v58 }
 0x5e0   :  { %7759 = vmatpush3.bf16.msra.mxu1 %v9181_v16 }
 0x5e1   :  { %7764 = vmatprep.subr.bf16.mxu1 %v9487_v58 }
 0x696   :  { %v7720_v17 = vpop.f32.mrb[4].mxu1 }
 0x697   :  { %v7721_v19 = vpop.f32.mrb[5].mxu1 }
 0x698   :  { %v7722_v20 = vadd.f32 %v7721_v19, %v7720_v17  ;;  %v7723_v21 = vpop.f32.mrb[6].mxu1 }
 0x699   :  { %v7724_v22 = vpop.f32.mrb[7].mxu1 }
 0x69a   :  { %v6575_v23 = vadd.f32 %v7722_v20, %v7669_v18  ;;  %v7725_v24 = vadd.f32 %v7724_v22, %v7723_v21 }
 0x69c   :  { %v6578_v25 = vadd.f32 %v7725_v24, %v7669_v18  ;;  %v6581_v26 = vmax.f32 %v6575_v23, 0.0 }
 0x69e   :  { %v6582_v27 = vmax.f32 %v6578_v25, 0.0 }
 0x6a0   :  { %v6583_v29 = vpack.c.bf16 %v6582_v27, %v6581_v26 }
 0x6a2   :  { %7761 = vmatmul.mubr.bf16.vlgmr.msra.gmra.mrb[8].mxu1 %v6583_v29 }
 0x6a3   :  { %7765 = vmatpush3.bf16.msra.mxu1 %v9182_v28  ;;  %7780 = vmatprep.mubr.msk.bf16.mxu1 %vm9488_vm0, %v9487_v58 }
 0x6a4   :  { %7766 = vmatprep.subr.bf16.mxu1 %v9487_v58 }
 0x6a7   :  { %7767 = vmatpush3.bf16.msra.mxu1 %v9183_v30 }
 0x6a8   :  { %7768 = vmatprep.subr.bf16.mxu1 %v9487_v58 }
 0x6ab   :  { %7769 = vmatpush3.bf16.msra.mxu1 %v9184_v31 }
 0x6ac   :  { %7770 = vmatprep.subr.bf16.mxu1 %v9487_v58 }
 0x6af   :  { %7771 = vmatpush3.bf16.msra.mxu1 %v9185_v32 }
 0x6b0   :  { %7772 = vmatprep.subr.bf16.mxu1 %v9487_v58 }
 0x6b3   :  { %7773 = vmatpush3.bf16.msra.mxu1 %v9186_v33 }
 0x6b4   :  { %7774 = vmatprep.subr.bf16.mxu1 %v9487_v58 }
 0x6b7   :  { %7775 = vmatpush3.bf16.msra.mxu1 %v9187_v34 }
 0x6b8   :  { %7776 = vmatprep.subr.bf16.mxu1 %v9487_v58 }
 0x6bb   :  { %7777 = vmatpush3.bf16.msra.mxu1 %v9188_v35 }
 0x6bc   :  { %7778 = vmatprep.subr.bf16.mxu1 %v9487_v58 }
 0x6bf   :  { %7779 = vmatpush3.bf16.msra.mxu1 %v9189_v36 }
 0x775   :  { %v6689_v38 = vpop.f32.mrb[8].mxu1 }
 0x776   :  { %v6690_v39 = vadd.f32 %v7686_v37, %v6689_v38  ;;  %v7762_v40 = vpop.f32.mrb[9].mxu1 }
 0x777   :  { %v6692_v41 = vpop.f32.mrb[10].mxu1 }
 0x778   :  { %v6693_v42 = vadd.f32 %v7686_v37, %v6692_v41  ;;  %v7763_v43 = vpop.f32.mrb[11].mxu1  ;;  %v6696_v44 = vmax.f32 %v6690_v39, 0.0 }
 0x77a   :  { %v6697_v45 = vmax.f32 %v6693_v42, 0.0 }
 0x77c   :  { %v6698_v46 = vpack.c.bf16 %v6697_v45, %v6696_v44 }
 0x77e   :  { %7781 = vmatmul.mubr.bf16.vlgmr.msra.gmra.mrb[12].mxu1 %v6698_v46 }
 0x851   :  { %v6804_v48 = vpop.f32.mrb[12].mxu1 }
 0x852   :  { %v6805_v49 = vadd.f32 %v7695_v47, %v6804_v48  ;;  %v7782_v50 = vpop.f32.mrb[13].mxu1 }
 0x853   :  { %v6807_v51 = vpop.f32.mrb[14].mxu1 }
 0x854   :  { %v6811_v52 = vmax.f32 %v6805_v49, 0.0  ;;  %v6808_v55 = vadd.f32 %v7695_v47, %v6807_v51  ;;  %v7783_v56 = vpop.f32.mrb[15].mxu1 }
 0x856   :  { %6813 = vst [vmem:[#allocation20] sm:$0xff] %v6811_v52  ;;  %v6812_v58 = vmax.f32 %v6808_v55, 0.0 }
 0x858   :  { %6814 = vst [vmem:[#allocation20 + $0x8] sm:$0xff] %v6812_v58 }
 0x859   :  { %9443 = shalt.err (!%p9440_p8)
}
 0x85a   :  { %s9444_s26 = scalar_lea.hbm %s9763_s11, 256 }
 0x85b   :  { %p9445_p9 = scmp.ne.s32.totalorder %s9763_s11, %s9444_s26  ;;  %p9448_p10 = scmp.lt.u32.totalorder %s9444_s26, %s9763_s11 }
 0x85d   :  { %p9450_p11 = pnand %p9448_p10, %p9445_p9 }
 0x85f   :  { %9453 = shalt.err (!%p9450_p11)
}
 0x860   :  { %6826 = dma.vmem_to_hbm [thread:$0]  %s6821_s22, 256, %s9763_s11, [#allocation4], %s9472_s1, %s9472_s1, %s9473_s18  }
 0x861   :  { %9466 = dma.done.wait [#allocation4], 256  }
 0x862   :  { %9467 = vsyncadd [#allocation4], 4294967040 }
 0x863   :  { %6830 = vsyncpa [#allocation3], 1 }
 0x864   :  { %6831 = vsyncpa [#allocation6], 1 }
 0x865   :  { %6832 = vsyncpa [#allocation9], 1 }
 0x866   :  { %6833 = vsyncpa [#allocation12], 1 }
 0x867   :  { %6834 = vsyncpa [#allocation15], 1 }
 0x868   :  { %6835 = vsyncpa [#allocation18], 1 }
 0x869   :  { %6836 = vsyncpa [#allocation4], 1 }

</bundles_post_ra>
